<compile_context>
chip_gen: v7x
topology: tpu7x:2x2x1
jax: 0.10.0
libtpu: 0.0.40
codegen_flags: <defaults>
</compile_context>

<pallas_src>
import functools

import jax
import jax.numpy as jnp
from jax import lax
from jax.experimental import pallas as pl
from jax.experimental.pallas import tpu as pltpu


# --------------------------------------------------------------------------
# Fused Pallas kernel: per-sample 1x1 conv (1024 -> 768) + GLoRIA attention_fn
# (double softmax), emitting only the first-word spatial attention row.
#
#   ctx_T[d, s]  = sum_c W[d, c] * x[c, s]                  (1x1 conv, MXU)
#   logits[t, s] = word[t, :] . (ctx_T[:, s] + bias)        (MXU + folded bias)
#   attn0        = softmax over words t (only the cap_len valid words)
#   attn1[0, :]  = softmax over source s of (temp1 * attn0[0, :])
# --------------------------------------------------------------------------
def _fused_conv_attn_kernel(cap_ref, xt_ref, wt_ref, b_ref, word_ref, o_ref,
                            *, temp1):
    i = pl.program_id(0)
    n_words = cap_ref[i]                       # valid words for this caption

    xt = xt_ref[0]                             # [Cin, S]   channel-first
    wt = wt_ref[...]                           # [Cout, Cin] resident block
    word = word_ref[0]                         # [T, Cout]

    # 1x1 conv, produced directly in (D, S) layout -> plain MXU matmul, and the
    # logits dot below needs no transpose.
    ctx_t = jnp.dot(wt, xt, preferred_element_type=jnp.float32)        # [Cout,S]

    # Bias folded exactly into the logits:
    #   word @ (ctx_T + b 1^T) = word @ ctx_T + (word @ b) 1^T
    bias_t = jnp.sum(word * b_ref[...], axis=1, keepdims=True)         # [T, 1]
    logits = jnp.dot(word, ctx_t, preferred_element_type=jnp.float32) + bias_t

    T, S = logits.shape
    t_idx = lax.broadcasted_iota(jnp.int32, (T, S), 0)
    valid = t_idx < n_words
    masked = jnp.where(valid, logits, jnp.float32(-1e30))

    # softmax over the word axis, restricted to the valid words.
    m0 = jnp.max(masked, axis=0, keepdims=True)
    e0 = jnp.exp(masked - m0)
    s0 = jnp.sum(e0, axis=0, keepdims=True)
    # Only row 0 (first real word, always valid) is consumed downstream.
    attn0_row0 = e0[0:1, :] * pl.reciprocal(s0, approx=True)           # [1, S]

    # scale by temp1 and softmax over the spatial (source) axis, row 0 only.
    scaled = attn0_row0 * jnp.float32(temp1)
    m1 = jnp.max(scaled, axis=1, keepdims=True)
    e1 = jnp.exp(scaled - m1)
    s1 = jnp.sum(e1, axis=1, keepdims=True)
    o_ref[0] = (e1 * pl.reciprocal(s1, approx=True)).astype(o_ref.dtype)


def gloria_first_word_attn(local_cf, conv_w, conv_b, word_emb, cap_lens, temp1):
    """Fused 1x1 conv + GLoRIA attention, first-word map only.

    local_cf: [B, Cin, S]   channel-first flattened local image features
    conv_w:   [Cout, Cin]   1x1 conv weight (PyTorch Conv2d layout, squeezed)
    conv_b:   [Cout]        1x1 conv bias
    word_emb: [B, T, Cout]  word embeddings (positions 1..T, [CLS] dropped)
    cap_lens: int32 [B]     number of valid words per caption
    returns:  [B, 1, S]     spatial softmax of the first-word attention row
    """
    B, Cin, S = local_cf.shape
    Cout = conv_w.shape[0]
    T = word_emb.shape[1]
    b2d = conv_b.reshape(1, Cout)

    kernel = functools.partial(_fused_conv_attn_kernel, temp1=temp1)
    return pl.pallas_call(
        kernel,
        out_shape=jax.ShapeDtypeStruct((B, 1, S), jnp.float32),
        grid_spec=pltpu.PrefetchScalarGridSpec(
            num_scalar_prefetch=1,
            grid=(B,),
            in_specs=[
                pl.BlockSpec((1, Cin, S), lambda i, cap: (i, 0, 0)),
                pl.BlockSpec((Cout, Cin), lambda i, cap: (0, 0)),    # resident
                pl.BlockSpec((1, Cout), lambda i, cap: (0, 0)),      # resident
                pl.BlockSpec((1, T, Cout), lambda i, cap: (i, 0, 0)),
            ],
            out_specs=pl.BlockSpec((1, 1, S), lambda i, cap: (i, 0, 0)),
        ),
        compiler_params=pltpu.CompilerParams(
            dimension_semantics=("parallel",)        # captions are independent
        ),
    )(cap_lens, local_cf, conv_w, b2d, word_emb)


# --------------------------------------------------------------------------
# Model wrapper (glue in plain JAX, hot path in the fused Pallas kernel).
# --------------------------------------------------------------------------
SPECIAL_TOKENS = {0: "[PAD]", 1: "[CLS]", 2: "[SEP]", 3: "[MASK]"}


class PretrainedGroundingModelPallas:
    def __init__(self, key, *, feat_hw=16, patch=4, img_feat_dim=1024,
                 text_dim=768, vocab=128, temp1=4.0, temp2=5.0, temp3=10.0):
        self.feat_hw = feat_hw
        self.patch = patch
        self.temp1, self.temp2, self.temp3 = temp1, temp2, temp3

        k1, k2, k3, k4 = jax.random.split(key, 4)
        # TODO(synk): real ResNet50 image backbone not reproduced; a deterministic
        # patch-embedding projection stands in for img_encoder(..., get_local=True).
        self.img_proj = jax.random.normal(
            k1, (3 * patch * patch, img_feat_dim), jnp.float32) * 0.05
        # TODO(synk): real BERT text encoder / AutoTokenizer not reproduced; a
        # deterministic embedding table stands in for text_encoder(...).
        self.word_table = jax.random.normal(k2, (vocab, text_dim), jnp.float32) * 0.05
        # 1x1 conv parameters (torch: nn.Conv2d(1024, 768, 1)), kept in PyTorch's
        # [Cout, Cin] layout so the fused kernel needs no weight transpose.
        self.conv_w = jax.random.normal(k3, (text_dim, img_feat_dim), jnp.float32) * 0.02
        self.conv_b = jax.random.normal(k4, (text_dim,), jnp.float32) * 0.01

    # -------- synthetic encoders (glue, plain JAX) --------
    def img_encoder(self, image_nchw):
        B = image_nchw.shape[0]
        p, hw = self.patch, self.feat_hw
        x = jnp.transpose(image_nchw, (0, 2, 3, 1))                    # NHWC
        x = x.reshape(B, hw, p, hw, p, 3)
        x = jnp.transpose(x, (0, 1, 3, 2, 4, 5)).reshape(B, hw, hw, 3 * p * p)
        local_fea = x @ self.img_proj                                  # [B,H,W,1024]
        img_emb_g = jnp.mean(local_fea, axis=(1, 2))                   # global feat
        return img_emb_g, local_fea

    def text_encoder(self, token_ids):
        word_embeddings = self.word_table[token_ids]                   # [B, L, 768]
        sent_embeddings = jnp.mean(word_embeddings, axis=1)
        sents = [
            [SPECIAL_TOKENS.get(int(t), f"word{int(t)}") for t in row]
            for row in token_ids.tolist()
        ]
        return word_embeddings, sent_embeddings, sents

    # -------- forward: mirrors PretrainedGroundingModel.forward --------
    def forward(self, image_nchw, token_ids):
        _, local_fea = self.img_encoder(image_nchw)                    # [B,H,W,Cin]
        word_embeddings, _, sents = self.text_encoder(token_ids)

        B, H, W, Cin = local_fea.shape
        S = H * W
        # Wrapper-side layout plumbing: channel-first, flattened spatial, so both
        # in-kernel dots are lane-aligned MXU matmuls (no in-kernel transpose).
        local_cf = jnp.transpose(local_fea.reshape(B, S, Cin), (0, 2, 1))  # [B,Cin,S]

        # cap_lens exactly as in _calc_local_loss
        cap_lens = jnp.array(
            [len([w for w in s if not w.startswith("[")]) + 1 for s in sents],
            dtype=jnp.int32,
        )

        # words 1..T (skip [CLS] position 0, like words_emb[i, :, 1:words_num+1])
        words = word_embeddings[:, 1:, :]                              # [B, T, D]

        # Fused 1x1 conv + GLoRIA attention (Pallas): first-word map only.
        attn_row0 = gloria_first_word_attn(
            local_cf, self.conv_w, self.conv_b, words, cap_lens, self.temp1
        )                                                              # [B, 1, S]

        # TODO(synk): plot_attn_maps (PIL image dump) intentionally skipped (no file I/O).
        # weight_maps = cat of first-word attention map per caption -> [B, H, W]
        weight_maps = attn_row0.reshape(B, H, W)
        return weight_maps


# --------------------------------------------------------------------------
# Pure-JAX reference of the same math (for correctness checking only).
# --------------------------------------------------------------------------
def _reference_weight_maps(local_fea, conv_w, conv_b, words, cap_lens, temp1):
    B, H, W, Cin = local_fea.shape
    S = H * W
    T = words.shape[1]
    ctx = local_fea.reshape(B, S, Cin) @ conv_w.T + conv_b             # [B, S, D]
    logits = jnp.einsum("btd,bsd->bts", words, ctx)                    # [B, T, S]
    valid = jnp.arange(T)[None, :, None] < cap_lens[:, None, None]
    masked = jnp.where(valid, logits, -1e30)
    attn0 = jax.nn.softmax(masked, axis=1)                             # over words
    attn1 = jax.nn.softmax(attn0 * temp1, axis=2)                      # over source
    return attn1[:, 0, :].reshape(B, H, W)


# --------------------------------------------------------------------------
if __name__ == "__main__":
    key = jax.random.PRNGKey(0)
    k_img, k_model = jax.random.split(key)

    B = 2
    # image in NCHW (as torch would feed to Conv2d); 64x64 -> 16x16 feature grid.
    image = jax.random.normal(k_img, (B, 3, 64, 64), jnp.float32)
    # token ids (seq len 9): pos 0 = [CLS], trailing [PAD]/[SEP]
    token_ids = jnp.array(
        [
            [1, 10, 11, 12, 13, 0, 0, 0, 2],
            [1, 20, 21, 22, 23, 24, 25, 0, 2],
        ],
        dtype=jnp.int32,
    )

    model = PretrainedGroundingModelPallas(k_model)
    weight_maps = model.forward(image, token_ids)
    weight_maps = jax.block_until_ready(weight_maps)

    assert weight_maps.shape == (B, 16, 16)
    assert bool(jnp.all(jnp.isfinite(weight_maps)))
    # each attention map is a softmax over the 256 spatial locations
    # (approx reciprocal on the EUP -> slightly looser tolerance)
    sums = jnp.sum(weight_maps.reshape(B, -1), axis=-1)
    assert bool(jnp.allclose(sums, 1.0, atol=1e-2))

    # correctness vs pure-JAX reference
    _, local_fea = model.img_encoder(image)
    word_embeddings, _, sents = model.text_encoder(token_ids)
    cap_lens = jnp.array(
        [len([w for w in s if not w.startswith("[")]) + 1 for s in sents],
        dtype=jnp.int32,
    )
    ref = _reference_weight_maps(
        local_fea, model.conv_w, model.conv_b,
        word_embeddings[:, 1:, :], cap_lens, model.temp1,
    )
    assert bool(jnp.allclose(weight_maps, ref, atol=2e-3, rtol=1e-2))

    print("KERNEL_OK")
</pallas_src>

<mosaic_0001>
module attributes {stable_mosaic.version = 11 : i64} {
  func.func @_fused_conv_attn_kernel(%arg0: i32, %arg1: memref<2xi32, #tpu.memory_space<smem>>, %arg2: memref<1x1024x256xf32, #tpu.memory_space<vmem>>, %arg3: memref<768x1024xf32, #tpu.memory_space<vmem>>, %arg4: memref<1x768xf32, #tpu.memory_space<vmem>>, %arg5: memref<1x8x768xf32, #tpu.memory_space<vmem>>, %arg6: memref<1x1x256xf32, #tpu.memory_space<vmem>>) attributes {dimension_semantics = [#tpu.dimension_semantics<parallel>], iteration_bounds = array<i64: 2>, scalar_prefetch = 1 : i64, scratch_operands = 0 : i64, tpu.core_type = #tpu.core_type<tc>, window_params = [{transform_indices = @transform_0, window_bounds = array<i64: 1, 1024, 256>}, {pipeline_mode = #tpu.pipeline_mode<synchronous>, transform_indices = @transform_1, window_bounds = array<i64: 768, 1024>}, {pipeline_mode = #tpu.pipeline_mode<synchronous>, transform_indices = @transform_2, window_bounds = array<i64: 1, 768>}, {transform_indices = @transform_3, window_bounds = array<i64: 1, 8, 768>}, {transform_indices = @transform_4, window_bounds = array<i64: 1, 1, 256>}]} {
    %0 = arith.index_cast %arg0 : i32 to index
    %1 = memref.load %arg1[%0] : memref<2xi32, #tpu.memory_space<smem>>
    %c0 = arith.constant 0 : index
    %c0_0 = arith.constant 0 : index
    %c0_1 = arith.constant 0 : index
    %2 = vector.load %arg2[%c0, %c0_0, %c0_1] : memref<1x1024x256xf32, #tpu.memory_space<vmem>>, vector<1x1024x256xf32>
    %3 = vector.shape_cast %2 : vector<1x1024x256xf32> to vector<1024x256xf32>
    %c0_2 = arith.constant 0 : index
    %c0_3 = arith.constant 0 : index
    %4 = vector.load %arg3[%c0_2, %c0_3] : memref<768x1024xf32, #tpu.memory_space<vmem>>, vector<768x1024xf32>
    %c0_4 = arith.constant 0 : index
    %c0_5 = arith.constant 0 : index
    %c0_6 = arith.constant 0 : index
    %5 = vector.load %arg5[%c0_4, %c0_5, %c0_6] : memref<1x8x768xf32, #tpu.memory_space<vmem>>, vector<1x8x768xf32>
    %6 = vector.shape_cast %5 : vector<1x8x768xf32> to vector<8x768xf32>
    %cst = arith.constant dense<0.000000e+00> : vector<768x256xf32>
    %7 = tpu.matmul %4, %3, %cst {dimension_numbers = #tpu.dot_dimension_numbers<[1], [0], [0], [1], [0, 0, 1, 1], [], []>} : vector<768x1024xf32>, vector<1024x256xf32>, vector<768x256xf32> -> vector<768x256xf32>
    %c0_7 = arith.constant 0 : index
    %c0_8 = arith.constant 0 : index
    %8 = vector.load %arg4[%c0_7, %c0_8] : memref<1x768xf32, #tpu.memory_space<vmem>>, vector<1x768xf32>
    %9 = vector.broadcast %8 : vector<1x768xf32> to vector<8x768xf32>
    %10 = arith.mulf %6, %9 : vector<8x768xf32>
    %cst_9 = arith.constant dense<0.000000e+00> : vector<8xf32>
    %11 = vector.multi_reduction <add>, %10, %cst_9 [1] : vector<8x768xf32> to vector<8xf32>
    %12 = vector.shape_cast %11 : vector<8xf32> to vector<8x1xf32>
    %cst_10 = arith.constant dense<0.000000e+00> : vector<8x256xf32>
    %13 = tpu.matmul %6, %7, %cst_10 {dimension_numbers = #tpu.dot_dimension_numbers<[1], [0], [0], [1], [0, 0, 1, 1], [], []>} : vector<8x768xf32>, vector<768x256xf32>, vector<8x256xf32> -> vector<8x256xf32>
    %14 = vector.broadcast %12 : vector<8x1xf32> to vector<8x256xf32>
    %15 = arith.addf %13, %14 : vector<8x256xf32>
    %16 = tpu.iota {dimensions = array<i32: 0>} : vector<8x256xi32>
    %17 = vector.broadcast %1 : i32 to vector<8x256xi32>
    %18 = arith.cmpi slt, %16, %17 : vector<8x256xi32>
    %cst_11 = arith.constant -1.000000e+30 : f32
    %19 = vector.broadcast %cst_11 : f32 to vector<8x256xf32>
    %20 = arith.select %18, %15, %19 : vector<8x256xi1>, vector<8x256xf32>
    %cst_12 = arith.constant dense<0xFF800000> : vector<256xf32>
    %21 = vector.multi_reduction <maximumf>, %20, %cst_12 [0] : vector<8x256xf32> to vector<256xf32>
    %22 = vector.shape_cast %21 : vector<256xf32> to vector<1x256xf32>
    %23 = vector.broadcast %22 : vector<1x256xf32> to vector<8x256xf32>
    %24 = arith.subf %20, %23 : vector<8x256xf32>
    %25 = math.exp %24 : vector<8x256xf32>
    %cst_13 = arith.constant dense<0.000000e+00> : vector<256xf32>
    %26 = vector.multi_reduction <add>, %25, %cst_13 [0] : vector<8x256xf32> to vector<256xf32>
    %27 = vector.shape_cast %26 : vector<256xf32> to vector<1x256xf32>
    %28 = vector.extract_strided_slice %25 {offsets = [0, 0], sizes = [1, 256], strides = [1, 1]} : vector<8x256xf32> to vector<1x256xf32>
    %29 = tpu.reciprocal %27 {approx = true} : vector<1x256xf32> -> vector<1x256xf32>
    %30 = arith.mulf %28, %29 : vector<1x256xf32>
    %cst_14 = arith.constant 4.000000e+00 : f32
    %31 = vector.broadcast %cst_14 : f32 to vector<1x256xf32>
    %32 = arith.mulf %30, %31 : vector<1x256xf32>
    %cst_15 = arith.constant dense<0xFF800000> : vector<1xf32>
    %33 = vector.multi_reduction <maximumf>, %32, %cst_15 [1] : vector<1x256xf32> to vector<1xf32>
    %34 = vector.shape_cast %33 : vector<1xf32> to vector<1x1xf32>
    %35 = vector.broadcast %34 : vector<1x1xf32> to vector<1x256xf32>
    %36 = arith.subf %32, %35 : vector<1x256xf32>
    %37 = math.exp %36 : vector<1x256xf32>
    %cst_16 = arith.constant dense<0.000000e+00> : vector<1xf32>
    %38 = vector.multi_reduction <add>, %37, %cst_16 [1] : vector<1x256xf32> to vector<1xf32>
    %39 = vector.shape_cast %38 : vector<1xf32> to vector<1x1xf32>
    %40 = tpu.reciprocal %39 {approx = true} : vector<1x1xf32> -> vector<1x1xf32>
    %41 = vector.broadcast %40 : vector<1x1xf32> to vector<1x256xf32>
    %42 = arith.mulf %37, %41 : vector<1x256xf32>
    %c0_17 = arith.constant 0 : index
    %c0_18 = arith.constant 0 : index
    %c0_19 = arith.constant 0 : index
    %43 = vector.load %arg6[%c0_17, %c0_18, %c0_19] : memref<1x1x256xf32, #tpu.memory_space<vmem>>, vector<1x1x256xf32>
    %44 = vector.shape_cast %43 : vector<1x1x256xf32> to vector<1x256xf32>
    %45 = vector.shape_cast %42 : vector<1x256xf32> to vector<1x1x256xf32>
    tpu.vector_store %arg6[%c0_17, %c0_18, %c0_19], %45 {strides = array<i32>} : memref<1x1x256xf32, #tpu.memory_space<vmem>>, vector<1x1x256xf32>,
    return
  }
  func.func @transform_0(%arg0: i32, %arg1: memref<2xi32, #tpu.memory_space<smem>>) -> (i32, i32, i32) {
    %c0_i32 = arith.constant 0 : i32
    %c0_i32_0 = arith.constant 0 : i32
    %c0_i32_1 = arith.constant 0 : i32
    return %arg0, %c0_i32, %c0_i32_0 : i32, i32, i32
  }
  func.func @transform_1(%arg0: i32, %arg1: memref<2xi32, #tpu.memory_space<smem>>) -> (i32, i32) {
    %c0_i32 = arith.constant 0 : i32
    %c0_i32_0 = arith.constant 0 : i32
    %c0_i32_1 = arith.constant 0 : i32
    return %c0_i32, %c0_i32_0 : i32, i32
  }
  func.func @transform_2(%arg0: i32, %arg1: memref<2xi32, #tpu.memory_space<smem>>) -> (i32, i32) {
    %c0_i32 = arith.constant 0 : i32
    %c0_i32_0 = arith.constant 0 : i32
    %c0_i32_1 = arith.constant 0 : i32
    return %c0_i32, %c0_i32_0 : i32, i32
  }
  func.func @transform_3(%arg0: i32, %arg1: memref<2xi32, #tpu.memory_space<smem>>) -> (i32, i32, i32) {
    %c0_i32 = arith.constant 0 : i32
    %c0_i32_0 = arith.constant 0 : i32
    %c0_i32_1 = arith.constant 0 : i32
    return %arg0, %c0_i32, %c0_i32_0 : i32, i32, i32
  }
  func.func @transform_4(%arg0: i32, %arg1: memref<2xi32, #tpu.memory_space<smem>>) -> (i32, i32, i32) {
    %c0_i32 = arith.constant 0 : i32
    %c0_i32_0 = arith.constant 0 : i32
    %c0_i32_1 = arith.constant 0 : i32
    return %arg0, %c0_i32, %c0_i32_0 : i32, i32, i32
  }
}

</mosaic_0001>

<bundles_post_ra>
// kernel: tpu_custom_call.1
= control target key start
LH: loop header
LB: loop body
LE: loop exit
PB: predicated region body
PF: predicated region fallthrough
CT: control target
= control target key end

     0   :  { %s7048_s0 = inlined_call_operand.hbm [shape: s32[2], index: 0, kind: input, shape index: {}]   ;;  %s7049_s1 = inlined_call_operand.hbm [shape: f32[2,1024,256], index: 1, kind: input, shape index: {}]   ;;  %s7050_s2 = inlined_call_operand.hbm [shape: f32[768,1024], index: 2, kind: input, shape index: {}]   ;;  %s7051_s3 = inlined_call_operand.hbm [shape: f32[1,768], index: 3, kind: input, shape index: {}]   ;;  %s7052_s4 = inlined_call_operand.hbm [shape: f32[2,8,768], index: 4, kind: input, shape index: {}]   ;;  %s7053_s5 = inlined_call_operand.hbm [shape: f32[2,1,256], index: 5, kind: output, shape index: {}]  }
   0x1   :  { %s5530_s20 = scalar_lea.hbm %s7048_s0, 16 }
   0x2   :  { %p5531_p0 = scmp.ne.s32.totalorder %s7048_s0, %s5530_s20  ;;  %p5534_p1 = scmp.lt.u32.totalorder %s5530_s20, %s7048_s0 }
   0x4   :  { %p5536_p2 = pnand %p5534_p1, %p5531_p0 }
   0x6   :  { %5539 = shalt.err (!%p5536_p2)  }
   0x7   :  { %s5734_s25 = smov [#allocation3]  }
   0x8   :  { %11 = dma.hbm_to_smem %s7048_s0, 16, %s5734_s25, [#allocation2] }
   0x9   :  { %5700 = dma.done.wait [#allocation2], 16 }
   0xa   :  { %5701 = vsyncadd [#allocation2], 4294967280 }
   0xb   :  { %13 = sfence }
   0xc   :  { %14 = vsyncpa [#allocation5], 0 }
   0xd   :  { %16 = vsyncpa [#allocation5 + $0x1], 0 }
   0xe   :  { %17 = vsyncpa [#allocation8], 0 }
   0xf   :  { %18 = vsyncpa [#allocation11], 0 }
  0x10   :  { %20 = vsyncpa [#allocation11 + $0x1], 0 }
  0x11   :  { %21 = vsyncpa [#allocation6], 0 }
  0x12   :  { %23 = vsyncpa [#allocation6 + $0x1], 0  ;;  %s5787_s28 = smov 0   ;;  %s5789_s29 = smov 0  }
  0x13   :  { %s5791_s30 = smov 0   ;;  %s5793_s6 = smov 0  }
  0x14 LB: > { %s5808_s0 = sadd.s32 4294967295, %s5732_s6   ;;  %s4351_s7 = sadd.s32 4294967294, %s5732_s6   ;;  %s5732_s6 = sphi %s5793_s6, %s7213_s6   ;;  %s5728_s30 = sphi %s5791_s30, %s7212_s30   ;;  %s5724_s29 = sphi %s5789_s29, %s7211_s29   ;;  %s5720_s28 = sphi %s5787_s28, %s7210_s28  }
  0x15   : > { %s5812_s8 = sadd.s32 1, %s5732_s6   ;;  %s36_s9 = sadd.s32 1, %s5728_s30 }
  0x16   : > { %s33_s10 = ssub.s32 %s5732_s6, %s5812_s8  ;;  %p43_p3 = scmp.ne.s32.totalorder %s5728_s30, %s5724_s29 }
  0x17   : > { %p34_p4 = scmp.eq.s32.totalorder %s33_s10, 0  ;;  %p44_p5 = scmp.eq.s32.totalorder %s5732_s6, 0 }
  0x18   : > { %p49_p6 = scmp.ne.s32.totalorder %s5724_s29, %s5720_s28  ;;  %p7054_p7 = scmp.eq.s32.totalorder %s5808_s0, 0 }
  0x19   : > { %s5824_s11 = scalar_select %p34_p4, %s5728_s30, %s36_s9  }
  0x1a   : > { %p5826_p8 = por %p44_p5, %p43_p3  ;;  %p5832_p9 = por %p7054_p7, %p49_p6 }
  0x1b   : > { %7059 = sst [smem:[#allocation18_spill]] %s5824_s11  ;;  %p141_p10 = scmp.eq.s32.totalorder %s5808_s0, 1 }
  0x1c   : > { %s7060_s12 = scalar_select %p5826_p8, 1, 0 }
  0x1d   : > { %s7061_s13 = scalar_select %p5832_p9, 1, 0 }
  0x1e   : > { %p147_p11 = scmp.eq.s32.totalorder %s4351_s7, 1  ;;  %p4352_p12 = scmp.ge.s32.totalorder %s5732_s6, 1 }
  0x1f   : > { %p154_p13 = scmp.lt.s32.totalorder %s5732_s6, 3  ;;  %p5839_p0 = por %p141_p10, %p43_p3 }
  0x20   : > { %p5843_p1 = por %p147_p11, %p49_p6  ;;  %s5735_s17 = smov [#allocation7]  }
  0x21   : > { %s7062_s14 = scalar_select %p5839_p0, 1, 0 }
  0x22   : > { %s7063_s15 = scalar_select %p5843_p1, 1, 0 }
  0x23   : > { %p5847_p2 = pnand %p4352_p12, %p154_p13  ;;  %s166_s18 = sshll.u32 %s5735_s17, 4  ;;  %s167_s18 = int_to_ptr.vmem [resolvable:$true] %s166_s18 }
  0x24   : > { %s5736_s20 = smov [#allocation9]   ;;  %s5540_s24 = scalar_lea.hbm %s7050_s2, 98304 }
  0x25   : > { %s7064_s16 = scalar_select %p5847_p2, 1, 0 }
  0x26   : > { %p5451_p4 = pneg %p5847_p2  ;;  %s180_s21 = sshll.u32 %s5736_s20, 4  ;;  %s181_s21 = int_to_ptr.vmem [resolvable:$true] %s180_s21 }
  0x27   : > { %p5541_p10 = scmp.ne.s32.totalorder %s7050_s2, %s5540_s24 }
  0x28   : > { %p5855_p5 = pnand %p5451_p4, %p7054_p7  ;;  %p5547_p4 = scmp.lt.u32.totalorder %s5540_s24, %s7050_s2 }
  0x2a   : > { %p5542_p11 = pneg %p5855_p5 }
  0x2c   : > { %p5543_p12 = pnand %p5542_p11, %p5541_p10 }
  0x2e   : > { %p5544_p13 = pneg %p5543_p12 }
  0x30   : > { %p5549_p3 = pnand %p5547_p4, %p5544_p13 }
  0x32   : > { %5552 = shalt.err (!%p5549_p3)
}
  0x33   : > { %s5553_s9 = scalar_lea.vmem %s167_s18, 98304  ;;  %p5561_p0 = scmp.lt.s32.totalorder %s167_s18, %s167_s18 }
  0x34   : > { %p5554_p7 = scmp.ne.s32.totalorder %s167_s18, %s5553_s9  ;;  %p5562_p9 = scmp.lt.s32.totalorder %s5553_s9, %s5553_s9 }
  0x36   : > { %p5556_p6 = pnand %p5554_p7, %p5542_p11  ;;  %p5563_p2 = por %p5562_p9, %p5561_p0 }
  0x38   : > { %p5557_p1 = pneg %p5556_p6 }
  0x3a   : > { %p5564_p8 = pnand %p5563_p2, %p5557_p1 }
  0x3c   : > { %5567 = shalt.err (!%p5564_p8)
}
  0x3d   : > { %s5737_s10 = smov 1024   ;;  %s5738_s17 = smov 64  }
  0x3e   : > { %5454 = dma.hbm_to_vmem [thread:$0]  (!%p5855_p5), %s7050_s2, 98304, %s167_s18, [#allocation8], %s5737_s10, %s5737_s10, %s5738_s17  }
  0x3f   : > { %s5884_s23 = sand.u32 1, %s5728_s30   ;;  %s5568_s26 = scalar_lea.hbm %s7051_s3, 96 }
  0x40   : > { %p5569_p7 = scmp.ne.s32.totalorder %s7051_s3, %s5568_s26  ;;  %p5575_p0 = scmp.lt.u32.totalorder %s5568_s26, %s7051_s3 }
  0x42   : > { %p5571_p8 = pnand %p5569_p7, %p5542_p11 }
  0x44   : > { %p5572_p9 = pneg %p5571_p8 }
  0x46   : > { %p5577_p1 = pnand %p5575_p0, %p5572_p9 }
  0x48   : > { %5580 = shalt.err (!%p5577_p1)
}
  0x49   : > { %s5581_s18 = scalar_lea.vmem %s181_s21, 96  ;;  %p5589_p10 = scmp.lt.s32.totalorder %s181_s21, %s181_s21 }
  0x4a   : > { %p5582_p2 = scmp.ne.s32.totalorder %s181_s21, %s5581_s18  ;;  %p5590_p12 = scmp.lt.s32.totalorder %s5581_s18, %s5581_s18 }
  0x4c   : > { %p5584_p3 = pnand %p5582_p2, %p5542_p11  ;;  %p5591_p13 = por %p5590_p12, %p5589_p10 }
  0x4e   : > { %p5585_p6 = pneg %p5584_p3 }
  0x50   : > { %p5592_p4 = pnand %p5591_p13, %p5585_p6 }
  0x52   : > { %5595 = shalt.err (!%p5592_p4)
}
  0x53   : > { %5457 = dma.hbm_to_vmem [thread:$0]  (!%p5855_p5), %s7051_s3, 96, %s181_s21, [#allocation8]  }
  0x54   : > { %s4356_s11 = sshll.u32 %s5884_s23, 11  ;;  %s4370_s20 = sshll.u32 %s5732_s6, 15 }
  0x55   : > { %s5911_s25 = scalar_lea.hbm %s7049_s1, %s4370_s20  ;;  %s195_s19 = scalar_lea.vmem [#allocation4], %s4356_s11 }
  0x56   : > { %s202_s26 = sshll.u32 %s195_s19, 4  ;;  %p7066_p11 = scmp.ne.s32.totalorder %s7060_s12, 0  ;;  %s5913_s26 = int_to_ptr.vmem [resolvable:$true] %s202_s26 }
  0x57   : > { %p7067_p7 = scmp.lt.s32.totalorder %s5732_s6, 2  ;;  %s192_s21 = scalar_lea.sflag [#allocation5], %s5884_s23 }
  0x58   : > { %s5596_s7 = scalar_lea.hbm %s5911_s25, 32768  ;;  %s5601_s12 = scalar_lea.hbm %s7049_s1, 65536 }
  0x59   : > { %p5919_p8 = pnand %p7067_p7, %p7066_p11  ;;  %p5597_p5 = scmp.ne.s32.totalorder %s5911_s25, %s5596_s7 }
  0x5a   : > { %p5602_p2 = scmp.lt.u32.totalorder %s5911_s25, %s7049_s1  ;;  %p5603_p3 = scmp.lt.u32.totalorder %s5601_s12, %s5596_s7 }
  0x5b   : > { %p5598_p9 = pneg %p5919_p8  ;;  %p5605_p10 = scmp.lt.u32.totalorder %s5596_s7, %s5911_s25 }
  0x5c   : > { %p5604_p6 = por %p5603_p3, %p5602_p2 }
  0x5d   : > { %p5599_p0 = pnand %p5598_p9, %p5597_p5 }
  0x5e   : > { %p5606_p12 = por %p5605_p10, %p5604_p6 }
  0x5f   : > { %p5600_p1 = pneg %p5599_p0 }
  0x61   : > { %p5607_p13 = pnand %p5606_p12, %p5600_p1 }
  0x63   : > { %5610 = shalt.err (!%p5607_p13)
}
  0x64   : > { %s5611_s11 = scalar_lea.vmem %s5913_s26, 32768  ;;  %s5739_s20 = smov [#allocation4]  }
  0x65   : > { %p5612_p4 = scmp.ne.s32.totalorder %s5913_s26, %s5611_s11  ;;  %s5616_s22 = sshll.u32 %s5739_s20, 4  ;;  %s5617_s22 = int_to_ptr.vmem [resolvable:$false] %s5616_s22 }
  0x66   : > { %s5618_s24 = scalar_lea.vmem %s5617_s22, 65536  ;;  %p5619_p5 = scmp.lt.s32.totalorder %s5913_s26, %s5617_s22 }
  0x67   : > { %p5614_p11 = pnand %p5612_p4, %p5598_p9  ;;  %p5620_p0 = scmp.lt.s32.totalorder %s5618_s24, %s5611_s11 }
  0x69   : > { %p5615_p7 = pneg %p5614_p11  ;;  %p5621_p2 = por %p5620_p0, %p5619_p5 }
  0x6b   : > { %p5622_p3 = pnand %p5621_p2, %p5615_p7 }
  0x6d   : > { %5625 = shalt.err (!%p5622_p3)
}
  0x6e   : > { %s5740_s19 = smov 256   ;;  %s5741_s7 = smov 16  }
  0x6f   : > { %5461 = dma.hbm_to_vmem [thread:$0]  (!%p5919_p8), %s5911_s25, 32768, %s5913_s26, %s192_s21, %s5740_s19, %s5740_s19, %s5741_s7  }
  0x70   : > { %s5434_s9 = smul.u32 48, %s5884_s23  ;;  %s213_s22 = scalar_lea.sflag [#allocation11], %s5884_s23 }
  0x71   : > { %s5435_s18 = smul.u32 768, %s5732_s6  ;;  %s5631_s21 = scalar_lea.hbm %s7052_s4, 1536 }
  0x72   : > { %s216_s11 = scalar_lea.vmem [#allocation10], %s5434_s9 }
  0x73   : > { %s5956_s17 = scalar_lea.hbm %s7052_s4, %s5435_s18  ;;  %s224_s20 = sshll.u32 %s216_s11, 4  ;;  %s225_s20 = int_to_ptr.vmem [resolvable:$true] %s224_s20 }
  0x74   : > { %s5626_s24 = scalar_lea.hbm %s5956_s17, 768  ;;  %p5632_p12 = scmp.lt.u32.totalorder %s5956_s17, %s7052_s4 }
  0x75   : > { %p5627_p1 = scmp.ne.s32.totalorder %s5956_s17, %s5626_s24  ;;  %p5633_p13 = scmp.lt.u32.totalorder %s5631_s21, %s5626_s24 }
  0x76   : > { %p5635_p11 = scmp.lt.u32.totalorder %s5626_s24, %s5956_s17 }
  0x77   : > { %p5629_p6 = pnand %p5627_p1, %p5598_p9  ;;  %p5634_p4 = por %p5633_p13, %p5632_p12 }
  0x79   : > { %p5630_p10 = pneg %p5629_p6  ;;  %p5636_p7 = por %p5635_p11, %p5634_p4 }
  0x7b   : > { %p5637_p5 = pnand %p5636_p7, %p5630_p10 }
  0x7d   : > { %5640 = shalt.err (!%p5637_p5)
}
  0x7e   : > { %s5641_s23 = scalar_lea.vmem %s225_s20, 768  ;;  %s5742_s9 = smov [#allocation10]  }
  0x7f   : > { %p5642_p0 = scmp.ne.s32.totalorder %s225_s20, %s5641_s23  ;;  %s5646_s18 = sshll.u32 %s5742_s9, 4  ;;  %s5647_s18 = int_to_ptr.vmem [resolvable:$false] %s5646_s18 }
  0x80   : > { %s5648_s12 = scalar_lea.vmem %s5647_s18, 1536  ;;  %p5649_p1 = scmp.lt.s32.totalorder %s225_s20, %s5647_s18 }
  0x81   : > { %p5644_p2 = pnand %p5642_p0, %p5598_p9  ;;  %p5650_p6 = scmp.lt.s32.totalorder %s5648_s12, %s5641_s23 }
  0x83   : > { %p5645_p3 = pneg %p5644_p2  ;;  %p5651_p12 = por %p5650_p6, %p5649_p1 }
  0x85   : > { %p5652_p13 = pnand %p5651_p12, %p5645_p3 }
  0x87   : > { %5655 = shalt.err (!%p5652_p13)
}
  0x88   : > { %5464 = dma.hbm_to_vmem [thread:$0]  (!%p5919_p8), %s5956_s17, 768, %s225_s20, %s213_s22  }
  0x89   : > { %p7069_p10 = scmp.ne.s32.totalorder %s7064_s16, 0 }
  0x8b   : > { %233 = sbr.rel (%p7069_p10) target bundleno = 1884 (0x75c), region = 36 }
  0x92   : > { %s5981_s10 = sand.u32 1, %s5724_s29   ;;  %p7070_p9 = scmp.ne.s32.totalorder %s7061_s13, 0 }
  0x93   : > { %s4361_s11 = sshll.u32 %s5981_s10, 11  ;;  %s236_s24 = scalar_lea.sflag [#allocation5], %s5981_s10 }
  0x94   : > { %s5985_s25 = scalar_lea.vmem [#allocation4], %s4361_s11 }
  0x95   : > { %5703 = dma.done.wait (%p7070_p9), %s236_s24, 32768  }
  0x96   : > { %5705 = vsyncadd (%p7070_p9), %s236_s24, 4294934528  ;;  %p7071_p8 = scmp.eq.s32.totalorder %s5808_s0, 0 }
  0x98   : > { %5707 = dma.done.wait (%p7071_p8), [#allocation8], 98400   ;;  %p7072_p4 = pmov %p7071_p8 }
  0x99   : > { %s5436_s16 = smul.u32 48, %s5981_s10  ;;  %s253_s27 = scalar_lea.sflag [#allocation11], %s5981_s10 }
  0x9a   : > { %5709 = vsyncadd (%p7072_p4), [#allocation8], 4294868896 }
  0x9b   : > { %s5997_s17 = scalar_lea.vmem [#allocation10], %s5436_s16 }
  0x9c   : > { %5711 = dma.done.wait (%p7070_p9), %s253_s27, 768  }
  0x9d   : > { %5713 = vsyncadd (%p7070_p9), %s253_s27, 4294966528  ;;  %v288_v0 = vld [vmem:[%s5985_s25 + $0x8] sm:$0xff]  ;;  %v290_v1 = vld [vmem:[%s5985_s25 + $0x18] sm:$0xff]  ;;  %s286_s13 = sld [smem:[#allocation3 + %s5808_s0]]  ;;  %vm4181_vm1 = vcmask 1040384   ;;  %s4364_s20 = sshll.u32 %s5981_s10, 1 }
  0x9e   : > { %v352_v2 = vld [vmem:[%s5985_s25 + $0x208] sm:$0xff]  ;;  %v4372_v3 = vpack.c.bf16 %v290_v1, %v288_v0  ;;  %v354_v4 = vld [vmem:[%s5985_s25 + $0x218] sm:$0xff]  ;;  %v287_v5 = vld [vmem:[%s5985_s25] sm:$0xff]  ;;  %s4371_s22 = sshll.u32 %s5808_s0, 5  ;;  %s285_s26 = scalar_lea.vmem [#allocation12], %s4364_s20 }
  0x9f   : > { %v289_v6 = vld [vmem:[%s5985_s25 + $0x10] sm:$0xff]  ;;  %v6009_v7 = vpack.c.bf16 %v354_v4, %v352_v2  ;;  %v351_v9 = vld [vmem:[%s5985_s25 + $0x200] sm:$0xff]  ;;  %v292_v11 = vld [vmem:[%s5985_s25 + $0x28] sm:$0xff]  ;;  %s4239_s21 = sshll.u32 %s285_s26, 4  ;;  %s7004_s23 = scalar_lea.hbm %s7053_s5, %s4371_s22  ;;  %s7006_s21 = int_to_ptr.vmem [resolvable:$true] %s4239_s21 }
  0xa0   : > { %v4374_v8 = vpack.c.bf16 %v289_v6, %v287_v5  ;;  %v353_v10 = vld [vmem:[%s5985_s25 + $0x210] sm:$0xff]  ;;  %4373 = vmatprep.subr.bf16.mxu1 %v4372_v3  ;;  %v294_v13 = vld [vmem:[%s5985_s25 + $0x38] sm:$0xff]  ;;  %v356_v14 = vld [vmem:[%s5985_s25 + $0x228] sm:$0xff]  ;;  %s4225_s9 = scalar_lea.sflag [#allocation6], %s5981_s10  ;;  %s5656_s18 = scalar_lea.vmem %s7006_s21, 32 }
  0xa1   : > { %v6014_v12 = vpack.c.bf16 %v353_v10, %v351_v9  ;;  %v358_v15 = vld [vmem:[%s5985_s25 + $0x238] sm:$0xff]  ;;  %4437 = vmatprep.subr.bf16.mxu0 %v6009_v7  ;;  %v4376_v16 = vpack.c.bf16 %v294_v13, %v292_v11  ;;  %v291_v18 = vld [vmem:[%s5985_s25 + $0x20] sm:$0xff]  ;;  %v293_v19 = vld [vmem:[%s5985_s25 + $0x30] sm:$0xff]  ;;  %p5657_p11 = scmp.ne.s32.totalorder %s7006_s21, %s5656_s18  ;;  %p7206_p7 = scmp.ne.s32.totalorder %s7062_s14, 0 }
  0xa2   : > { %4375 = vmatpush1.bf16.msra.mxu1 %v4374_v8  ;;  %v6020_v17 = vpack.c.bf16 %v358_v15, %v356_v14  ;;  %v355_v20 = vld [vmem:[%s5985_s25 + $0x220] sm:$0xff]  ;;  %v4378_v21 = vpack.c.bf16 %v293_v19, %v291_v18  ;;  %v357_v22 = vld [vmem:[%s5985_s25 + $0x230] sm:$0xff]  ;;  %v296_v23 = vld [vmem:[%s5985_s25 + $0x48] sm:$0xff]  ;;  %s5744_s0 = smov [#allocation12]  }
  0xa3   : > { %4439 = vmatpush1.bf16.msra.mxu0 %v6014_v12  ;;  %v298_v24 = vld [vmem:[%s5985_s25 + $0x58] sm:$0xff]  ;;  %4377 = vmatprep.subr.bf16.mxu1 %v4376_v16  ;;  %v6030_v25 = vpack.c.bf16 %v357_v22, %v355_v20  ;;  %v360_v27 = vld [vmem:[%s5985_s25 + $0x248] sm:$0xff]  ;;  %v295_v29 = vld [vmem:[%s5985_s25 + $0x40] sm:$0xff]  ;;  %p5658_p5 = pnand %p5657_p11, %p7206_p7  ;;  %s5660_s12 = sshll.u32 %s5744_s0, 4  ;;  %s5661_s12 = int_to_ptr.vmem [resolvable:$false] %s5660_s12 }
  0xa4   : > { %4441 = vmatprep.subr.bf16.mxu0 %v6020_v17  ;;  %v4380_v26 = vpack.c.bf16 %v298_v24, %v296_v23  ;;  %v362_v28 = vld [vmem:[%s5985_s25 + $0x258] sm:$0xff]  ;;  %v297_v31 = vld [vmem:[%s5985_s25 + $0x50] sm:$0xff]  ;;  %v359_v32 = vld [vmem:[%s5985_s25 + $0x240] sm:$0xff]  ;;  %s5662_s11 = scalar_lea.vmem %s5661_s12, 64  ;;  %p5663_p2 = scmp.lt.s32.totalorder %s7006_s21, %s5661_s12 }
  0xa5   : > { %v6035_v30 = vpack.c.bf16 %v362_v28, %v360_v27  ;;  %v361_v33 = vld [vmem:[%s5985_s25 + $0x250] sm:$0xff]  ;;  %v4382_v34 = vpack.c.bf16 %v297_v31, %v295_v29  ;;  %v300_v35 = vld [vmem:[%s5985_s25 + $0x68] sm:$0xff]  ;;  %v302_v36 = vld [vmem:[%s5985_s25 + $0x78] sm:$0xff]  ;;  %p5659_p0 = pneg %p5658_p5  ;;  %p5664_p3 = scmp.lt.s32.totalorder %s5662_s11, %s5656_s18 }
  0xa6   : > { %4379 = vmatpush1.bf16.msra.mxu1 %v4378_v21  ;;  %v364_v37 = vld [vmem:[%s5985_s25 + $0x268] sm:$0xff]  ;;  %v6044_v38 = vpack.c.bf16 %v361_v33, %v359_v32  ;;  %v4384_v39 = vpack.c.bf16 %v302_v36, %v300_v35  ;;  %v366_v40 = vld [vmem:[%s5985_s25 + $0x278] sm:$0xff]  ;;  %v299_v41 = vld [vmem:[%s5985_s25 + $0x60] sm:$0xff] }
  0xa7   : > { %4443 = vmatpush1.bf16.msra.mxu0 %v6030_v25  ;;  %4381 = vmatprep.subr.bf16.mxu1 %v4380_v26  ;;  %v301_v42 = vld [vmem:[%s5985_s25 + $0x70] sm:$0xff]  ;;  %v6050_v43 = vpack.c.bf16 %v366_v40, %v364_v37  ;;  %v363_v44 = vld [vmem:[%s5985_s25 + $0x260] sm:$0xff]  ;;  %v304_v46 = vld [vmem:[%s5985_s25 + $0x88] sm:$0xff]  ;;  %p5665_p1 = por %p5664_p3, %p5663_p2 }
  0xa8   : > { %4445 = vmatprep.subr.bf16.mxu0 %v6035_v30  ;;  %v365_v45 = vld [vmem:[%s5985_s25 + $0x270] sm:$0xff]  ;;  %v306_v47 = vld [vmem:[%s5985_s25 + $0x98] sm:$0xff]  ;;  %v368_v48 = vld [vmem:[%s5985_s25 + $0x288] sm:$0xff]  ;;  %v4386_v50 = vpack.c.bf16 %v301_v42, %v299_v41 }
  0xa9   : > { %v370_v49 = vld [vmem:[%s5985_s25 + $0x298] sm:$0xff]  ;;  %v6059_v51 = vpack.c.bf16 %v365_v45, %v363_v44  ;;  %v4388_v52 = vpack.c.bf16 %v306_v47, %v304_v46  ;;  %v303_v53 = vld [vmem:[%s5985_s25 + $0x80] sm:$0xff]  ;;  %v305_v54 = vld [vmem:[%s5985_s25 + $0x90] sm:$0xff]  ;;  %p5666_p6 = pnand %p5665_p1, %p5659_p0 }
  0xaa   : > { %4383 = vmatpush1.bf16.msra.mxu1 %v4382_v34  ;;  %v367_v55 = vld [vmem:[%s5985_s25 + $0x280] sm:$0xff]  ;;  %v6065_v56 = vpack.c.bf16 %v370_v49, %v368_v48  ;;  %v369_v57 = vld [vmem:[%s5985_s25 + $0x290] sm:$0xff]  ;;  %v308_v58 = vld [vmem:[%s5985_s25 + $0xa8] sm:$0xff]  ;;  %v4390_v62 = vpack.c.bf16 %v305_v54, %v303_v53 }
  0xab   : > { %4447 = vmatpush1.bf16.msra.mxu0 %v6044_v38  ;;  %4385 = vmatprep.subr.bf16.mxu1 %v4384_v39  ;;  %v310_v59 = vld [vmem:[%s5985_s25 + $0xb8] sm:$0xff]  ;;  %v372_v60 = vld [vmem:[%s5985_s25 + $0x2a8] sm:$0xff]  ;;  %v6073_v63 = vpack.c.bf16 %v369_v57, %v367_v55  ;;  %v307_v1 = vld [vmem:[%s5985_s25 + $0xa0] sm:$0xff] }
  0xac   : > { %4449 = vmatprep.subr.bf16.mxu0 %v6050_v43  ;;  %v374_v61 = vld [vmem:[%s5985_s25 + $0x2b8] sm:$0xff]  ;;  %v4392_v0 = vpack.c.bf16 %v310_v59, %v308_v58  ;;  %v309_v2 = vld [vmem:[%s5985_s25 + $0xb0] sm:$0xff]  ;;  %v371_v3 = vld [vmem:[%s5985_s25 + $0x2a0] sm:$0xff] }
  0xad   : > { %v6079_v4 = vpack.c.bf16 %v374_v61, %v372_v60  ;;  %v373_v5 = vld [vmem:[%s5985_s25 + $0x2b0] sm:$0xff]  ;;  %v312_v6 = vld [vmem:[%s5985_s25 + $0xc8] sm:$0xff]  ;;  %v314_v8 = vld [vmem:[%s5985_s25 + $0xd8] sm:$0xff]  ;;  %v4394_v11 = vpack.c.bf16 %v309_v2, %v307_v1 }
  0xae   : > { %4387 = vmatpush1.bf16.msra.mxu1 %v4386_v50  ;;  %v376_v9 = vld [vmem:[%s5985_s25 + $0x2c8] sm:$0xff]  ;;  %v378_v10 = vld [vmem:[%s5985_s25 + $0x2d8] sm:$0xff]  ;;  %v6087_v13 = vpack.c.bf16 %v373_v5, %v371_v3  ;;  %v4396_v14 = vpack.c.bf16 %v314_v8, %v312_v6  ;;  %v311_v15 = vld [vmem:[%s5985_s25 + $0xc0] sm:$0xff] }
  0xaf   : > { %4451 = vmatpush1.bf16.msra.mxu0 %v6059_v51  ;;  %4389 = vmatprep.subr.bf16.mxu1 %v4388_v52  ;;  %v313_v16 = vld [vmem:[%s5985_s25 + $0xd0] sm:$0xff]  ;;  %v375_v18 = vld [vmem:[%s5985_s25 + $0x2c0] sm:$0xff]  ;;  %v6093_v19 = vpack.c.bf16 %v378_v10, %v376_v9  ;;  %v316_v21 = vld [vmem:[%s5985_s25 + $0xe8] sm:$0xff] }
  0xb0   : > { %4453 = vmatprep.subr.bf16.mxu0 %v6065_v56  ;;  %v377_v20 = vld [vmem:[%s5985_s25 + $0x2d0] sm:$0xff]  ;;  %v318_v22 = vld [vmem:[%s5985_s25 + $0xf8] sm:$0xff]  ;;  %v380_v23 = vld [vmem:[%s5985_s25 + $0x2e8] sm:$0xff]  ;;  %v4398_v26 = vpack.c.bf16 %v313_v16, %v311_v15 }
  0xb1   : > { %v382_v24 = vld [vmem:[%s5985_s25 + $0x2f8] sm:$0xff]  ;;  %v6101_v27 = vpack.c.bf16 %v377_v20, %v375_v18  ;;  %v4400_v28 = vpack.c.bf16 %v318_v22, %v316_v21  ;;  %v315_v29 = vld [vmem:[%s5985_s25 + $0xe0] sm:$0xff]  ;;  %v317_v31 = vld [vmem:[%s5985_s25 + $0xf0] sm:$0xff] }
  0xb2   : > { %4391 = vmatpush1.bf16.msra.mxu1 %v4390_v62  ;;  %v379_v32 = vld [vmem:[%s5985_s25 + $0x2e0] sm:$0xff]  ;;  %v6107_v33 = vpack.c.bf16 %v382_v24, %v380_v23  ;;  %v381_v34 = vld [vmem:[%s5985_s25 + $0x2f0] sm:$0xff]  ;;  %v320_v35 = vld [vmem:[%s5985_s25 + $0x108] sm:$0xff]  ;;  %v4402_v40 = vpack.c.bf16 %v317_v31, %v315_v29 }
  0xb3   : > { %4455 = vmatpush1.bf16.msra.mxu0 %v6073_v63  ;;  %4393 = vmatprep.subr.bf16.mxu1 %v4392_v0  ;;  %v322_v36 = vld [vmem:[%s5985_s25 + $0x118] sm:$0xff]  ;;  %v384_v37 = vld [vmem:[%s5985_s25 + $0x308] sm:$0xff]  ;;  %v6115_v41 = vpack.c.bf16 %v381_v34, %v379_v32  ;;  %v319_v44 = vld [vmem:[%s5985_s25 + $0x100] sm:$0xff] }
  0xb4   : > { %4457 = vmatprep.subr.bf16.mxu0 %v6079_v4  ;;  %v386_v39 = vld [vmem:[%s5985_s25 + $0x318] sm:$0xff]  ;;  %v4404_v42 = vpack.c.bf16 %v322_v36, %v320_v35  ;;  %v321_v45 = vld [vmem:[%s5985_s25 + $0x110] sm:$0xff]  ;;  %v383_v46 = vld [vmem:[%s5985_s25 + $0x300] sm:$0xff] }
  0xb5   : > { %v6121_v47 = vpack.c.bf16 %v386_v39, %v384_v37  ;;  %v385_v48 = vld [vmem:[%s5985_s25 + $0x310] sm:$0xff]  ;;  %v324_v49 = vld [vmem:[%s5985_s25 + $0x128] sm:$0xff]  ;;  %v326_v50 = vld [vmem:[%s5985_s25 + $0x138] sm:$0xff]  ;;  %v4406_v54 = vpack.c.bf16 %v321_v45, %v319_v44 }
  0xb6   : > { %4395 = vmatpush1.bf16.msra.mxu1 %v4394_v11  ;;  %v388_v52 = vld [vmem:[%s5985_s25 + $0x328] sm:$0xff]  ;;  %v390_v53 = vld [vmem:[%s5985_s25 + $0x338] sm:$0xff]  ;;  %v6129_v55 = vpack.c.bf16 %v385_v48, %v383_v46  ;;  %v4408_v57 = vpack.c.bf16 %v326_v50, %v324_v49  ;;  %v323_v58 = vld [vmem:[%s5985_s25 + $0x120] sm:$0xff] }
  0xb7   : > { %4459 = vmatpush1.bf16.msra.mxu0 %v6087_v13  ;;  %4397 = vmatprep.subr.bf16.mxu1 %v4396_v14  ;;  %v325_v59 = vld [vmem:[%s5985_s25 + $0x130] sm:$0xff]  ;;  %v387_v60 = vld [vmem:[%s5985_s25 + $0x320] sm:$0xff]  ;;  %v6135_v61 = vpack.c.bf16 %v390_v53, %v388_v52  ;;  %v328_v0 = vld [vmem:[%s5985_s25 + $0x148] sm:$0xff] }
  0xb8   : > { %4461 = vmatprep.subr.bf16.mxu0 %v6093_v19  ;;  %v389_v62 = vld [vmem:[%s5985_s25 + $0x330] sm:$0xff]  ;;  %v330_v1 = vld [vmem:[%s5985_s25 + $0x158] sm:$0xff]  ;;  %v392_v2 = vld [vmem:[%s5985_s25 + $0x348] sm:$0xff]  ;;  %v4410_v5 = vpack.c.bf16 %v325_v59, %v323_v58 }
  0xb9   : > { %v394_v3 = vld [vmem:[%s5985_s25 + $0x358] sm:$0xff]  ;;  %v6143_v6 = vpack.c.bf16 %v389_v62, %v387_v60  ;;  %v4412_v8 = vpack.c.bf16 %v330_v1, %v328_v0  ;;  %v327_v9 = vld [vmem:[%s5985_s25 + $0x140] sm:$0xff]  ;;  %v329_v10 = vld [vmem:[%s5985_s25 + $0x150] sm:$0xff] }
  0xba   : > { %4399 = vmatpush1.bf16.msra.mxu1 %v4398_v26  ;;  %v391_v11 = vld [vmem:[%s5985_s25 + $0x340] sm:$0xff]  ;;  %v6149_v14 = vpack.c.bf16 %v394_v3, %v392_v2  ;;  %v393_v15 = vld [vmem:[%s5985_s25 + $0x350] sm:$0xff]  ;;  %v332_v16 = vld [vmem:[%s5985_s25 + $0x168] sm:$0xff]  ;;  %v4414_v22 = vpack.c.bf16 %v329_v10, %v327_v9 }
  0xbb   : > { %4463 = vmatpush1.bf16.msra.mxu0 %v6101_v27  ;;  %4401 = vmatprep.subr.bf16.mxu1 %v4400_v28  ;;  %v334_v18 = vld [vmem:[%s5985_s25 + $0x178] sm:$0xff]  ;;  %v396_v20 = vld [vmem:[%s5985_s25 + $0x368] sm:$0xff]  ;;  %v331_v23 = vld [vmem:[%s5985_s25 + $0x160] sm:$0xff]  ;;  %v6158_v24 = vpack.c.bf16 %v393_v15, %v391_v11 }
  0xbc   : > { %4465 = vmatprep.subr.bf16.mxu0 %v6107_v33  ;;  %v398_v21 = vld [vmem:[%s5985_s25 + $0x378] sm:$0xff]  ;;  %v4416_v26 = vpack.c.bf16 %v334_v18, %v332_v16  ;;  %v333_v28 = vld [vmem:[%s5985_s25 + $0x170] sm:$0xff]  ;;  %v395_v29 = vld [vmem:[%s5985_s25 + $0x360] sm:$0xff] }
  0xbd   : > { %v397_v31 = vld [vmem:[%s5985_s25 + $0x370] sm:$0xff]  ;;  %v6164_v32 = vpack.c.bf16 %v398_v21, %v396_v20  ;;  %v336_v34 = vld [vmem:[%s5985_s25 + $0x188] sm:$0xff]  ;;  %v338_v35 = vld [vmem:[%s5985_s25 + $0x198] sm:$0xff] }
  0xbe   : > { %4403 = vmatpush1.bf16.msra.mxu1 %v4402_v40  ;;  %v544_v36 = vld [vmem:[#allocation7 + $0x8] sm:$0xff]  ;;  %v402_v39 = vld [vmem:[%s5985_s25 + $0x398] sm:$0xff]  ;;  %v6171_v44 = vpack.c.bf16 %v397_v31, %v395_v29  ;;  %v4420_v45 = vpack.c.bf16 %v338_v35, %v336_v34  ;;  %v335_v46 = vld [vmem:[%s5985_s25 + $0x180] sm:$0xff] }
  0xbf   : > { %4467 = vmatpush1.bf16.msra.mxu0 %v6115_v41  ;;  %4405 = vmatprep.subr.bf16.mxu1 %v4404_v42  ;;  %v400_v37 = vld [vmem:[%s5985_s25 + $0x388] sm:$0xff]  ;;  %v546_v40 = vld [vmem:[#allocation7 + $0x18] sm:$0xff]  ;;  %v4418_v42 = vpack.c.bf16 %v333_v28, %v331_v23  ;;  %v337_v48 = vld [vmem:[%s5985_s25 + $0x190] sm:$0xff] }
  0xc0   : > { %4469 = vmatprep.subr.bf16.mxu0 %v6121_v47  ;;  %1381 = vmatprep.mubr.f32.mxu1 %v544_v36  ;;  %v399_v49 = vld [vmem:[%s5985_s25 + $0x380] sm:$0xff]  ;;  %v6177_v50 = vpack.c.bf16 %v402_v39, %v400_v37  ;;  %v401_v52 = vld [vmem:[%s5985_s25 + $0x390] sm:$0xff]  ;;  %v340_v53 = vld [vmem:[%s5985_s25 + $0x1a8] sm:$0xff]  ;;  %v4422_v59 = vpack.c.bf16 %v337_v48, %v335_v46 }
  0xc1   : > { %2022 = vmatprep.mubr.f32.mxu0 %v546_v40  ;;  %v406_v58 = vld [vmem:[%s5985_s25 + $0x3b8] sm:$0xff]  ;;  %v6185_v60 = vpack.c.bf16 %v401_v52, %v399_v49  ;;  %v339_v0 = vld [vmem:[%s5985_s25 + $0x1a0] sm:$0xff]  ;;  %v341_v1 = vld [vmem:[%s5985_s25 + $0x1b0] sm:$0xff] }
  0xc2   : > { %4407 = vmatpush1.bf16.msra.mxu1 %v4406_v54  ;;  %v342_v54 = vld [vmem:[%s5985_s25 + $0x1b8] sm:$0xff]  ;;  %v403_v2 = vld [vmem:[%s5985_s25 + $0x3a0] sm:$0xff]  ;;  %v408_v10 = vld [vmem:[%s5985_s25 + $0x3c8] sm:$0xff]  ;;  %v4426_v15 = vpack.c.bf16 %v341_v1, %v339_v0 }
  0xc3   : > { %4471 = vmatpush1.bf16.msra.mxu0 %v6129_v55  ;;  %4409 = vmatprep.subr.bf16.mxu1 %v4408_v57  ;;  %v404_v57 = vld [vmem:[%s5985_s25 + $0x3a8] sm:$0xff]  ;;  %v4424_v62 = vpack.c.bf16 %v342_v54, %v340_v53  ;;  %v346_v9 = vld [vmem:[%s5985_s25 + $0x1d8] sm:$0xff]  ;;  %v343_v20 = vld [vmem:[%s5985_s25 + $0x1c0] sm:$0xff] }
  0xc4   : > { %4473 = vmatprep.subr.bf16.mxu0 %v6135_v61  ;;  %v6191_v3 = vpack.c.bf16 %v406_v58, %v404_v57  ;;  %v410_v11 = vld [vmem:[%s5985_s25 + $0x3d8] sm:$0xff]  ;;  %v345_v21 = vld [vmem:[%s5985_s25 + $0x1d0] sm:$0xff]  ;;  %v348_v28 = vld [vmem:[%s5985_s25 + $0x1e8] sm:$0xff] }
  0xc5   : > { %v6205_v23 = vpack.c.bf16 %v410_v11, %v408_v10  ;;  %v350_v29 = vld [vmem:[%s5985_s25 + $0x1f8] sm:$0xff]  ;;  %v412_v31 = vld [vmem:[%s5985_s25 + $0x3e8] sm:$0xff]  ;;  %v4430_v35 = vpack.c.bf16 %v345_v21, %v343_v20  ;;  %v347_v39 = vld [vmem:[%s5985_s25 + $0x1e0] sm:$0xff] }
  0xc6   : > { %4411 = vmatpush1.bf16.msra.mxu1 %v4410_v5  ;;  %v405_v5 = vld [vmem:[%s5985_s25 + $0x3b0] sm:$0xff]  ;;  %v414_v34 = vld [vmem:[%s5985_s25 + $0x3f8] sm:$0xff]  ;;  %v4432_v37 = vpack.c.bf16 %v350_v29, %v348_v28  ;;  %v416_v48 = vld [vmem:[%s5985_s25 + $0x408] sm:$0xff] }
  0xc7   : > { %4475 = vmatpush1.bf16.msra.mxu0 %v6143_v6  ;;  %4413 = vmatprep.subr.bf16.mxu1 %v4412_v8  ;;  %v344_v8 = vld [vmem:[%s5985_s25 + $0x1c8] sm:$0xff]  ;;  %v6199_v16 = vpack.c.bf16 %v405_v5, %v403_v2  ;;  %v349_v40 = vld [vmem:[%s5985_s25 + $0x1f0] sm:$0xff]  ;;  %v418_v49 = vld [vmem:[%s5985_s25 + $0x418] sm:$0xff] }
  0xc8   : > { %4477 = vmatprep.subr.bf16.mxu0 %v6149_v14  ;;  %v4428_v18 = vpack.c.bf16 %v346_v9, %v344_v8  ;;  %v413_v46 = vld [vmem:[%s5985_s25 + $0x3f0] sm:$0xff]  ;;  %v4434_v52 = vpack.c.bf16 %v349_v40, %v347_v39  ;;  %v4500_v54 = vpack.c.bf16 %v418_v49, %v416_v48  ;;  %v415_v57 = vld [vmem:[%s5985_s25 + $0x400] sm:$0xff]  ;;  %v552_v5 = vld [vmem:[#allocation7 + $0x48] sm:$0xff] }
  0xc9   : > { %v417_v58 = vld [vmem:[%s5985_s25 + $0x410] sm:$0xff]  ;;  %v543_v0 = vld [vmem:[#allocation7] sm:$0xff]  ;;  %v554_v8 = vld [vmem:[#allocation7 + $0x58] sm:$0xff] }
  0xca   : > { %4415 = vmatpush1.bf16.msra.mxu1 %v4414_v22  ;;  %v407_v22 = vld [vmem:[%s5985_s25 + $0x3c0] sm:$0xff]  ;;  %v545_v1 = vld [vmem:[#allocation7 + $0x10] sm:$0xff]  ;;  %v4502_v2 = vpack.c.bf16 %v417_v58, %v415_v57 }
  0xcb   : > { %4479 = vmatpush1.bf16.msra.mxu0 %v6158_v24  ;;  %4417 = vmatprep.subr.bf16.mxu1 %v4416_v26  ;;  %v409_v26 = vld [vmem:[%s5985_s25 + $0x3d0] sm:$0xff]  ;;  %v419_v10 = vld [vmem:[%s5985_s25 + $0x420] sm:$0xff] }
  0xcc   : > { %4481 = vmatprep.subr.bf16.mxu0 %v6164_v32  ;;  %v6213_v36 = vpack.c.bf16 %v409_v26, %v407_v22  ;;  %v421_v11 = vld [vmem:[%s5985_s25 + $0x430] sm:$0xff]  ;;  %v551_v20 = vld [vmem:[#allocation7 + $0x40] sm:$0xff]  ;;  %v562_v26 = vld [vmem:[#allocation7 + $0x98] sm:$0xff] }
  0xcd   : > { %v553_v21 = vld [vmem:[#allocation7 + $0x50] sm:$0xff]  ;;  %v4506_v22 = vpack.c.bf16 %v421_v11, %v419_v10  ;;  %v423_v29 = vld [vmem:[%s5985_s25 + $0x440] sm:$0xff]  ;;  %v584_v10 = vld [vmem:[#allocation7 + $0x148] sm:$0xff] }
  0xce   : > { %4419 = vmatpush1.bf16.msra.mxu1 %v4418_v42  ;;  %v6218_v42 = vpack.c.bf16 %v414_v34, %v412_v31  ;;  %v425_v31 = vld [vmem:[%s5985_s25 + $0x450] sm:$0xff]  ;;  %v428_v34 = vld [vmem:[%s5985_s25 + $0x468] sm:$0xff]  ;;  %v427_v48 = vld [vmem:[%s5985_s25 + $0x460] sm:$0xff] }
  0xcf   : > { %4483 = vmatpush1.bf16.msra.mxu0 %v6171_v44  ;;  %4421 = vmatprep.subr.bf16.mxu1 %v4420_v45  ;;  %v411_v45 = vld [vmem:[%s5985_s25 + $0x3e0] sm:$0xff]  ;;  %v561_v39 = vld [vmem:[#allocation7 + $0x90] sm:$0xff]  ;;  %v4510_v40 = vpack.c.bf16 %v425_v31, %v423_v29  ;;  %v586_v11 = vld [vmem:[#allocation7 + $0x158] sm:$0xff] }
  0xd0   : > { %4485 = vmatprep.subr.bf16.mxu0 %v6177_v50  ;;  %v6225_v53 = vpack.c.bf16 %v413_v46, %v411_v45  ;;  %v568_v45 = vld [vmem:[#allocation7 + $0xc8] sm:$0xff]  ;;  %v570_v46 = vld [vmem:[#allocation7 + $0xd8] sm:$0xff]  ;;  %v429_v49 = vld [vmem:[%s5985_s25 + $0x470] sm:$0xff] }
  0xd1   : > { %v569_v57 = vld [vmem:[#allocation7 + $0xd0] sm:$0xff]  ;;  %v4514_v58 = vpack.c.bf16 %v429_v49, %v427_v48  ;;  %v439_v29 = vld [vmem:[%s5985_s25 + $0x4c0] sm:$0xff]  ;;  %v450_v48 = vld [vmem:[%s5985_s25 + $0x518] sm:$0xff] }
  0xd2   : > { %4423 = vmatpush1.bf16.msra.mxu1 %v4422_v59  ;;  %v420_v59 = vld [vmem:[%s5985_s25 + $0x428] sm:$0xff]  ;;  %v441_v31 = vld [vmem:[%s5985_s25 + $0x4d0] sm:$0xff]  ;;  %v599_v49 = vld [vmem:[#allocation7 + $0x1c0] sm:$0xff] }
  0xd3   : > { %4487 = vmatpush1.bf16.msra.mxu0 %v6185_v60  ;;  %4425 = vmatprep.subr.bf16.mxu1 %v4424_v62  ;;  %v422_v62 = vld [vmem:[%s5985_s25 + $0x438] sm:$0xff] }
  0xd4   : > { %4489 = vmatprep.subr.bf16.mxu0 %v6191_v3  ;;  %v4504_v9 = vpack.c.bf16 %v422_v62, %v420_v59  ;;  %v576_v59 = vld [vmem:[#allocation7 + $0x108] sm:$0xff]  ;;  %v578_v62 = vld [vmem:[#allocation7 + $0x118] sm:$0xff] }
  0xd6   : > { %4427 = vmatpush1.bf16.msra.mxu1 %v4426_v15  ;;  %v424_v15 = vld [vmem:[%s5985_s25 + $0x448] sm:$0xff] }
  0xd7   : > { %4491 = vmatpush1.bf16.msra.mxu0 %v6199_v16  ;;  %4429 = vmatprep.subr.bf16.mxu1 %v4428_v18  ;;  %v426_v18 = vld [vmem:[%s5985_s25 + $0x458] sm:$0xff] }
  0xd8   : > { %4493 = vmatprep.subr.bf16.mxu0 %v6205_v23  ;;  %v4508_v28 = vpack.c.bf16 %v426_v18, %v424_v15  ;;  %v435_v15 = vld [vmem:[%s5985_s25 + $0x4a0] sm:$0xff]  ;;  %v437_v18 = vld [vmem:[%s5985_s25 + $0x4b0] sm:$0xff] }
  0xda   : > { %4431 = vmatpush1.bf16.msra.mxu1 %v4430_v35  ;;  %v430_v35 = vld [vmem:[%s5985_s25 + $0x478] sm:$0xff] }
  0xdb   : > { %4495 = vmatpush1.bf16.msra.mxu0 %v6213_v36  ;;  %4433 = vmatprep.subr.bf16.mxu1 %v4432_v37  ;;  %v559_v37 = vld [vmem:[#allocation7 + $0x80] sm:$0xff] }
  0xdc   : > { %4497 = vmatprep.subr.bf16.mxu0 %v6218_v42 }
  0xde   : > { %4435 = vmatpush1.bf16.msra.mxu1 %v4434_v52  ;;  %v434_v52 = vld [vmem:[%s5985_s25 + $0x498] sm:$0xff] }
  0xdf   : > { %4499 = vmatpush1.bf16.msra.mxu0 %v6225_v53  ;;  %4820 = vmatprep.subr.bf16.mxu1 %v6009_v7  ;;  %v560_v7 = vld [vmem:[#allocation7 + $0x88] sm:$0xff] }
  0xe0   : > { %4501 = vmatprep.subr.bf16.mxu0 %v4500_v54  ;;  %v567_v54 = vld [vmem:[#allocation7 + $0xc0] sm:$0xff] }
  0xe1   : > { %1382 = vmatmul.mubr.f32.vlgmr.msra.gmra.mrb[0].mxu1 %v543_v0  ;;  %v431_v0 = vld [vmem:[%s5985_s25 + $0x480] sm:$0xff] }
  0xe2   : > { %2023 = vmatmul.mubr.f32.vlgmr.msra.gmra.mrb[0].mxu0 %v545_v1  ;;  %1387 = vmatprep.mubr.f32.mxu1 %v552_v5  ;;  %v433_v1 = vld [vmem:[%s5985_s25 + $0x490] sm:$0xff]  ;;  %v575_v5 = vld [vmem:[#allocation7 + $0x100] sm:$0xff] }
  0xe3   : > { %4503 = vmatpush1.bf16.msra.mxu0 %v4502_v2  ;;  %2028 = vmatprep.mubr.f32.mxu0 %v554_v8  ;;  %v438_v2 = vld [vmem:[%s5985_s25 + $0x4b8] sm:$0xff]  ;;  %v577_v8 = vld [vmem:[#allocation7 + $0x110] sm:$0xff] }
  0xe4   : > { %4505 = vmatprep.subr.bf16.mxu0 %v4504_v9  ;;  %4836 = vmatpush1.bf16.msra.mxu1 %v6014_v12  ;;  %v4512_v12 = vpack.c.bf16 %v430_v35, %v428_v34  ;;  %v4518_v9 = vpack.c.bf16 %v433_v1, %v431_v0  ;;  %v446_v34 = vld [vmem:[%s5985_s25 + $0x4f8] sm:$0xff]  ;;  %v591_v35 = vld [vmem:[#allocation7 + $0x180] sm:$0xff]  ;;  %v609_v0 = vld [vmem:[#allocation7 + $0x210] sm:$0xff] }
  0xe5   : > { %1388 = vmatmul.mubr.f32.gmra.mrb[2].mxu1 %v551_v20  ;;  %4821 = vmatprep.subr.bf16.mxu1 %v6020_v17  ;;  %v432_v17 = vld [vmem:[%s5985_s25 + $0x488] sm:$0xff]  ;;  %v442_v20 = vld [vmem:[%s5985_s25 + $0x4d8] sm:$0xff] }
  0xe6   : > { %2029 = vmatmul.mubr.f32.gmra.mrb[2].mxu0 %v553_v21  ;;  %1393 = vmatprep.mubr.f32.mxu1 %v560_v7  ;;  %v583_v21 = vld [vmem:[#allocation7 + $0x140] sm:$0xff]  ;;  %v4522_v7 = vpack.c.bf16 %v437_v18, %v435_v15  ;;  %v624_v15 = vld [vmem:[#allocation7 + $0x288] sm:$0xff]  ;;  %v626_v18 = vld [vmem:[#allocation7 + $0x298] sm:$0xff] }
  0xe7   : > { %4507 = vmatpush1.bf16.msra.mxu0 %v4506_v22  ;;  %2034 = vmatprep.mubr.f32.mxu0 %v562_v26  ;;  %v585_v22 = vld [vmem:[#allocation7 + $0x150] sm:$0xff]  ;;  %v592_v26 = vld [vmem:[#allocation7 + $0x188] sm:$0xff] }
  0xe8   : > { %4509 = vmatprep.subr.bf16.mxu0 %v4508_v28  ;;  %4837 = vmatpush1.bf16.msra.mxu1 %v6030_v25  ;;  %v4516_v25 = vpack.c.bf16 %v434_v52, %v432_v17  ;;  %v594_v28 = vld [vmem:[#allocation7 + $0x198] sm:$0xff]  ;;  %v601_v17 = vld [vmem:[#allocation7 + $0x1d0] sm:$0xff] }
  0xe9   : > { %1394 = vmatmul.mubr.f32.gmra.mrb[4].mxu1 %v559_v37  ;;  %4822 = vmatprep.subr.bf16.mxu1 %v6035_v30  ;;  %v436_v30 = vld [vmem:[%s5985_s25 + $0x4a8] sm:$0xff]  ;;  %v593_v37 = vld [vmem:[#allocation7 + $0x190] sm:$0xff] }
  0xea   : > { %2035 = vmatmul.mubr.f32.gmra.mrb[4].mxu0 %v561_v39  ;;  %1399 = vmatprep.mubr.f32.mxu1 %v568_v45  ;;  %v4526_v39 = vpack.c.bf16 %v441_v31, %v439_v29  ;;  %v602_v45 = vld [vmem:[#allocation7 + $0x1d8] sm:$0xff]  ;;  %v459_v29 = vld [vmem:[%s5985_s25 + $0x560] sm:$0xff]  ;;  %v461_v31 = vld [vmem:[%s5985_s25 + $0x570] sm:$0xff] }
  0xeb   : > { %4511 = vmatpush1.bf16.msra.mxu0 %v4510_v40  ;;  %2040 = vmatprep.mubr.f32.mxu0 %v570_v46  ;;  %v600_v40 = vld [vmem:[#allocation7 + $0x1c8] sm:$0xff]  ;;  %v443_v46 = vld [vmem:[%s5985_s25 + $0x4e0] sm:$0xff] }
  0xec   : > { %4513 = vmatprep.subr.bf16.mxu0 %v4512_v12  ;;  %4838 = vmatpush1.bf16.msra.mxu1 %v6044_v38  ;;  %v4520_v38 = vpack.c.bf16 %v438_v2, %v436_v30  ;;  %v445_v12 = vld [vmem:[%s5985_s25 + $0x4f0] sm:$0xff]  ;;  %v616_v30 = vld [vmem:[#allocation7 + $0x248] sm:$0xff]  ;;  %v618_v2 = vld [vmem:[#allocation7 + $0x258] sm:$0xff] }
  0xed   : > { %1400 = vmatmul.mubr.f32.gmra.mrb[6].mxu1 %v567_v54  ;;  %4823 = vmatprep.subr.bf16.mxu1 %v6050_v43  ;;  %v440_v43 = vld [vmem:[%s5985_s25 + $0x4c8] sm:$0xff]  ;;  %v4530_v52 = vpack.c.bf16 %v445_v12, %v443_v46  ;;  %v470_v46 = vld [vmem:[%s5985_s25 + $0x5b8] sm:$0xff]  ;;  %v639_v12 = vld [vmem:[#allocation7 + $0x300] sm:$0xff] }
  0xee   : > { %2041 = vmatmul.mubr.f32.gmra.mrb[6].mxu0 %v569_v57  ;;  %1405 = vmatprep.mubr.f32.mxu1 %v576_v59  ;;  %v608_v54 = vld [vmem:[#allocation7 + $0x208] sm:$0xff]  ;;  %v610_v57 = vld [vmem:[#allocation7 + $0x218] sm:$0xff]  ;;  %v449_v59 = vld [vmem:[%s5985_s25 + $0x510] sm:$0xff] }
  0xef   : > { %4515 = vmatpush1.bf16.msra.mxu0 %v4514_v58  ;;  %2046 = vmatprep.mubr.f32.mxu0 %v578_v62  ;;  %v447_v58 = vld [vmem:[%s5985_s25 + $0x500] sm:$0xff]  ;;  %v454_v62 = vld [vmem:[%s5985_s25 + $0x538] sm:$0xff] }
  0xf0   : > { %4517 = vmatprep.subr.bf16.mxu0 %v4516_v25  ;;  %4839 = vmatpush1.bf16.msra.mxu1 %v6059_v51  ;;  %v4524_v51 = vpack.c.bf16 %v442_v20, %v440_v43  ;;  %v607_v25 = vld [vmem:[#allocation7 + $0x200] sm:$0xff]  ;;  %v4534_v1 = vpack.c.bf16 %v449_v59, %v447_v58  ;;  %v457_v20 = vld [vmem:[%s5985_s25 + $0x550] sm:$0xff] }
  0xf1   : > { %1406 = vmatmul.mubr.f32.gmra.mrb[8].mxu1 %v575_v5  ;;  %4824 = vmatprep.subr.bf16.mxu1 %v6065_v56  ;;  %v444_v56 = vld [vmem:[%s5985_s25 + $0x4e8] sm:$0xff]  ;;  %v451_v5 = vld [vmem:[%s5985_s25 + $0x520] sm:$0xff]  ;;  %v649_v58 = vld [vmem:[#allocation7 + $0x350] sm:$0xff] }
  0xf2   : > { %2047 = vmatmul.mubr.f32.gmra.mrb[8].mxu0 %v577_v8  ;;  %1411 = vmatprep.mubr.f32.mxu1 %v584_v10  ;;  %v453_v8 = vld [vmem:[%s5985_s25 + $0x530] sm:$0xff]  ;;  %v615_v10 = vld [vmem:[#allocation7 + $0x240] sm:$0xff] }
  0xf3   : > { %4519 = vmatpush1.bf16.msra.mxu0 %v4518_v9  ;;  %2052 = vmatprep.mubr.f32.mxu0 %v586_v11  ;;  %v458_v9 = vld [vmem:[%s5985_s25 + $0x558] sm:$0xff]  ;;  %v617_v11 = vld [vmem:[#allocation7 + $0x250] sm:$0xff]  ;;  %v455_v43 = vld [vmem:[%s5985_s25 + $0x540] sm:$0xff] }
  0xf4   : > { %4521 = vmatprep.subr.bf16.mxu0 %v4520_v38  ;;  %4840 = vmatpush1.bf16.msra.mxu1 %v6073_v63  ;;  %v4528_v63 = vpack.c.bf16 %v446_v34, %v444_v56  ;;  %v4538_v38 = vpack.c.bf16 %v453_v8, %v451_v5  ;;  %v466_v56 = vld [vmem:[%s5985_s25 + $0x598] sm:$0xff]  ;;  %v631_v34 = vld [vmem:[#allocation7 + $0x2c0] sm:$0xff]  ;;  %v664_v5 = vld [vmem:[#allocation7 + $0x3c8] sm:$0xff] }
  0xf5   : > { %1412 = vmatmul.mubr.f32.gmra.mrb[10].mxu1 %v583_v21  ;;  %4825 = vmatprep.subr.bf16.mxu1 %v6079_v4  ;;  %v448_v4 = vld [vmem:[%s5985_s25 + $0x508] sm:$0xff]  ;;  %v462_v21 = vld [vmem:[%s5985_s25 + $0x578] sm:$0xff] }
  0xf6   : > { %2053 = vmatmul.mubr.f32.gmra.mrb[10].mxu0 %v585_v22  ;;  %1417 = vmatprep.mubr.f32.mxu1 %v592_v26  ;;  %v623_v22 = vld [vmem:[#allocation7 + $0x280] sm:$0xff]  ;;  %v4542_v26 = vpack.c.bf16 %v457_v20, %v455_v43  ;;  %v666_v8 = vld [vmem:[#allocation7 + $0x3d8] sm:$0xff]  ;;  %v481_v20 = vld [vmem:[%s5985_s25 + $0x610] sm:$0xff] }
  0xf7   : > { %4523 = vmatpush1.bf16.msra.mxu0 %v4522_v7  ;;  %2058 = vmatprep.mubr.f32.mxu0 %v594_v28  ;;  %v625_v7 = vld [vmem:[#allocation7 + $0x290] sm:$0xff]  ;;  %v632_v28 = vld [vmem:[#allocation7 + $0x2c8] sm:$0xff]  ;;  %v479_v43 = vld [vmem:[%s5985_s25 + $0x600] sm:$0xff] }
  0xf8   : > { %4525 = vmatprep.subr.bf16.mxu0 %v4524_v51  ;;  %4841 = vmatpush1.bf16.msra.mxu1 %v6087_v13  ;;  %v4532_v13 = vpack.c.bf16 %v450_v48, %v448_v4  ;;  %v634_v51 = vld [vmem:[#allocation7 + $0x2d8] sm:$0xff]  ;;  %v641_v4 = vld [vmem:[#allocation7 + $0x310] sm:$0xff] }
  0xf9   : > { %1418 = vmatmul.mubr.f32.gmra.mrb[12].mxu1 %v591_v35  ;;  %4826 = vmatprep.subr.bf16.mxu1 %v6093_v19  ;;  %v452_v19 = vld [vmem:[%s5985_s25 + $0x528] sm:$0xff]  ;;  %v633_v35 = vld [vmem:[#allocation7 + $0x2d0] sm:$0xff] }
  0xfa   : > { %2059 = vmatmul.mubr.f32.gmra.mrb[12].mxu0 %v593_v37  ;;  %1423 = vmatprep.mubr.f32.mxu1 %v600_v40  ;;  %v4546_v37 = vpack.c.bf16 %v461_v31, %v459_v29  ;;  %v642_v40 = vld [vmem:[#allocation7 + $0x318] sm:$0xff]  ;;  %v679_v31 = vld [vmem:[#allocation7 + $0x440] sm:$0xff] }
  0xfb   : > { %4527 = vmatpush1.bf16.msra.mxu0 %v4526_v39  ;;  %2064 = vmatprep.mubr.f32.mxu0 %v602_v45  ;;  %v640_v39 = vld [vmem:[#allocation7 + $0x308] sm:$0xff]  ;;  %v463_v45 = vld [vmem:[%s5985_s25 + $0x580] sm:$0xff]  ;;  %v490_v29 = vld [vmem:[%s5985_s25 + $0x658] sm:$0xff] }
  0xfc   : > { %4529 = vmatprep.subr.bf16.mxu0 %v4528_v63  ;;  %4842 = vmatpush1.bf16.msra.mxu1 %v6101_v27  ;;  %v4536_v27 = vpack.c.bf16 %v454_v62, %v452_v19  ;;  %v465_v63 = vld [vmem:[%s5985_s25 + $0x590] sm:$0xff]  ;;  %v656_v19 = vld [vmem:[#allocation7 + $0x388] sm:$0xff]  ;;  %v658_v62 = vld [vmem:[#allocation7 + $0x398] sm:$0xff] }
  0xfd   : > { %1424 = vmatmul.mubr.f32.gmra.mrb[14].mxu1 %v599_v49  ;;  %4827 = vmatprep.subr.bf16.mxu1 %v6107_v33  ;;  %v456_v33 = vld [vmem:[%s5985_s25 + $0x548] sm:$0xff]  ;;  %v4550_v48 = vpack.c.bf16 %v465_v63, %v463_v45 }
  0xfe   : > { %2065 = vmatmul.mubr.f32.gmra.mrb[14].mxu0 %v601_v17  ;;  %1429 = vmatprep.mubr.f32.mxu1 %v608_v54  ;;  %v648_v49 = vld [vmem:[#allocation7 + $0x348] sm:$0xff]  ;;  %v650_v17 = vld [vmem:[#allocation7 + $0x358] sm:$0xff]  ;;  %v469_v54 = vld [vmem:[%s5985_s25 + $0x5b0] sm:$0xff] }
  0xff   : > { %4531 = vmatpush1.bf16.msra.mxu0 %v4530_v52  ;;  %2070 = vmatprep.mubr.f32.mxu0 %v610_v57  ;;  %v467_v52 = vld [vmem:[%s5985_s25 + $0x5a0] sm:$0xff]  ;;  %v474_v57 = vld [vmem:[%s5985_s25 + $0x5d8] sm:$0xff]  ;;  %v696_v45 = vld [vmem:[#allocation7 + $0x4c8] sm:$0xff] }
 0x100   : > { %4533 = vmatprep.subr.bf16.mxu0 %v4532_v13  ;;  %4843 = vmatpush1.bf16.msra.mxu1 %v6115_v41  ;;  %v4540_v41 = vpack.c.bf16 %v458_v9, %v456_v33  ;;  %v647_v13 = vld [vmem:[#allocation7 + $0x340] sm:$0xff]  ;;  %v4554_v59 = vpack.c.bf16 %v469_v54, %v467_v52  ;;  %v477_v9 = vld [vmem:[%s5985_s25 + $0x5f0] sm:$0xff] }
 0x101   : > { %1430 = vmatmul.mubr.f32.gmra.mrb[16].mxu1 %v607_v25  ;;  %4828 = vmatprep.subr.bf16.mxu1 %v6121_v47  ;;  %v460_v47 = vld [vmem:[%s5985_s25 + $0x568] sm:$0xff]  ;;  %v471_v25 = vld [vmem:[%s5985_s25 + $0x5c0] sm:$0xff] }
 0x102   : > { %2071 = vmatmul.mubr.f32.gmra.mrb[16].mxu0 %v609_v0  ;;  %1435 = vmatprep.mubr.f32.mxu1 %v616_v30  ;;  %v473_v0 = vld [vmem:[%s5985_s25 + $0x5d0] sm:$0xff]  ;;  %v655_v30 = vld [vmem:[#allocation7 + $0x380] sm:$0xff] }
 0x103   : > { %4535 = vmatpush1.bf16.msra.mxu0 %v4534_v1  ;;  %2076 = vmatprep.mubr.f32.mxu0 %v618_v2  ;;  %v478_v1 = vld [vmem:[%s5985_s25 + $0x5f8] sm:$0xff]  ;;  %v657_v2 = vld [vmem:[#allocation7 + $0x390] sm:$0xff]  ;;  %v475_v33 = vld [vmem:[%s5985_s25 + $0x5e0] sm:$0xff] }
 0x104   : > { %4537 = vmatprep.subr.bf16.mxu0 %v4536_v27  ;;  %4844 = vmatpush1.bf16.msra.mxu1 %v6129_v55  ;;  %v4544_v55 = vpack.c.bf16 %v462_v21, %v460_v47  ;;  %v4558_v27 = vpack.c.bf16 %v473_v0, %v471_v25  ;;  %v486_v47 = vld [vmem:[%s5985_s25 + $0x638] sm:$0xff]  ;;  %v671_v21 = vld [vmem:[#allocation7 + $0x400] sm:$0xff]  ;;  %v596_v25 = vld [vmem:[#allocation7 + $0x1a8] sm:$0xff] }
 0x105   : > { %1436 = vmatmul.mubr.f32.gmra.mrb[18].mxu1 %v615_v10  ;;  %4829 = vmatprep.subr.bf16.mxu1 %v6135_v61  ;;  %v464_v61 = vld [vmem:[%s5985_s25 + $0x588] sm:$0xff]  ;;  %v482_v10 = vld [vmem:[%s5985_s25 + $0x618] sm:$0xff]  ;;  %v703_v52 = vld [vmem:[#allocation7 + $0x500] sm:$0xff] }
 0x106   : > { %2077 = vmatmul.mubr.f32.gmra.mrb[18].mxu0 %v617_v11  ;;  %1441 = vmatprep.mubr.f32.mxu1 %v624_v15  ;;  %v663_v11 = vld [vmem:[#allocation7 + $0x3c0] sm:$0xff]  ;;  %v4562_v15 = vpack.c.bf16 %v477_v9, %v475_v33  ;;  %v744_v9 = vld [vmem:[#allocation7 + $0x648] sm:$0xff] }
 0x107   : > { %4539 = vmatpush1.bf16.msra.mxu0 %v4538_v38  ;;  %2082 = vmatprep.mubr.f32.mxu0 %v626_v18  ;;  %v665_v38 = vld [vmem:[#allocation7 + $0x3d0] sm:$0xff]  ;;  %v672_v18 = vld [vmem:[#allocation7 + $0x408] sm:$0xff]  ;;  %v491_v54 = vld [vmem:[%s5985_s25 + $0x660] sm:$0xff] }
 0x108   : > { %4541 = vmatprep.subr.bf16.mxu0 %v4540_v41  ;;  %4845 = vmatpush1.bf16.msra.mxu1 %v6143_v6  ;;  %v4548_v6 = vpack.c.bf16 %v466_v56, %v464_v61  ;;  %v548_v41 = vld [vmem:[#allocation7 + $0x28] sm:$0xff]  ;;  %v555_v61 = vld [vmem:[#allocation7 + $0x60] sm:$0xff] }
 0x109   : > { %1442 = vmatmul.mubr.f32.gmra.mrb[20].mxu1 %v623_v22  ;;  %4830 = vmatprep.subr.bf16.mxu1 %v6149_v14  ;;  %v468_v14 = vld [vmem:[%s5985_s25 + $0x5a8] sm:$0xff]  ;;  %v547_v22 = vld [vmem:[#allocation7 + $0x20] sm:$0xff] }
 0x10a   : > { %2083 = vmatmul.mubr.f32.gmra.mrb[20].mxu0 %v625_v7  ;;  %1447 = vmatprep.mubr.f32.mxu1 %v632_v28  ;;  %v680_v7 = vld [vmem:[#allocation7 + $0x448] sm:$0xff]  ;;  %v719_v0 = vld [vmem:[#allocation7 + $0x580] sm:$0xff] }
 0x10b   : > { %4543 = vmatpush1.bf16.msra.mxu0 %v4542_v26  ;;  %2088 = vmatprep.mubr.f32.mxu0 %v634_v51  ;;  %v4566_v26 = vpack.c.bf16 %v481_v20, %v479_v43  ;;  %v556_v28 = vld [vmem:[#allocation7 + $0x68] sm:$0xff]  ;;  %v483_v51 = vld [vmem:[%s5985_s25 + $0x620] sm:$0xff] }
 0x10c   : > { %4545 = vmatprep.subr.bf16.mxu0 %v4544_v55  ;;  %4846 = vmatpush1.bf16.msra.mxu1 %v6158_v24  ;;  %v4552_v24 = vpack.c.bf16 %v470_v46, %v468_v14  ;;  %v485_v55 = vld [vmem:[%s5985_s25 + $0x630] sm:$0xff]  ;;  %v688_v56 = vld [vmem:[#allocation7 + $0x488] sm:$0xff]  ;;  %v695_v46 = vld [vmem:[#allocation7 + $0x4c0] sm:$0xff] }
 0x10d   : > { %1448 = vmatmul.mubr.f32.gmra.mrb[22].mxu1 %v631_v34  ;;  %4831 = vmatprep.subr.bf16.mxu1 %v6164_v32  ;;  %v472_v32 = vld [vmem:[%s5985_s25 + $0x5c8] sm:$0xff]  ;;  %v4570_v34 = vpack.c.bf16 %v485_v55, %v483_v51  ;;  %v611_v33 = vld [vmem:[#allocation7 + $0x220] sm:$0xff] }
 0x10e   : > { %2089 = vmatmul.mubr.f32.gmra.mrb[22].mxu0 %v633_v35  ;;  %1453 = vmatprep.mubr.f32.mxu1 %v640_v39  ;;  %v564_v35 = vld [vmem:[#allocation7 + $0xa8] sm:$0xff]  ;;  %v487_v39 = vld [vmem:[%s5985_s25 + $0x640] sm:$0xff] }
 0x10f   : > { %4547 = vmatpush1.bf16.msra.mxu0 %v4546_v37  ;;  %2094 = vmatprep.mubr.f32.mxu0 %v642_v40  ;;  %v489_v40 = vld [vmem:[%s5985_s25 + $0x650] sm:$0xff]  ;;  %v572_v14 = vld [vmem:[#allocation7 + $0xe8] sm:$0xff]  ;;  %v751_v43 = vld [vmem:[#allocation7 + $0x680] sm:$0xff] }
 0x110   : > { %4549 = vmatprep.subr.bf16.mxu0 %v4548_v6  ;;  %4847 = vmatpush1.bf16.msra.mxu1 %v6171_v44  ;;  %v4556_v44 = vpack.c.bf16 %v474_v57, %v472_v32  ;;  %v563_v6 = vld [vmem:[#allocation7 + $0xa0] sm:$0xff]  ;;  %v4574_v63 = vpack.c.bf16 %v489_v40, %v487_v39  ;;  %v493_v32 = vld [vmem:[%s5985_s25 + $0x670] sm:$0xff]  ;;  %v644_v51 = vld [vmem:[#allocation7 + $0x328] sm:$0xff] }
 0x111   : > { %1454 = vmatmul.mubr.f32.gmra.mrb[24].mxu1 %v639_v12  ;;  %4832 = vmatprep.subr.bf16.mxu1 %v6177_v50  ;;  %v476_v50 = vld [vmem:[%s5985_s25 + $0x5e8] sm:$0xff]  ;;  %v571_v12 = vld [vmem:[#allocation7 + $0xe0] sm:$0xff] }
 0x112   : > { %2095 = vmatmul.mubr.f32.gmra.mrb[24].mxu0 %v641_v4  ;;  %1459 = vmatprep.mubr.f32.mxu1 %v648_v49  ;;  %v704_v4 = vld [vmem:[#allocation7 + $0x508] sm:$0xff]  ;;  %v494_v49 = vld [vmem:[%s5985_s25 + $0x678] sm:$0xff]  ;;  %v579_v57 = vld [vmem:[#allocation7 + $0x120] sm:$0xff] }
 0x113   : > { %4551 = vmatpush1.bf16.msra.mxu0 %v4550_v48  ;;  %2100 = vmatprep.mubr.f32.mxu0 %v650_v17  ;;  %v492_v48 = vld [vmem:[%s5985_s25 + $0x668] sm:$0xff]  ;;  %v495_v20 = vld [vmem:[%s5985_s25 + $0x680] sm:$0xff] }
 0x114   : > { %4553 = vmatprep.subr.bf16.mxu0 %v4552_v24  ;;  %4848 = vmatpush1.bf16.msra.mxu1 %v6185_v60  ;;  %v4560_v60 = vpack.c.bf16 %v478_v1, %v476_v50  ;;  %v580_v17 = vld [vmem:[#allocation7 + $0x128] sm:$0xff]  ;;  %v4576_v24 = vpack.c.bf16 %v494_v49, %v492_v48  ;;  %v595_v50 = vld [vmem:[#allocation7 + $0x1a0] sm:$0xff] }
 0x115   : > { %1460 = vmatmul.mubr.f32.gmra.mrb[26].mxu1 %v647_v13  ;;  %4833 = vmatprep.subr.bf16.mxu1 %v6191_v3  ;;  %v480_v3 = vld [vmem:[%s5985_s25 + $0x608] sm:$0xff]  ;;  %v767_v55 = vld [vmem:[#allocation7 + $0x700] sm:$0xff] }
 0x116   : > { %2101 = vmatmul.mubr.f32.gmra.mrb[26].mxu0 %v649_v58  ;;  %1465 = vmatprep.mubr.f32.mxu1 %v656_v19  ;;  %v712_v13 = vld [vmem:[#allocation7 + $0x548] sm:$0xff]  ;;  %v4578_v58 = vpack.c.bf16 %v493_v32, %v491_v54  ;;  %v711_v19 = vld [vmem:[#allocation7 + $0x540] sm:$0xff] }
 0x117   : > { %4555 = vmatpush1.bf16.msra.mxu0 %v4554_v59  ;;  %2106 = vmatprep.mubr.f32.mxu0 %v658_v62  ;;  %v588_v59 = vld [vmem:[#allocation7 + $0x168] sm:$0xff]  ;;  %v587_v62 = vld [vmem:[#allocation7 + $0x160] sm:$0xff] }
 0x118   : > { %4557 = vmatprep.subr.bf16.mxu0 %v4556_v44  ;;  %4849 = vmatpush1.bf16.msra.mxu1 %v6199_v16  ;;  %v4564_v16 = vpack.c.bf16 %v482_v10, %v480_v3  ;;  %v720_v44 = vld [vmem:[#allocation7 + $0x588] sm:$0xff]  ;;  %v743_v10 = vld [vmem:[#allocation7 + $0x640] sm:$0xff] }
 0x119   : > { %1466 = vmatmul.mubr.f32.gmra.mrb[28].mxu1 %v655_v30  ;;  %4834 = vmatprep.subr.bf16.mxu1 %v6205_v23  ;;  %v484_v23 = vld [vmem:[%s5985_s25 + $0x628] sm:$0xff]  ;;  %v659_v39 = vld [vmem:[#allocation7 + $0x3a0] sm:$0xff] }
 0x11a   : > { %2107 = vmatmul.mubr.f32.gmra.mrb[28].mxu0 %v657_v2  ;;  %1471 = vmatprep.mubr.f32.mxu1 %v664_v5  ;;  %v728_v1 = vld [vmem:[#allocation7 + $0x5c8] sm:$0xff]  ;;  %v727_v2 = vld [vmem:[#allocation7 + $0x5c0] sm:$0xff] }
 0x11b   : > { %4559 = vmatpush1.bf16.msra.mxu0 %v4558_v27  ;;  %2112 = vmatprep.mubr.f32.mxu0 %v666_v8  ;;  %v604_v30 = vld [vmem:[#allocation7 + $0x1e8] sm:$0xff]  ;;  %v603_v27 = vld [vmem:[#allocation7 + $0x1e0] sm:$0xff] }
 0x11c   : > { %4561 = vmatprep.subr.bf16.mxu0 %v4560_v60  ;;  %4850 = vmatpush1.bf16.msra.mxu1 %v6213_v36  ;;  %v4568_v36 = vpack.c.bf16 %v486_v47, %v484_v23  ;;  %v736_v5 = vld [vmem:[#allocation7 + $0x608] sm:$0xff]  ;;  %v735_v60 = vld [vmem:[#allocation7 + $0x600] sm:$0xff]  ;;  %v497_v23 = vld [vmem:[%s5985_s25 + $0x690] sm:$0xff] }
 0x11d   : > { %1472 = vmatmul.mubr.f32.gmra.mrb[30].mxu1 %v663_v11  ;;  %4835 = vmatprep.subr.bf16.mxu1 %v6218_v42  ;;  %v488_v42 = vld [vmem:[%s5985_s25 + $0x648] sm:$0xff]  ;;  %v619_v11 = vld [vmem:[#allocation7 + $0x260] sm:$0xff] }
 0x11e   : > { %2113 = vmatmul.mubr.f32.gmra.mrb[30].mxu0 %v665_v38  ;;  %1477 = vmatprep.mubr.f32.mxu1 %v672_v18  ;;  %v4572_v37 = vpack.c.bf16 %v490_v29, %v488_v42  ;;  %v612_v8 = vld [vmem:[#allocation7 + $0x228] sm:$0xff]  ;;  %v498_v18 = vld [vmem:[%s5985_s25 + $0x698] sm:$0xff]  ;;  %v627_v47 = vld [vmem:[#allocation7 + $0x2a0] sm:$0xff] }
 0x11f   : > { %4563 = vmatpush1.bf16.msra.mxu0 %v4562_v15  ;;  %2663 = vmatprep.mubr.f32.mxu0 %v548_v41  ;;  %v620_v3 = vld [vmem:[#allocation7 + $0x268] sm:$0xff]  ;;  %v643_v42 = vld [vmem:[#allocation7 + $0x320] sm:$0xff] }
 0x120   : > { %4565 = vmatprep.subr.bf16.mxu0 %v4564_v16  ;;  %4851 = vmatpush1.bf16.msra.mxu1 %v6225_v53  ;;  %v687_v53 = vld [vmem:[#allocation7 + $0x480] sm:$0xff]  ;;  %v752_v38 = vld [vmem:[#allocation7 + $0x688] sm:$0xff] }
 0x121   : > { %1478 = vmatmul.mubr.f32.gmra.mrb[32].mxu1 %v671_v21  ;;  %v496_v15 = vld [vmem:[%s5985_s25 + $0x688] sm:$0xff]  ;;  %v799_v48 = vld [vmem:[#allocation7 + $0x800] sm:$0xff] }
 0x122   : > { %2664 = vmatmul.mubr.f32.vlgmr.msra.gmra.mrb[0].mxu0 %v547_v22  ;;  %1483 = vmatprep.mubr.f32.mxu1 %v680_v7  ;;  %v628_v41 = vld [vmem:[#allocation7 + $0x2a8] sm:$0xff]  ;;  %v4580_v16 = vpack.c.bf16 %v498_v18, %v496_v15  ;;  %v4582_v22 = vpack.c.bf16 %v497_v23, %v495_v20  ;;  %v499_v49 = vld [vmem:[%s5985_s25 + $0x6a0] sm:$0xff] }
 0x123   : > { %2669 = vmatprep.mubr.f32.mxu0 %v556_v28  ;;  %4567 = vmatpush1.bf16.msra.mxu0 %v4566_v26  ;;  %v760_v21 = vld [vmem:[#allocation7 + $0x6c8] sm:$0xff]  ;;  %v759_v26 = vld [vmem:[#allocation7 + $0x6c0] sm:$0xff] }
 0x124   : > { %4569 = vmatprep.subr.bf16.mxu0 %v4568_v36  ;;  %v636_v7 = vld [vmem:[#allocation7 + $0x2e8] sm:$0xff]  ;;  %v635_v28 = vld [vmem:[#allocation7 + $0x2e0] sm:$0xff] }
 0x125   : > { %1484 = vmatmul.mubr.f32.gmra.mrb[34].mxu1 %v679_v31  ;;  %v768_v36 = vld [vmem:[#allocation7 + $0x708] sm:$0xff]  ;;  %v847_v15 = vld [vmem:[#allocation7 + $0x980] sm:$0xff] }
 0x126   : > { %2670 = vmatmul.mubr.f32.gmra.mrb[2].mxu0 %v555_v61  ;;  %1489 = vmatprep.mubr.f32.mxu1 %v688_v56  ;;  %v776_v29 = vld [vmem:[#allocation7 + $0x748] sm:$0xff]  ;;  %v775_v61 = vld [vmem:[#allocation7 + $0x740] sm:$0xff] }
 0x127   : > { %2675 = vmatprep.mubr.f32.mxu0 %v564_v35  ;;  %4571 = vmatpush1.bf16.msra.mxu0 %v4570_v34  ;;  %v652_v31 = vld [vmem:[#allocation7 + $0x368] sm:$0xff]  ;;  %v651_v56 = vld [vmem:[#allocation7 + $0x360] sm:$0xff] }
 0x128   : > { %4573 = vmatprep.subr.bf16.mxu0 %v4572_v37  ;;  %v784_v34 = vld [vmem:[#allocation7 + $0x788] sm:$0xff]  ;;  %v783_v37 = vld [vmem:[#allocation7 + $0x780] sm:$0xff] }
 0x129   : > { %1490 = vmatmul.mubr.f32.gmra.mrb[36].mxu1 %v687_v53  ;;  %v660_v35 = vld [vmem:[#allocation7 + $0x3a8] sm:$0xff]  ;;  %v503_v18 = vld [vmem:[%s5985_s25 + $0x6c0] sm:$0xff] }
 0x12a   : > { %2676 = vmatmul.mubr.f32.gmra.mrb[4].mxu0 %v563_v6  ;;  %1495 = vmatprep.mubr.f32.mxu1 %v696_v45  ;;  %v792_v40 = vld [vmem:[#allocation7 + $0x7c8] sm:$0xff]  ;;  %v791_v6 = vld [vmem:[#allocation7 + $0x7c0] sm:$0xff] }
 0x12b   : > { %2681 = vmatprep.mubr.f32.mxu0 %v572_v14  ;;  %4575 = vmatpush1.bf16.msra.mxu0 %v4574_v63  ;;  %v668_v53 = vld [vmem:[#allocation7 + $0x3e8] sm:$0xff]  ;;  %v667_v45 = vld [vmem:[#allocation7 + $0x3e0] sm:$0xff] }
 0x12c   : > { %4577 = vmatprep.subr.bf16.mxu0 %v4576_v24  ;;  %v800_v63 = vld [vmem:[#allocation7 + $0x808] sm:$0xff]  ;;  %v675_v24 = vld [vmem:[#allocation7 + $0x420] sm:$0xff] }
 0x12d   : > { %1496 = vmatmul.mubr.f32.gmra.mrb[38].mxu1 %v695_v46  ;;  %v500_v14 = vld [vmem:[%s5985_s25 + $0x6a8] sm:$0xff]  ;;  %v502_v46 = vld [vmem:[%s5985_s25 + $0x6b8] sm:$0xff] }
 0x12e   : > { %2682 = vmatmul.mubr.f32.gmra.mrb[6].mxu0 %v571_v12  ;;  %1501 = vmatprep.mubr.f32.mxu1 %v704_v4  ;;  %v676_v12 = vld [vmem:[#allocation7 + $0x428] sm:$0xff]  ;;  %v4584_v4 = vpack.c.bf16 %v502_v46, %v500_v14  ;;  %v895_v14 = vld [vmem:[#allocation7 + $0xb00] sm:$0xff] }
 0x12f   : > { %2687 = vmatprep.mubr.f32.mxu0 %v580_v17  ;;  %4579 = vmatpush1.bf16.msra.mxu0 %v4578_v58  ;;  %v501_v17 = vld [vmem:[%s5985_s25 + $0x6b0] sm:$0xff]  ;;  %v684_v32 = vld [vmem:[#allocation7 + $0x468] sm:$0xff]  ;;  %v507_v46 = vld [vmem:[%s5985_s25 + $0x6e0] sm:$0xff] }
 0x130   : > { %4581 = vmatprep.subr.bf16.mxu0 %v4580_v16  ;;  %v4586_v54 = vpack.c.bf16 %v501_v17, %v499_v49  ;;  %v816_v58 = vld [vmem:[#allocation7 + $0x888] sm:$0xff]  ;;  %v723_v16 = vld [vmem:[#allocation7 + $0x5a0] sm:$0xff] }
 0x131   : > { %1502 = vmatmul.mubr.f32.gmra.mrb[40].mxu1 %v703_v52  ;;  %v808_v52 = vld [vmem:[#allocation7 + $0x848] sm:$0xff] }
 0x132   : > { %2688 = vmatmul.mubr.f32.gmra.mrb[8].mxu0 %v579_v57  ;;  %1507 = vmatprep.mubr.f32.mxu1 %v712_v13  ;;  %v807_v57 = vld [vmem:[#allocation7 + $0x840] sm:$0xff]  ;;  %v732_v23 = vld [vmem:[#allocation7 + $0x5e8] sm:$0xff] }
 0x133   : > { %2693 = vmatprep.mubr.f32.mxu0 %v588_v59  ;;  %4583 = vmatpush1.bf16.msra.mxu0 %v4582_v22  ;;  %v683_v13 = vld [vmem:[#allocation7 + $0x460] sm:$0xff]  ;;  %v692_v59 = vld [vmem:[#allocation7 + $0x4a8] sm:$0xff] }
 0x134   : > { %4585 = vmatprep.subr.bf16.mxu0 %v4584_v4  ;;  %v864_v22 = vld [vmem:[#allocation7 + $0xa08] sm:$0xff]  ;;  %v771_v4 = vld [vmem:[#allocation7 + $0x720] sm:$0xff] }
 0x135   : > { %1508 = vmatmul.mubr.f32.gmra.mrb[42].mxu1 %v711_v19  ;;  %v815_v19 = vld [vmem:[#allocation7 + $0x880] sm:$0xff]  ;;  %v780_v17 = vld [vmem:[#allocation7 + $0x768] sm:$0xff] }
 0x136   : > { %2694 = vmatmul.mubr.f32.gmra.mrb[10].mxu0 %v587_v62  ;;  %1513 = vmatprep.mubr.f32.mxu1 %v720_v44  ;;  %v691_v62 = vld [vmem:[#allocation7 + $0x4a0] sm:$0xff]  ;;  %v824_v44 = vld [vmem:[#allocation7 + $0x8c8] sm:$0xff] }
 0x137   : > { %2699 = vmatprep.mubr.f32.mxu0 %v596_v25  ;;  %4587 = vmatpush1.bf16.msra.mxu0 %v4586_v54  ;;  %v700_v25 = vld [vmem:[#allocation7 + $0x4e8] sm:$0xff] }
 0x138   : > { %v912_v54 = vld [vmem:[#allocation7 + $0xb88] sm:$0xff] }
 0x139   : > { %1514 = vmatmul.mubr.f32.gmra.mrb[44].mxu1 %v719_v0  ;;  %v823_v0 = vld [vmem:[#allocation7 + $0x8c0] sm:$0xff] }
 0x13a   : > { %2700 = vmatmul.mubr.f32.gmra.mrb[12].mxu0 %v595_v50  ;;  %1519 = vmatprep.mubr.f32.mxu1 %v728_v1  ;;  %v699_v50 = vld [vmem:[#allocation7 + $0x4e0] sm:$0xff]  ;;  %v832_v1 = vld [vmem:[#allocation7 + $0x908] sm:$0xff] }
 0x13b   : > { %2705 = vmatprep.mubr.f32.mxu0 %v604_v30  ;;  %v708_v30 = vld [vmem:[#allocation7 + $0x528] sm:$0xff] }
 0x13d   : > { %1520 = vmatmul.mubr.f32.gmra.mrb[46].mxu1 %v727_v2  ;;  %v831_v2 = vld [vmem:[#allocation7 + $0x900] sm:$0xff] }
 0x13e   : > { %2706 = vmatmul.mubr.f32.gmra.mrb[14].mxu0 %v603_v27  ;;  %1525 = vmatprep.mubr.f32.mxu1 %v736_v5  ;;  %v707_v27 = vld [vmem:[#allocation7 + $0x520] sm:$0xff]  ;;  %v840_v5 = vld [vmem:[#allocation7 + $0x948] sm:$0xff] }
 0x13f   : > { %2711 = vmatprep.mubr.f32.mxu0 %v612_v8  ;;  %v716_v8 = vld [vmem:[#allocation7 + $0x568] sm:$0xff] }
 0x141   : > { %1526 = vmatmul.mubr.f32.gmra.mrb[48].mxu1 %v735_v60  ;;  %v839_v60 = vld [vmem:[#allocation7 + $0x940] sm:$0xff] }
 0x142   : > { %2712 = vmatmul.mubr.f32.gmra.mrb[16].mxu0 %v611_v33  ;;  %1531 = vmatprep.mubr.f32.mxu1 %v744_v9  ;;  %v715_v33 = vld [vmem:[#allocation7 + $0x560] sm:$0xff]  ;;  %v848_v9 = vld [vmem:[#allocation7 + $0x988] sm:$0xff] }
 0x143   : > { %2717 = vmatprep.mubr.f32.mxu0 %v620_v3  ;;  %v504_v3 = vld [vmem:[%s5985_s25 + $0x6c8] sm:$0xff] }
 0x145   : > { %1532 = vmatmul.mubr.f32.gmra.mrb[50].mxu1 %v743_v10  ;;  %v506_v10 = vld [vmem:[%s5985_s25 + $0x6d8] sm:$0xff] }
 0x146   : > { %2718 = vmatmul.mubr.f32.gmra.mrb[18].mxu0 %v619_v11  ;;  %1537 = vmatprep.mubr.f32.mxu1 %v752_v38  ;;  %v724_v11 = vld [vmem:[#allocation7 + $0x5a8] sm:$0xff]  ;;  %v4588_v38 = vpack.c.bf16 %v506_v10, %v504_v3  ;;  %v943_v3 = vld [vmem:[#allocation7 + $0xc80] sm:$0xff] }
 0x147   : > { %2723 = vmatprep.mubr.f32.mxu0 %v628_v41  ;;  %v505_v41 = vld [vmem:[%s5985_s25 + $0x6d0] sm:$0xff]  ;;  %v511_v10 = vld [vmem:[%s5985_s25 + $0x700] sm:$0xff] }
 0x148   : > { %4589 = vmatprep.subr.bf16.mxu0 %v4588_v38  ;;  %v4590_v20 = vpack.c.bf16 %v505_v41, %v503_v18  ;;  %v819_v38 = vld [vmem:[#allocation7 + $0x8a0] sm:$0xff]  ;;  %v828_v41 = vld [vmem:[#allocation7 + $0x8e8] sm:$0xff] }
 0x149   : > { %1538 = vmatmul.mubr.f32.gmra.mrb[52].mxu1 %v751_v43  ;;  %v856_v43 = vld [vmem:[#allocation7 + $0x9c8] sm:$0xff] }
 0x14a   : > { %2724 = vmatmul.mubr.f32.gmra.mrb[20].mxu0 %v627_v47  ;;  %1543 = vmatprep.mubr.f32.mxu1 %v760_v21  ;;  %v855_v47 = vld [vmem:[#allocation7 + $0x9c0] sm:$0xff] }
 0x14b   : > { %2729 = vmatprep.mubr.f32.mxu0 %v636_v7  ;;  %4591 = vmatpush1.bf16.msra.mxu0 %v4590_v20  ;;  %v731_v21 = vld [vmem:[#allocation7 + $0x5e0] sm:$0xff]  ;;  %v740_v7 = vld [vmem:[#allocation7 + $0x628] sm:$0xff] }
 0x14c   : > { %v960_v20 = vld [vmem:[#allocation7 + $0xd08] sm:$0xff] }
 0x14d   : > { %1544 = vmatmul.mubr.f32.gmra.mrb[54].mxu1 %v759_v26  ;;  %v863_v26 = vld [vmem:[#allocation7 + $0xa00] sm:$0xff] }
 0x14e   : > { %2730 = vmatmul.mubr.f32.gmra.mrb[22].mxu0 %v635_v28  ;;  %1549 = vmatprep.mubr.f32.mxu1 %v768_v36  ;;  %v739_v28 = vld [vmem:[#allocation7 + $0x620] sm:$0xff]  ;;  %v872_v36 = vld [vmem:[#allocation7 + $0xa48] sm:$0xff] }
 0x14f   : > { %2735 = vmatprep.mubr.f32.mxu0 %v644_v51  ;;  %v748_v51 = vld [vmem:[#allocation7 + $0x668] sm:$0xff] }
 0x151   : > { %1550 = vmatmul.mubr.f32.gmra.mrb[56].mxu1 %v767_v55  ;;  %v871_v55 = vld [vmem:[#allocation7 + $0xa40] sm:$0xff] }
 0x152   : > { %2736 = vmatmul.mubr.f32.gmra.mrb[24].mxu0 %v643_v42  ;;  %1555 = vmatprep.mubr.f32.mxu1 %v776_v29  ;;  %v747_v42 = vld [vmem:[#allocation7 + $0x660] sm:$0xff]  ;;  %v880_v29 = vld [vmem:[#allocation7 + $0xa88] sm:$0xff] }
 0x153   : > { %2741 = vmatprep.mubr.f32.mxu0 %v652_v31  ;;  %v756_v31 = vld [vmem:[#allocation7 + $0x6a8] sm:$0xff] }
 0x155   : > { %1556 = vmatmul.mubr.f32.gmra.mrb[58].mxu1 %v775_v61  ;;  %v879_v61 = vld [vmem:[#allocation7 + $0xa80] sm:$0xff] }
 0x156   : > { %2742 = vmatmul.mubr.f32.gmra.mrb[26].mxu0 %v651_v56  ;;  %1561 = vmatprep.mubr.f32.mxu1 %v784_v34  ;;  %v755_v56 = vld [vmem:[#allocation7 + $0x6a0] sm:$0xff]  ;;  %v888_v34 = vld [vmem:[#allocation7 + $0xac8] sm:$0xff] }
 0x157   : > { %2747 = vmatprep.mubr.f32.mxu0 %v660_v35  ;;  %v764_v35 = vld [vmem:[#allocation7 + $0x6e8] sm:$0xff] }
 0x159   : > { %1562 = vmatmul.mubr.f32.gmra.mrb[60].mxu1 %v783_v37  ;;  %v887_v37 = vld [vmem:[#allocation7 + $0xac0] sm:$0xff] }
 0x15a   : > { %2748 = vmatmul.mubr.f32.gmra.mrb[28].mxu0 %v659_v39  ;;  %1567 = vmatprep.mubr.f32.mxu1 %v792_v40  ;;  %v763_v39 = vld [vmem:[#allocation7 + $0x6e0] sm:$0xff]  ;;  %v896_v40 = vld [vmem:[#allocation7 + $0xb08] sm:$0xff] }
 0x15b   : > { %2753 = vmatprep.mubr.f32.mxu0 %v668_v53  ;;  %v508_v53 = vld [vmem:[%s5985_s25 + $0x6e8] sm:$0xff] }
 0x15d   : > { %1568 = vmatmul.mubr.f32.gmra.mrb[62].mxu1 %v791_v6  ;;  %v510_v6 = vld [vmem:[%s5985_s25 + $0x6f8] sm:$0xff] }
 0x15e   : > { %2754 = vmatmul.mubr.f32.gmra.mrb[30].mxu0 %v667_v45  ;;  %1573 = vmatprep.mubr.f32.mxu1 %v800_v63  ;;  %v772_v45 = vld [vmem:[#allocation7 + $0x728] sm:$0xff]  ;;  %v4592_v63 = vpack.c.bf16 %v510_v6, %v508_v53  ;;  %v518_v6 = vld [vmem:[%s5985_s25 + $0x738] sm:$0xff] }
 0x15f   : > { %2759 = vmatprep.mubr.f32.mxu0 %v676_v12  ;;  %v509_v12 = vld [vmem:[%s5985_s25 + $0x6f0] sm:$0xff]  ;;  %v516_v53 = vld [vmem:[%s5985_s25 + $0x728] sm:$0xff] }
 0x160   : > { %4593 = vmatprep.subr.bf16.mxu0 %v4592_v63  ;;  %v4594_v49 = vpack.c.bf16 %v509_v12, %v507_v46  ;;  %v4600_v63 = vpack.c.bf16 %v518_v6, %v516_v53  ;;  %v991_v12 = vld [vmem:[#allocation7 + $0xe00] sm:$0xff]  ;;  %v932_v53 = vld [vmem:[#allocation7 + $0xc28] sm:$0xff] }
 0x161   : > { %1574 = vmatmul.mubr.f32.gmra.mrb[64].mxu1 %v799_v48  ;;  %v904_v48 = vld [vmem:[#allocation7 + $0xb48] sm:$0xff] }
 0x162   : > { %2760 = vmatmul.mubr.f32.gmra.mrb[32].mxu0 %v675_v24  ;;  %1579 = vmatprep.mubr.f32.mxu1 %v808_v52  ;;  %v903_v24 = vld [vmem:[#allocation7 + $0xb40] sm:$0xff] }
 0x163   : > { %2765 = vmatprep.mubr.f32.mxu0 %v684_v32  ;;  %4595 = vmatpush1.bf16.msra.mxu0 %v4594_v49  ;;  %v779_v52 = vld [vmem:[#allocation7 + $0x760] sm:$0xff]  ;;  %v788_v32 = vld [vmem:[#allocation7 + $0x7a8] sm:$0xff] }
 0x164   : > { %v867_v49 = vld [vmem:[#allocation7 + $0xa20] sm:$0xff] }
 0x165   : > { %1580 = vmatmul.mubr.f32.gmra.mrb[66].mxu1 %v807_v57  ;;  %v911_v57 = vld [vmem:[#allocation7 + $0xb80] sm:$0xff] }
 0x166   : > { %2766 = vmatmul.mubr.f32.gmra.mrb[34].mxu0 %v683_v13  ;;  %1585 = vmatprep.mubr.f32.mxu1 %v816_v58  ;;  %v787_v13 = vld [vmem:[#allocation7 + $0x7a0] sm:$0xff]  ;;  %v920_v58 = vld [vmem:[#allocation7 + $0xbc8] sm:$0xff] }
 0x167   : > { %2771 = vmatprep.mubr.f32.mxu0 %v692_v59  ;;  %v796_v59 = vld [vmem:[#allocation7 + $0x7e8] sm:$0xff] }
 0x169   : > { %1586 = vmatmul.mubr.f32.gmra.mrb[68].mxu1 %v815_v19  ;;  %v919_v19 = vld [vmem:[#allocation7 + $0xbc0] sm:$0xff] }
 0x16a   : > { %2772 = vmatmul.mubr.f32.gmra.mrb[36].mxu0 %v691_v62  ;;  %1591 = vmatprep.mubr.f32.mxu1 %v824_v44  ;;  %v795_v62 = vld [vmem:[#allocation7 + $0x7e0] sm:$0xff]  ;;  %v928_v44 = vld [vmem:[#allocation7 + $0xc08] sm:$0xff] }
 0x16b   : > { %2777 = vmatprep.mubr.f32.mxu0 %v700_v25  ;;  %v804_v25 = vld [vmem:[#allocation7 + $0x828] sm:$0xff] }
 0x16d   : > { %1592 = vmatmul.mubr.f32.gmra.mrb[70].mxu1 %v823_v0  ;;  %v927_v0 = vld [vmem:[#allocation7 + $0xc00] sm:$0xff] }
 0x16e   : > { %2778 = vmatmul.mubr.f32.gmra.mrb[38].mxu0 %v699_v50  ;;  %1597 = vmatprep.mubr.f32.mxu1 %v832_v1  ;;  %v803_v50 = vld [vmem:[#allocation7 + $0x820] sm:$0xff]  ;;  %v936_v1 = vld [vmem:[#allocation7 + $0xc48] sm:$0xff] }
 0x16f   : > { %2783 = vmatprep.mubr.f32.mxu0 %v708_v30  ;;  %v812_v30 = vld [vmem:[#allocation7 + $0x868] sm:$0xff] }
 0x171   : > { %1598 = vmatmul.mubr.f32.gmra.mrb[72].mxu1 %v831_v2  ;;  %v935_v2 = vld [vmem:[#allocation7 + $0xc40] sm:$0xff] }
 0x172   : > { %2784 = vmatmul.mubr.f32.gmra.mrb[40].mxu0 %v707_v27  ;;  %1603 = vmatprep.mubr.f32.mxu1 %v840_v5  ;;  %v811_v27 = vld [vmem:[#allocation7 + $0x860] sm:$0xff]  ;;  %v944_v5 = vld [vmem:[#allocation7 + $0xc88] sm:$0xff] }
 0x173   : > { %2789 = vmatprep.mubr.f32.mxu0 %v716_v8  ;;  %v512_v8 = vld [vmem:[%s5985_s25 + $0x708] sm:$0xff] }
 0x175   : > { %1604 = vmatmul.mubr.f32.gmra.mrb[74].mxu1 %v839_v60  ;;  %v514_v60 = vld [vmem:[%s5985_s25 + $0x718] sm:$0xff] }
 0x176   : > { %2790 = vmatmul.mubr.f32.gmra.mrb[42].mxu0 %v715_v33  ;;  %1609 = vmatprep.mubr.f32.mxu1 %v848_v9  ;;  %v820_v33 = vld [vmem:[#allocation7 + $0x8a8] sm:$0xff]  ;;  %v4596_v9 = vpack.c.bf16 %v514_v60, %v512_v8 }
 0x177   : > { %2795 = vmatprep.mubr.f32.mxu0 %v724_v11  ;;  %v513_v11 = vld [vmem:[%s5985_s25 + $0x710] sm:$0xff]  ;;  %v900_v8 = vld [vmem:[#allocation7 + $0xb28] sm:$0xff] }
 0x178   : > { %4597 = vmatprep.subr.bf16.mxu0 %v4596_v9  ;;  %v4598_v18 = vpack.c.bf16 %v513_v11, %v511_v10  ;;  %v1023_v9 = vld [vmem:[#allocation7 + $0xf00] sm:$0xff]  ;;  %v1032_v10 = vld [vmem:[#allocation7 + $0xf48] sm:$0xff] }
 0x179   : > { %1610 = vmatmul.mubr.f32.gmra.mrb[76].mxu1 %v847_v15  ;;  %v952_v15 = vld [vmem:[#allocation7 + $0xcc8] sm:$0xff] }
 0x17a   : > { %2796 = vmatmul.mubr.f32.gmra.mrb[44].mxu0 %v723_v16  ;;  %1615 = vmatprep.mubr.f32.mxu1 %v856_v43  ;;  %v951_v16 = vld [vmem:[#allocation7 + $0xcc0] sm:$0xff]  ;;  %v908_v11 = vld [vmem:[#allocation7 + $0xb68] sm:$0xff] }
 0x17b   : > { %2801 = vmatprep.mubr.f32.mxu0 %v732_v23  ;;  %4599 = vmatpush1.bf16.msra.mxu0 %v4598_v18  ;;  %v827_v43 = vld [vmem:[#allocation7 + $0x8e0] sm:$0xff]  ;;  %v836_v23 = vld [vmem:[#allocation7 + $0x928] sm:$0xff] }
 0x17c   : > { %4601 = vmatprep.subr.bf16.mxu0 %v4600_v63  ;;  %v1031_v18 = vld [vmem:[#allocation7 + $0xf40] sm:$0xff] }
 0x17d   : > { %1616 = vmatmul.mubr.f32.gmra.mrb[78].mxu1 %v855_v47  ;;  %v959_v47 = vld [vmem:[#allocation7 + $0xd00] sm:$0xff] }
 0x17e   : > { %2802 = vmatmul.mubr.f32.gmra.mrb[46].mxu0 %v731_v21  ;;  %1621 = vmatprep.mubr.f32.mxu1 %v864_v22  ;;  %v835_v21 = vld [vmem:[#allocation7 + $0x920] sm:$0xff]  ;;  %v968_v22 = vld [vmem:[#allocation7 + $0xd48] sm:$0xff] }
 0x17f   : > { %2807 = vmatprep.mubr.f32.mxu0 %v740_v7  ;;  %v844_v7 = vld [vmem:[#allocation7 + $0x968] sm:$0xff]  ;;  %v1055_v63 = vld [vmem:[#allocation7 + $0x1000] sm:$0xff] }
 0x181   : > { %1622 = vmatmul.mubr.f32.gmra.mrb[80].mxu1 %v863_v26  ;;  %v967_v26 = vld [vmem:[#allocation7 + $0xd40] sm:$0xff] }
 0x182   : > { %2808 = vmatmul.mubr.f32.gmra.mrb[48].mxu0 %v739_v28  ;;  %1627 = vmatprep.mubr.f32.mxu1 %v872_v36  ;;  %v843_v28 = vld [vmem:[#allocation7 + $0x960] sm:$0xff]  ;;  %v976_v36 = vld [vmem:[#allocation7 + $0xd88] sm:$0xff] }
 0x183   : > { %2813 = vmatprep.mubr.f32.mxu0 %v748_v51  ;;  %v852_v51 = vld [vmem:[#allocation7 + $0x9a8] sm:$0xff] }
 0x185   : > { %1628 = vmatmul.mubr.f32.gmra.mrb[82].mxu1 %v871_v55 }
 0x186   : > { %2814 = vmatmul.mubr.f32.gmra.mrb[50].mxu0 %v747_v42  ;;  %1633 = vmatprep.mubr.f32.mxu1 %v880_v29  ;;  %v975_v29 = vld [vmem:[#allocation7 + $0xd80] sm:$0xff] }
 0x187   : > { %2819 = vmatprep.mubr.f32.mxu0 %v756_v31  ;;  %v851_v31 = vld [vmem:[#allocation7 + $0x9a0] sm:$0xff] }
 0x189   : > { %1634 = vmatmul.mubr.f32.gmra.mrb[84].mxu1 %v879_v61  ;;  %v984_v61 = vld [vmem:[#allocation7 + $0xdc8] sm:$0xff] }
 0x18a   : > { %2820 = vmatmul.mubr.f32.gmra.mrb[52].mxu0 %v755_v56  ;;  %1639 = vmatprep.mubr.f32.mxu1 %v888_v34  ;;  %v860_v56 = vld [vmem:[#allocation7 + $0x9e8] sm:$0xff] }
 0x18b   : > { %2825 = vmatprep.mubr.f32.mxu0 %v764_v35 }
 0x18d   : > { %1640 = vmatmul.mubr.f32.gmra.mrb[86].mxu1 %v887_v37  ;;  %v983_v37 = vld [vmem:[#allocation7 + $0xdc0] sm:$0xff] }
 0x18e   : > { %2826 = vmatmul.mubr.f32.gmra.mrb[54].mxu0 %v763_v39  ;;  %1645 = vmatprep.mubr.f32.mxu1 %v896_v40  ;;  %v859_v39 = vld [vmem:[#allocation7 + $0x9e0] sm:$0xff]  ;;  %v992_v40 = vld [vmem:[#allocation7 + $0xe08] sm:$0xff] }
 0x18f   : > { %2831 = vmatprep.mubr.f32.mxu0 %v772_v45  ;;  %v868_v45 = vld [vmem:[#allocation7 + $0xa28] sm:$0xff] }
 0x191   : > { %1646 = vmatmul.mubr.f32.gmra.mrb[88].mxu1 %v895_v14 }
 0x192   : > { %2832 = vmatmul.mubr.f32.gmra.mrb[56].mxu0 %v771_v4  ;;  %1651 = vmatprep.mubr.f32.mxu1 %v904_v48  ;;  %v515_v4 = vld [vmem:[%s5985_s25 + $0x720] sm:$0xff]  ;;  %v517_v48 = vld [vmem:[%s5985_s25 + $0x730] sm:$0xff] }
 0x193   : > { %2837 = vmatprep.mubr.f32.mxu0 %v780_v17  ;;  %v1000_v17 = vld [vmem:[#allocation7 + $0xe48] sm:$0xff] }
 0x195   : > { %1652 = vmatmul.mubr.f32.gmra.mrb[90].mxu1 %v903_v24  ;;  %v4602_v24 = vpack.c.bf16 %v517_v48, %v515_v4  ;;  %v1064_v4 = vld [vmem:[#allocation7 + $0x1048] sm:$0xff] }
 0x196   : > { %2838 = vmatmul.mubr.f32.gmra.mrb[58].mxu0 %v779_v52  ;;  %1657 = vmatprep.mubr.f32.mxu1 %v912_v54  ;;  %v876_v52 = vld [vmem:[#allocation7 + $0xa68] sm:$0xff] }
 0x197   : > { %2843 = vmatprep.mubr.f32.mxu0 %v788_v32  ;;  %4603 = vmatpush1.bf16.msra.mxu0 %v4602_v24  ;;  %v940_v48 = vld [vmem:[#allocation7 + $0xc68] sm:$0xff]  ;;  %v1063_v24 = vld [vmem:[#allocation7 + $0x1040] sm:$0xff] }
 0x199   : > { %1658 = vmatmul.mubr.f32.gmra.mrb[92].mxu1 %v911_v57  ;;  %v999_v57 = vld [vmem:[#allocation7 + $0xe40] sm:$0xff] }
 0x19a   : > { %2844 = vmatmul.mubr.f32.gmra.mrb[60].mxu0 %v787_v13  ;;  %1663 = vmatprep.mubr.f32.mxu1 %v920_v58  ;;  %v875_v13 = vld [vmem:[#allocation7 + $0xa60] sm:$0xff]  ;;  %v1008_v58 = vld [vmem:[#allocation7 + $0xe88] sm:$0xff] }
 0x19b   : > { %2849 = vmatprep.mubr.f32.mxu0 %v796_v59  ;;  %v884_v59 = vld [vmem:[#allocation7 + $0xaa8] sm:$0xff] }
 0x19d   : > { %1664 = vmatmul.mubr.f32.gmra.mrb[94].mxu1 %v919_v19 }
 0x19e   : > { %2850 = vmatmul.mubr.f32.gmra.mrb[62].mxu0 %v795_v62  ;;  %1669 = vmatprep.mubr.f32.mxu1 %v928_v44  ;;  %v1007_v44 = vld [vmem:[#allocation7 + $0xe80] sm:$0xff] }
 0x19f   : > { %2855 = vmatprep.mubr.f32.mxu0 %v804_v25  ;;  %v883_v25 = vld [vmem:[#allocation7 + $0xaa0] sm:$0xff] }
 0x1a1   : > { %1670 = vmatmul.mubr.f32.gmra.mrb[96].mxu1 %v927_v0  ;;  %v1016_v0 = vld [vmem:[#allocation7 + $0xec8] sm:$0xff] }
 0x1a2   : > { %2856 = vmatmul.mubr.f32.gmra.mrb[64].mxu0 %v803_v50  ;;  %1675 = vmatprep.mubr.f32.mxu1 %v936_v1  ;;  %v892_v50 = vld [vmem:[#allocation7 + $0xae8] sm:$0xff] }
 0x1a3   : > { %2861 = vmatprep.mubr.f32.mxu0 %v812_v30 }
 0x1a5   : > { %1676 = vmatmul.mubr.f32.gmra.mrb[98].mxu1 %v935_v2  ;;  %v1015_v2 = vld [vmem:[#allocation7 + $0xec0] sm:$0xff] }
 0x1a6   : > { %2862 = vmatmul.mubr.f32.gmra.mrb[66].mxu0 %v811_v27  ;;  %1681 = vmatprep.mubr.f32.mxu1 %v944_v5  ;;  %v891_v27 = vld [vmem:[#allocation7 + $0xae0] sm:$0xff]  ;;  %v1024_v5 = vld [vmem:[#allocation7 + $0xf08] sm:$0xff] }
 0x1a7   : > { %2867 = vmatprep.mubr.f32.mxu0 %v820_v33 }
 0x1a9   : > { %1682 = vmatmul.mubr.f32.gmra.mrb[100].mxu1 %v943_v3  ;;  %v899_v3 = vld [vmem:[#allocation7 + $0xb20] sm:$0xff] }
 0x1aa   : > { %2868 = vmatmul.mubr.f32.gmra.mrb[68].mxu0 %v819_v38  ;;  %1687 = vmatprep.mubr.f32.mxu1 %v952_v15 }
 0x1ab   : > { %2873 = vmatprep.mubr.f32.mxu0 %v828_v41  ;;  %v907_v41 = vld [vmem:[#allocation7 + $0xb60] sm:$0xff] }
 0x1ad   : > { %1688 = vmatmul.mubr.f32.gmra.mrb[102].mxu1 %v951_v16  ;;  %v1040_v16 = vld [vmem:[#allocation7 + $0xf88] sm:$0xff] }
 0x1ae   : > { %2874 = vmatmul.mubr.f32.gmra.mrb[70].mxu0 %v827_v43  ;;  %1693 = vmatprep.mubr.f32.mxu1 %v960_v20  ;;  %v520_v43 = vld [vmem:[%s5985_s25 + $0x748] sm:$0xff]  ;;  %v522_v20 = vld [vmem:[%s5985_s25 + $0x758] sm:$0xff] }
 0x1af   : > { %2879 = vmatprep.mubr.f32.mxu0 %v836_v23  ;;  %v916_v23 = vld [vmem:[#allocation7 + $0xba8] sm:$0xff] }
 0x1b1   : > { %1694 = vmatmul.mubr.f32.gmra.mrb[104].mxu1 %v959_v47  ;;  %v4604_v47 = vpack.c.bf16 %v522_v20, %v520_v43  ;;  %v1087_v43 = vld [vmem:[#allocation7 + $0x1100] sm:$0xff] }
 0x1b2   : > { %2880 = vmatmul.mubr.f32.gmra.mrb[72].mxu0 %v835_v21  ;;  %1699 = vmatprep.mubr.f32.mxu1 %v968_v22  ;;  %v523_v20 = vld [vmem:[%s5985_s25 + $0x760] sm:$0xff] }
 0x1b3   : > { %2885 = vmatprep.mubr.f32.mxu0 %v844_v7  ;;  %v1039_v7 = vld [vmem:[#allocation7 + $0xf80] sm:$0xff]  ;;  %4605 = vmatprep.subr.bf16.mxu0 %v4604_v47 }
 0x1b4   : > { %v6359_v55 = vpop.f32.mrb[0].mxu1  ;;  %v963_v47 = vld [vmem:[#allocation7 + $0xd20] sm:$0xff] }
 0x1b5   : > { %1700 = vmatmul.mubr.f32.gmra.mrb[106].mxu1 %v967_v26  ;;  %v6361_v42 = vpop.f32.mrb[1].mxu1  ;;  %v519_v26 = vld [vmem:[%s5985_s25 + $0x740] sm:$0xff] }
 0x1b6   : > { %2886 = vmatmul.mubr.f32.gmra.mrb[74].mxu0 %v843_v28  ;;  %1705 = vmatprep.mubr.f32.mxu1 %v976_v36  ;;  %v521_v28 = vld [vmem:[%s5985_s25 + $0x750] sm:$0xff]  ;;  %v915_v36 = vld [vmem:[#allocation7 + $0xba0] sm:$0xff] }
 0x1b7   : > { %2891 = vmatprep.mubr.f32.mxu0 %v852_v51  ;;  %v1048_v51 = vld [vmem:[#allocation7 + $0xfc8] sm:$0xff] }
 0x1b8   : > { %v6363_v34 = vpop.f32.mrb[2].mxu1 }
 0x1b9   : > { %1706 = vmatmul.mubr.f32.gmra.mrb[108].mxu1 %v975_v29  ;;  %v6365_v35 = vpop.f32.mrb[3].mxu1  ;;  %v4606_v29 = vpack.c.bf16 %v521_v28, %v519_v26  ;;  %v972_v28 = vld [vmem:[#allocation7 + $0xd68] sm:$0xff] }
 0x1ba   : > { %2892 = vmatmul.mubr.f32.gmra.mrb[76].mxu0 %v851_v31  ;;  %1711 = vmatprep.mubr.f32.mxu1 %v984_v61  ;;  %v924_v31 = vld [vmem:[#allocation7 + $0xbe8] sm:$0xff] }
 0x1bb   : > { %2897 = vmatprep.mubr.f32.mxu0 %v860_v56  ;;  %4607 = vmatpush1.bf16.msra.mxu0 %v4606_v29  ;;  %v1095_v29 = vld [vmem:[#allocation7 + $0x1140] sm:$0xff] }
 0x1bc   : > { %v6369_v14 = vpop.f32.mrb[4].mxu1 }
 0x1bd   : > { %1712 = vmatmul.mubr.f32.gmra.mrb[110].mxu1 %v983_v37  ;;  %v6371_v46 = vpop.f32.mrb[5].mxu1  ;;  %v1047_v37 = vld [vmem:[#allocation7 + $0xfc0] sm:$0xff] }
 0x1be   : > { %2898 = vmatmul.mubr.f32.gmra.mrb[78].mxu0 %v859_v39  ;;  %1717 = vmatprep.mubr.f32.mxu1 %v992_v40  ;;  %v923_v39 = vld [vmem:[#allocation7 + $0xbe0] sm:$0xff]  ;;  %v1056_v40 = vld [vmem:[#allocation7 + $0x1008] sm:$0xff] }
 0x1bf   : > { %2903 = vmatprep.mubr.f32.mxu0 %v868_v45 }
 0x1c0   : > { %v6375_v54 = vpop.f32.mrb[6].mxu1 }
 0x1c1   : > { %1718 = vmatmul.mubr.f32.gmra.mrb[112].mxu1 %v991_v12  ;;  %v6377_v32 = vpop.f32.mrb[7].mxu1  ;;  %v931_v12 = vld [vmem:[#allocation7 + $0xc20] sm:$0xff] }
 0x1c2   : > { %2904 = vmatmul.mubr.f32.gmra.mrb[80].mxu0 %v867_v49  ;;  %1723 = vmatprep.mubr.f32.mxu1 %v1000_v17 }
 0x1c3   : > { %2909 = vmatprep.mubr.f32.mxu0 %v876_v52  ;;  %v939_v52 = vld [vmem:[#allocation7 + $0xc60] sm:$0xff] }
 0x1c4   : > { %v6379_v19 = vpop.f32.mrb[8].mxu1 }
 0x1c5   : > { %1724 = vmatmul.mubr.f32.gmra.mrb[114].mxu1 %v999_v57  ;;  %v6381_v62 = vpop.f32.mrb[9].mxu1  ;;  %v1072_v57 = vld [vmem:[#allocation7 + $0x1088] sm:$0xff] }
 0x1c6   : > { %2910 = vmatmul.mubr.f32.gmra.mrb[82].mxu0 %v875_v13  ;;  %1729 = vmatprep.mubr.f32.mxu1 %v1008_v58  ;;  %v948_v13 = vld [vmem:[#allocation7 + $0xca8] sm:$0xff] }
 0x1c7   : > { %2915 = vmatprep.mubr.f32.mxu0 %v884_v59 }
 0x1c8   : > { %v6383_v1 = vpop.f32.mrb[10].mxu1 }
 0x1c9   : > { %1730 = vmatmul.mubr.f32.gmra.mrb[116].mxu1 %v1007_v44  ;;  %v6385_v30 = vpop.f32.mrb[11].mxu1  ;;  %v1071_v44 = vld [vmem:[#allocation7 + $0x1080] sm:$0xff] }
 0x1ca   : > { %2916 = vmatmul.mubr.f32.gmra.mrb[84].mxu0 %v883_v25  ;;  %1735 = vmatprep.mubr.f32.mxu1 %v1016_v0  ;;  %v947_v25 = vld [vmem:[#allocation7 + $0xca0] sm:$0xff]  ;;  %v1080_v0 = vld [vmem:[#allocation7 + $0x10c8] sm:$0xff] }
 0x1cb   : > { %2921 = vmatprep.mubr.f32.mxu0 %v892_v50  ;;  %v956_v50 = vld [vmem:[#allocation7 + $0xce8] sm:$0xff] }
 0x1cc   : > { %v6387_v60 = vpop.f32.mrb[12].mxu1 }
 0x1cd   : > { %1736 = vmatmul.mubr.f32.gmra.mrb[118].mxu1 %v1015_v2  ;;  %v6389_v33 = vpop.f32.mrb[13].mxu1 }
 0x1ce   : > { %2922 = vmatmul.mubr.f32.gmra.mrb[86].mxu0 %v891_v27  ;;  %1741 = vmatprep.mubr.f32.mxu1 %v1024_v5  ;;  %v1079_v5 = vld [vmem:[#allocation7 + $0x10c0] sm:$0xff] }
 0x1cf   : > { %2927 = vmatprep.mubr.f32.mxu0 %v900_v8  ;;  %v955_v8 = vld [vmem:[#allocation7 + $0xce0] sm:$0xff] }
 0x1d0   : > { %v6391_v38 = vpop.f32.mrb[14].mxu1 }
 0x1d1   : > { %1742 = vmatmul.mubr.f32.gmra.mrb[120].mxu1 %v1023_v9  ;;  %v6393_v15 = vpop.f32.mrb[15].mxu1  ;;  %v1088_v9 = vld [vmem:[#allocation7 + $0x1108] sm:$0xff] }
 0x1d2   : > { %2928 = vmatmul.mubr.f32.gmra.mrb[88].mxu0 %v899_v3  ;;  %1747 = vmatprep.mubr.f32.mxu1 %v1032_v10  ;;  %v524_v3 = vld [vmem:[%s5985_s25 + $0x768] sm:$0xff]  ;;  %v526_v10 = vld [vmem:[%s5985_s25 + $0x778] sm:$0xff] }
 0x1d3   : > { %2933 = vmatprep.mubr.f32.mxu0 %v908_v11  ;;  %v964_v11 = vld [vmem:[#allocation7 + $0xd28] sm:$0xff] }
 0x1d4   : > { %v6397_v21 = vpop.f32.mrb[16].mxu1 }
 0x1d5   : > { %1748 = vmatmul.mubr.f32.gmra.mrb[122].mxu1 %v1031_v18  ;;  %v6399_v22 = vpop.f32.mrb[17].mxu1  ;;  %v4608_v18 = vpack.c.bf16 %v526_v10, %v524_v3  ;;  %v1012_v3 = vld [vmem:[#allocation7 + $0xea8] sm:$0xff] }
 0x1d6   : > { %2934 = vmatmul.mubr.f32.gmra.mrb[90].mxu0 %v907_v41  ;;  %1753 = vmatprep.mubr.f32.mxu1 %v1040_v16 }
 0x1d7   : > { %2939 = vmatprep.mubr.f32.mxu0 %v916_v23  ;;  %v525_v23 = vld [vmem:[%s5985_s25 + $0x770] sm:$0xff]  ;;  %4609 = vmatprep.subr.bf16.mxu0 %v4608_v18  ;;  %v527_v18 = vld [vmem:[%s5985_s25 + $0x780] sm:$0xff] }
 0x1d8   : > { %v6403_v61 = vpop.f32.mrb[18].mxu1  ;;  %v4610_v26 = vpack.c.bf16 %v525_v23, %v523_v20  ;;  %v1011_v20 = vld [vmem:[#allocation7 + $0xea0] sm:$0xff]  ;;  %v1144_v23 = vld [vmem:[#allocation7 + $0x12c8] sm:$0xff] }
 0x1d9   : > { %1754 = vmatmul.mubr.f32.gmra.mrb[124].mxu1 %v1039_v7  ;;  %v6405_v56 = vpop.f32.mrb[19].mxu1  ;;  %v1096_v7 = vld [vmem:[#allocation7 + $0x1148] sm:$0xff] }
 0x1da   : > { %2940 = vmatmul.mubr.f32.gmra.mrb[92].mxu0 %v915_v36  ;;  %1759 = vmatprep.mubr.f32.mxu1 %v1048_v51 }
 0x1db   : > { %2945 = vmatprep.mubr.f32.mxu0 %v924_v31  ;;  %4611 = vmatpush1.bf16.msra.mxu0 %v4610_v26  ;;  %v971_v31 = vld [vmem:[#allocation7 + $0xd60] sm:$0xff] }
 0x1dc   : > { %v6407_v6 = vpop.f32.mrb[20].mxu1  ;;  %v1143_v26 = vld [vmem:[#allocation7 + $0x12c0] sm:$0xff] }
 0x1dd   : > { %1760 = vmatmul.mubr.f32.gmra.mrb[126].mxu1 %v1047_v37  ;;  %v6409_v45 = vpop.f32.mrb[21].mxu1  ;;  %v1104_v37 = vld [vmem:[#allocation7 + $0x1188] sm:$0xff] }
 0x1de   : > { %2946 = vmatmul.mubr.f32.gmra.mrb[94].mxu0 %v923_v39  ;;  %1765 = vmatprep.mubr.f32.mxu1 %v1056_v40  ;;  %v980_v39 = vld [vmem:[#allocation7 + $0xda8] sm:$0xff]  ;;  %v1103_v40 = vld [vmem:[#allocation7 + $0x1180] sm:$0xff] }
 0x1df   : > { %2951 = vmatprep.mubr.f32.mxu0 %v932_v53  ;;  %v979_v53 = vld [vmem:[#allocation7 + $0xda0] sm:$0xff] }
 0x1e0   : > { %v6411_v49 = vpop.f32.mrb[22].mxu1 }
 0x1e1   : > { %1766 = vmatmul.mubr.f32.gmra.mrb[128].mxu1 %v1055_v63  ;;  %v6413_v17 = vpop.f32.mrb[23].mxu1  ;;  %v1112_v63 = vld [vmem:[#allocation7 + $0x11c8] sm:$0xff] }
 0x1e2   : > { %2952 = vmatmul.mubr.f32.gmra.mrb[96].mxu0 %v931_v12  ;;  %1771 = vmatprep.mubr.f32.mxu1 %v1064_v4  ;;  %v988_v12 = vld [vmem:[#allocation7 + $0xde8] sm:$0xff]  ;;  %v1111_v4 = vld [vmem:[#allocation7 + $0x11c0] sm:$0xff] }
 0x1e3   : > { %2957 = vmatprep.mubr.f32.mxu0 %v940_v48  ;;  %v987_v48 = vld [vmem:[#allocation7 + $0xde0] sm:$0xff] }
 0x1e4   : > { %v6415_v58 = vpop.f32.mrb[24].mxu1 }
 0x1e5   : > { %1772 = vmatmul.mubr.f32.gmra.mrb[130].mxu1 %v1063_v24  ;;  %v6417_v59 = vpop.f32.mrb[25].mxu1  ;;  %v1120_v24 = vld [vmem:[#allocation7 + $0x1208] sm:$0xff] }
 0x1e6   : > { %2958 = vmatmul.mubr.f32.gmra.mrb[98].mxu0 %v939_v52  ;;  %1777 = vmatprep.mubr.f32.mxu1 %v1072_v57  ;;  %v996_v52 = vld [vmem:[#allocation7 + $0xe28] sm:$0xff]  ;;  %v1119_v57 = vld [vmem:[#allocation7 + $0x1200] sm:$0xff] }
 0x1e7   : > { %2963 = vmatprep.mubr.f32.mxu0 %v948_v13  ;;  %v995_v13 = vld [vmem:[#allocation7 + $0xe20] sm:$0xff] }
 0x1e8   : > { %v6419_v2 = vpop.f32.mrb[26].mxu1 }
 0x1e9   : > { %1778 = vmatmul.mubr.f32.gmra.mrb[132].mxu1 %v1071_v44  ;;  %v6421_v27 = vpop.f32.mrb[27].mxu1  ;;  %v1128_v44 = vld [vmem:[#allocation7 + $0x1248] sm:$0xff] }
 0x1ea   : > { %2964 = vmatmul.mubr.f32.gmra.mrb[100].mxu0 %v947_v25  ;;  %1783 = vmatprep.mubr.f32.mxu1 %v1080_v0  ;;  %v1004_v25 = vld [vmem:[#allocation7 + $0xe68] sm:$0xff]  ;;  %v1127_v0 = vld [vmem:[#allocation7 + $0x1240] sm:$0xff] }
 0x1eb   : > { %2969 = vmatprep.mubr.f32.mxu0 %v956_v50  ;;  %v1003_v50 = vld [vmem:[#allocation7 + $0xe60] sm:$0xff] }
 0x1ec   : > { %v6425_v41 = vpop.f32.mrb[28].mxu1 }
 0x1ed   : > { %1784 = vmatmul.mubr.f32.gmra.mrb[134].mxu1 %v1079_v5  ;;  %v6427_v16 = vpop.f32.mrb[29].mxu1  ;;  %v1136_v5 = vld [vmem:[#allocation7 + $0x1288] sm:$0xff] }
 0x1ee   : > { %2970 = vmatmul.mubr.f32.gmra.mrb[102].mxu0 %v955_v8  ;;  %1789 = vmatprep.mubr.f32.mxu1 %v1088_v9  ;;  %v528_v8 = vld [vmem:[%s5985_s25 + $0x788] sm:$0xff]  ;;  %v530_v9 = vld [vmem:[%s5985_s25 + $0x798] sm:$0xff] }
 0x1ef   : > { %2975 = vmatprep.mubr.f32.mxu0 %v964_v11  ;;  %v4612_v10 = vpack.c.bf16 %v530_v9, %v528_v8  ;;  %v1135_v11 = vld [vmem:[#allocation7 + $0x1280] sm:$0xff]  ;;  %v536_v8 = vld [vmem:[%s5985_s25 + $0x7c8] sm:$0xff]  ;;  %v538_v9 = vld [vmem:[%s5985_s25 + $0x7d8] sm:$0xff] }
 0x1f0   : > { %v6431_v36 = vpop.f32.mrb[30].mxu1 }
 0x1f1   : > { %1790 = vmatmul.mubr.f32.gmra.mrb[136].mxu1 %v1087_v43  ;;  %v6433_v51 = vpop.f32.mrb[31].mxu1  ;;  %v529_v43 = vld [vmem:[%s5985_s25 + $0x790] sm:$0xff]  ;;  %4613 = vmatprep.subr.bf16.mxu0 %v4612_v10  ;;  %v4620_v10 = vpack.c.bf16 %v538_v9, %v536_v8  ;;  %v1092_v8 = vld [vmem:[#allocation7 + $0x1128] sm:$0xff]  ;;  %v1215_v9 = vld [vmem:[#allocation7 + $0x1500] sm:$0xff] }
 0x1f2   : > { %2976 = vmatmul.mubr.f32.gmra.mrb[104].mxu0 %v963_v47  ;;  %1795 = vmatprep.mubr.f32.mxu1 %v1096_v7  ;;  %v4614_v47 = vpack.c.bf16 %v529_v43, %v527_v18  ;;  %v1020_v7 = vld [vmem:[#allocation7 + $0xee8] sm:$0xff]  ;;  %v537_v18 = vld [vmem:[%s5985_s25 + $0x7d0] sm:$0xff] }
 0x1f3   : > { %2981 = vmatprep.mubr.f32.mxu0 %v972_v28  ;;  %v1019_v28 = vld [vmem:[#allocation7 + $0xee0] sm:$0xff] }
 0x1f4   : > { %4615 = vmatpush1.bf16.msra.mxu0 %v4614_v47  ;;  %v1184_v47 = vld [vmem:[#allocation7 + $0x1408] sm:$0xff] }
 0x1f5   : > { %1796 = vmatmul.mubr.f32.gmra.mrb[138].mxu1 %v1095_v29  ;;  %v1152_v29 = vld [vmem:[#allocation7 + $0x1308] sm:$0xff] }
 0x1f6   : > { %2982 = vmatmul.mubr.f32.gmra.mrb[106].mxu0 %v971_v31  ;;  %1801 = vmatprep.mubr.f32.mxu1 %v1104_v37  ;;  %v1028_v31 = vld [vmem:[#allocation7 + $0xf28] sm:$0xff]  ;;  %v1151_v37 = vld [vmem:[#allocation7 + $0x1300] sm:$0xff] }
 0x1f7   : > { %2987 = vmatprep.mubr.f32.mxu0 %v980_v39  ;;  %v1027_v39 = vld [vmem:[#allocation7 + $0xf20] sm:$0xff] }
 0x1f9   : > { %1802 = vmatmul.mubr.f32.gmra.mrb[140].mxu1 %v1103_v40  ;;  %v1160_v40 = vld [vmem:[#allocation7 + $0x1348] sm:$0xff] }
 0x1fa   : > { %2988 = vmatmul.mubr.f32.gmra.mrb[108].mxu0 %v979_v53  ;;  %1807 = vmatprep.mubr.f32.mxu1 %v1112_v63  ;;  %v1036_v53 = vld [vmem:[#allocation7 + $0xf68] sm:$0xff]  ;;  %v1159_v63 = vld [vmem:[#allocation7 + $0x1340] sm:$0xff] }
 0x1fb   : > { %2993 = vmatprep.mubr.f32.mxu0 %v988_v12  ;;  %v1035_v12 = vld [vmem:[#allocation7 + $0xf60] sm:$0xff] }
 0x1fd   : > { %1808 = vmatmul.mubr.f32.gmra.mrb[142].mxu1 %v1111_v4  ;;  %v1168_v4 = vld [vmem:[#allocation7 + $0x1388] sm:$0xff] }
 0x1fe   : > { %2994 = vmatmul.mubr.f32.gmra.mrb[110].mxu0 %v987_v48  ;;  %1813 = vmatprep.mubr.f32.mxu1 %v1120_v24  ;;  %v532_v48 = vld [vmem:[%s5985_s25 + $0x7a8] sm:$0xff]  ;;  %v534_v24 = vld [vmem:[%s5985_s25 + $0x7b8] sm:$0xff] }
 0x1ff   : > { %2999 = vmatprep.mubr.f32.mxu0 %v996_v52  ;;  %v1044_v52 = vld [vmem:[#allocation7 + $0xfa8] sm:$0xff] }
 0x201   : > { %1814 = vmatmul.mubr.f32.gmra.mrb[144].mxu1 %v1119_v57  ;;  %v4616_v57 = vpack.c.bf16 %v534_v24, %v532_v48  ;;  %v1067_v48 = vld [vmem:[#allocation7 + $0x1060] sm:$0xff]  ;;  %v1200_v24 = vld [vmem:[#allocation7 + $0x1488] sm:$0xff] }
 0x202   : > { %3000 = vmatmul.mubr.f32.gmra.mrb[112].mxu0 %v995_v13  ;;  %1819 = vmatprep.mubr.f32.mxu1 %v1128_v44  ;;  %v531_v13 = vld [vmem:[%s5985_s25 + $0x7a0] sm:$0xff]  ;;  %v533_v44 = vld [vmem:[%s5985_s25 + $0x7b0] sm:$0xff] }
 0x203   : > { %3005 = vmatprep.mubr.f32.mxu0 %v1004_v25  ;;  %v4618_v25 = vpack.c.bf16 %v533_v44, %v531_v13  ;;  %4617 = vmatprep.subr.bf16.mxu0 %v4616_v57  ;;  %v1199_v57 = vld [vmem:[#allocation7 + $0x1480] sm:$0xff]  ;;  %v1208_v44 = vld [vmem:[#allocation7 + $0x14c8] sm:$0xff] }
 0x204   : > { %v1075_v13 = vld [vmem:[#allocation7 + $0x10a0] sm:$0xff] }
 0x205   : > { %1820 = vmatmul.mubr.f32.gmra.mrb[146].mxu1 %v1127_v0  ;;  %v1167_v0 = vld [vmem:[#allocation7 + $0x1380] sm:$0xff]  ;;  %4619 = vmatpush1.bf16.msra.mxu0 %v4618_v25  ;;  %v1084_v25 = vld [vmem:[#allocation7 + $0x10e8] sm:$0xff] }
 0x206   : > { %3006 = vmatmul.mubr.f32.gmra.mrb[114].mxu0 %v1003_v50  ;;  %1825 = vmatprep.mubr.f32.mxu1 %v1136_v5  ;;  %v1043_v50 = vld [vmem:[#allocation7 + $0xfa0] sm:$0xff]  ;;  %v1176_v5 = vld [vmem:[#allocation7 + $0x13c8] sm:$0xff] }
 0x207   : > { %3011 = vmatprep.mubr.f32.mxu0 %v1012_v3  ;;  %v1052_v3 = vld [vmem:[#allocation7 + $0xfe8] sm:$0xff]  ;;  %4621 = vmatprep.subr.bf16.mxu0 %v4620_v10 }
 0x208   : > { %v1224_v10 = vld [vmem:[#allocation7 + $0x1548] sm:$0xff] }
 0x209   : > { %1826 = vmatmul.mubr.f32.gmra.mrb[148].mxu1 %v1135_v11  ;;  %v535_v11 = vld [vmem:[%s5985_s25 + $0x7c0] sm:$0xff] }
 0x20a   : > { %3012 = vmatmul.mubr.f32.gmra.mrb[116].mxu0 %v1011_v20  ;;  %1831 = vmatprep.mubr.f32.mxu1 %v1144_v23  ;;  %v4622_v43 = vpack.c.bf16 %v537_v18, %v535_v11  ;;  %v1175_v20 = vld [vmem:[#allocation7 + $0x13c0] sm:$0xff]  ;;  %v1100_v11 = vld [vmem:[#allocation7 + $0x1168] sm:$0xff] }
 0x20b   : > { %3017 = vmatprep.mubr.f32.mxu0 %v1020_v7  ;;  %v1051_v23 = vld [vmem:[#allocation7 + $0xfe0] sm:$0xff]  ;;  %v540_v7 = vld [vmem:[%s5985_s25 + $0x7e8] sm:$0xff] }
 0x20c   : > { %4623 = vmatpush1.bf16.msra.mxu0 %v4622_v43  ;;  %v1223_v18 = vld [vmem:[#allocation7 + $0x1540] sm:$0xff] }
 0x20d   : > { %1832 = vmatmul.mubr.f32.gmra.mrb[150].mxu1 %v1143_v26  ;;  %v542_v26 = vld [vmem:[%s5985_s25 + $0x7f8] sm:$0xff]  ;;  %v1099_v43 = vld [vmem:[#allocation7 + $0x1160] sm:$0xff] }
 0x20e   : > { %3018 = vmatmul.mubr.f32.gmra.mrb[118].mxu0 %v1019_v28  ;;  %1837 = vmatprep.mubr.f32.mxu1 %v1152_v29  ;;  %v1060_v28 = vld [vmem:[#allocation7 + $0x1028] sm:$0xff]  ;;  %v4624_v29 = vpack.c.bf16 %v542_v26, %v540_v7  ;;  %v1107_v7 = vld [vmem:[#allocation7 + $0x11a0] sm:$0xff] }
 0x20f   : > { %3023 = vmatprep.mubr.f32.mxu0 %v1028_v31  ;;  %v539_v31 = vld [vmem:[%s5985_s25 + $0x7e0] sm:$0xff]  ;;  %v1240_v26 = vld [vmem:[#allocation7 + $0x15c8] sm:$0xff] }
 0x210   : > { %4625 = vmatprep.subr.bf16.mxu0 %v4624_v29  ;;  %v1239_v29 = vld [vmem:[#allocation7 + $0x15c0] sm:$0xff] }
 0x211   : > { %1838 = vmatmul.mubr.f32.gmra.mrb[152].mxu1 %v1151_v37  ;;  %v541_v37 = vld [vmem:[%s5985_s25 + $0x7f0] sm:$0xff] }
 0x212   : > { %3024 = vmatmul.mubr.f32.gmra.mrb[120].mxu0 %v1027_v39  ;;  %1843 = vmatprep.mubr.f32.mxu1 %v1160_v40  ;;  %v4626_v39 = vpack.c.bf16 %v541_v37, %v539_v31  ;;  %v1183_v40 = vld [vmem:[#allocation7 + $0x1400] sm:$0xff]  ;;  %v1248_v37 = vld [vmem:[#allocation7 + $0x1608] sm:$0xff] }
 0x213   : > { %3029 = vmatprep.mubr.f32.mxu0 %v1036_v53  ;;  %v1059_v53 = vld [vmem:[#allocation7 + $0x1020] sm:$0xff] }
 0x214   : > { %4627 = vmatpush1.bf16.msra.mxu0 %v4626_v39  ;;  %v1115_v31 = vld [vmem:[#allocation7 + $0x11e0] sm:$0xff]  ;;  %v1124_v39 = vld [vmem:[#allocation7 + $0x1228] sm:$0xff] }
 0x215   : > { %1844 = vmatmul.mubr.f32.gmra.mrb[154].mxu1 %v1159_v63  ;;  %v1192_v63 = vld [vmem:[#allocation7 + $0x1448] sm:$0xff] }
 0x216   : > { %3030 = vmatmul.mubr.f32.gmra.mrb[122].mxu0 %v1035_v12  ;;  %1849 = vmatprep.mubr.f32.mxu1 %v1168_v4  ;;  %v1068_v12 = vld [vmem:[#allocation7 + $0x1068] sm:$0xff]  ;;  %v1191_v4 = vld [vmem:[#allocation7 + $0x1440] sm:$0xff] }
 0x217   : > { %3035 = vmatprep.mubr.f32.mxu0 %v1044_v52  ;;  %v1076_v52 = vld [vmem:[#allocation7 + $0x10a8] sm:$0xff] }
 0x219   : > { %1850 = vmatmul.mubr.f32.gmra.mrb[156].mxu1 %v1167_v0  ;;  %v1207_v0 = vld [vmem:[#allocation7 + $0x14c0] sm:$0xff] }
 0x21a   : > { %3036 = vmatmul.mubr.f32.gmra.mrb[124].mxu0 %v1043_v50  ;;  %1855 = vmatprep.mubr.f32.mxu1 %v1176_v5  ;;  %v1083_v50 = vld [vmem:[#allocation7 + $0x10e0] sm:$0xff]  ;;  %v1216_v5 = vld [vmem:[#allocation7 + $0x1508] sm:$0xff] }
 0x21b   : > { %3041 = vmatprep.mubr.f32.mxu0 %v1052_v3  ;;  %v1091_v3 = vld [vmem:[#allocation7 + $0x1120] sm:$0xff] }
 0x21d   : > { %1856 = vmatmul.mubr.f32.gmra.mrb[158].mxu1 %v1175_v20  ;;  %v1232_v20 = vld [vmem:[#allocation7 + $0x1588] sm:$0xff] }
 0x21e   : > { %3042 = vmatmul.mubr.f32.gmra.mrb[126].mxu0 %v1051_v23  ;;  %1861 = vmatprep.mubr.f32.mxu1 %v1184_v47  ;;  %v1108_v23 = vld [vmem:[#allocation7 + $0x11a8] sm:$0xff]  ;;  %v1231_v47 = vld [vmem:[#allocation7 + $0x1580] sm:$0xff] }
 0x21f   : > { %3047 = vmatprep.mubr.f32.mxu0 %v1060_v28  ;;  %v1116_v28 = vld [vmem:[#allocation7 + $0x11e8] sm:$0xff] }
 0x221   : > { %1862 = vmatmul.mubr.f32.gmra.mrb[160].mxu1 %v1183_v40  ;;  %v1247_v40 = vld [vmem:[#allocation7 + $0x1600] sm:$0xff] }
 0x222   : > { %3048 = vmatmul.mubr.f32.gmra.mrb[128].mxu0 %v1059_v53  ;;  %1867 = vmatprep.mubr.f32.mxu1 %v1192_v63  ;;  %v1123_v53 = vld [vmem:[#allocation7 + $0x1220] sm:$0xff]  ;;  %v1256_v63 = vld [vmem:[#allocation7 + $0x1648] sm:$0xff] }
 0x223   : > { %3053 = vmatprep.mubr.f32.mxu0 %v1068_v12  ;;  %v1132_v12 = vld [vmem:[#allocation7 + $0x1268] sm:$0xff] }
 0x225   : > { %1868 = vmatmul.mubr.f32.gmra.mrb[162].mxu1 %v1191_v4  ;;  %v1255_v4 = vld [vmem:[#allocation7 + $0x1640] sm:$0xff] }
 0x226   : > { %3054 = vmatmul.mubr.f32.gmra.mrb[130].mxu0 %v1067_v48  ;;  %1873 = vmatprep.mubr.f32.mxu1 %v1200_v24  ;;  %v1131_v48 = vld [vmem:[#allocation7 + $0x1260] sm:$0xff]  ;;  %v1264_v24 = vld [vmem:[#allocation7 + $0x1688] sm:$0xff] }
 0x227   : > { %3059 = vmatprep.mubr.f32.mxu0 %v1076_v52  ;;  %v1140_v52 = vld [vmem:[#allocation7 + $0x12a8] sm:$0xff] }
 0x229   : > { %1874 = vmatmul.mubr.f32.gmra.mrb[164].mxu1 %v1199_v57  ;;  %v1263_v57 = vld [vmem:[#allocation7 + $0x1680] sm:$0xff] }
 0x22a   : > { %3060 = vmatmul.mubr.f32.gmra.mrb[132].mxu0 %v1075_v13  ;;  %1879 = vmatprep.mubr.f32.mxu1 %v1208_v44  ;;  %v1139_v13 = vld [vmem:[#allocation7 + $0x12a0] sm:$0xff]  ;;  %v1272_v44 = vld [vmem:[#allocation7 + $0x16c8] sm:$0xff] }
 0x22b   : > { %3065 = vmatprep.mubr.f32.mxu0 %v1084_v25  ;;  %v1148_v25 = vld [vmem:[#allocation7 + $0x12e8] sm:$0xff] }
 0x22d   : > { %1880 = vmatmul.mubr.f32.gmra.mrb[166].mxu1 %v1207_v0  ;;  %v1271_v0 = vld [vmem:[#allocation7 + $0x16c0] sm:$0xff] }
 0x22e   : > { %3066 = vmatmul.mubr.f32.gmra.mrb[134].mxu0 %v1083_v50  ;;  %1885 = vmatprep.mubr.f32.mxu1 %v1216_v5  ;;  %v1147_v50 = vld [vmem:[#allocation7 + $0x12e0] sm:$0xff]  ;;  %v1280_v5 = vld [vmem:[#allocation7 + $0x1708] sm:$0xff] }
 0x22f   : > { %3071 = vmatprep.mubr.f32.mxu0 %v1092_v8  ;;  %v1156_v8 = vld [vmem:[#allocation7 + $0x1328] sm:$0xff] }
 0x231   : > { %1886 = vmatmul.mubr.f32.gmra.mrb[168].mxu1 %v1215_v9  ;;  %v1279_v9 = vld [vmem:[#allocation7 + $0x1700] sm:$0xff] }
 0x232   : > { %3072 = vmatmul.mubr.f32.gmra.mrb[136].mxu0 %v1091_v3  ;;  %1891 = vmatprep.mubr.f32.mxu1 %v1224_v10  ;;  %v1155_v3 = vld [vmem:[#allocation7 + $0x1320] sm:$0xff]  ;;  %v1288_v10 = vld [vmem:[#allocation7 + $0x1748] sm:$0xff] }
 0x233   : > { %3077 = vmatprep.mubr.f32.mxu0 %v1100_v11  ;;  %v1164_v11 = vld [vmem:[#allocation7 + $0x1368] sm:$0xff] }
 0x235   : > { %1892 = vmatmul.mubr.f32.gmra.mrb[170].mxu1 %v1223_v18  ;;  %v1287_v18 = vld [vmem:[#allocation7 + $0x1740] sm:$0xff] }
 0x236   : > { %3078 = vmatmul.mubr.f32.gmra.mrb[138].mxu0 %v1099_v43  ;;  %1897 = vmatprep.mubr.f32.mxu1 %v1232_v20  ;;  %v1163_v43 = vld [vmem:[#allocation7 + $0x1360] sm:$0xff]  ;;  %v1296_v20 = vld [vmem:[#allocation7 + $0x1788] sm:$0xff] }
 0x237   : > { %3083 = vmatprep.mubr.f32.mxu0 %v1108_v23  ;;  %v1172_v23 = vld [vmem:[#allocation7 + $0x13a8] sm:$0xff] }
 0x239   : > { %1898 = vmatmul.mubr.f32.gmra.mrb[172].mxu1 %v1231_v47  ;;  %v1295_v47 = vld [vmem:[#allocation7 + $0x1780] sm:$0xff] }
 0x23a   : > { %3084 = vmatmul.mubr.f32.gmra.mrb[140].mxu0 %v1107_v7  ;;  %1903 = vmatprep.mubr.f32.mxu1 %v1240_v26  ;;  %v1171_v7 = vld [vmem:[#allocation7 + $0x13a0] sm:$0xff]  ;;  %v1304_v26 = vld [vmem:[#allocation7 + $0x17c8] sm:$0xff] }
 0x23b   : > { %3089 = vmatprep.mubr.f32.mxu0 %v1116_v28  ;;  %v1180_v28 = vld [vmem:[#allocation7 + $0x13e8] sm:$0xff] }
 0x23d   : > { %1904 = vmatmul.mubr.f32.gmra.mrb[174].mxu1 %v1239_v29  ;;  %v1303_v29 = vld [vmem:[#allocation7 + $0x17c0] sm:$0xff] }
 0x23e   : > { %3090 = vmatmul.mubr.f32.gmra.mrb[142].mxu0 %v1115_v31  ;;  %1909 = vmatprep.mubr.f32.mxu1 %v1248_v37  ;;  %v1179_v31 = vld [vmem:[#allocation7 + $0x13e0] sm:$0xff]  ;;  %v674_v37 = vld [vmem:[#allocation7 + $0x418] sm:$0xff] }
 0x23f   : > { %3095 = vmatprep.mubr.f32.mxu0 %v1124_v39  ;;  %v1188_v39 = vld [vmem:[#allocation7 + $0x1428] sm:$0xff] }
 0x241   : > { %1910 = vmatmul.mubr.f32.gmra.mrb[176].mxu1 %v1247_v40  ;;  %v673_v40 = vld [vmem:[#allocation7 + $0x410] sm:$0xff] }
 0x242   : > { %3096 = vmatmul.mubr.f32.gmra.mrb[144].mxu0 %v1123_v53  ;;  %1915 = vmatprep.mubr.f32.mxu1 %v1256_v63  ;;  %v1187_v53 = vld [vmem:[#allocation7 + $0x1420] sm:$0xff]  ;;  %v682_v63 = vld [vmem:[#allocation7 + $0x458] sm:$0xff] }
 0x243   : > { %3101 = vmatprep.mubr.f32.mxu0 %v1132_v12  ;;  %v1196_v12 = vld [vmem:[#allocation7 + $0x1468] sm:$0xff] }
 0x245   : > { %1916 = vmatmul.mubr.f32.gmra.mrb[178].mxu1 %v1255_v4  ;;  %v681_v4 = vld [vmem:[#allocation7 + $0x450] sm:$0xff] }
 0x246   : > { %3102 = vmatmul.mubr.f32.gmra.mrb[146].mxu0 %v1131_v48  ;;  %1921 = vmatprep.mubr.f32.mxu1 %v1264_v24  ;;  %v1195_v48 = vld [vmem:[#allocation7 + $0x1460] sm:$0xff]  ;;  %v690_v24 = vld [vmem:[#allocation7 + $0x498] sm:$0xff] }
 0x247   : > { %3107 = vmatprep.mubr.f32.mxu0 %v1140_v52  ;;  %v1204_v52 = vld [vmem:[#allocation7 + $0x14a8] sm:$0xff] }
 0x249   : > { %1922 = vmatmul.mubr.f32.gmra.mrb[180].mxu1 %v1263_v57  ;;  %v689_v57 = vld [vmem:[#allocation7 + $0x490] sm:$0xff] }
 0x24a   : > { %3108 = vmatmul.mubr.f32.gmra.mrb[148].mxu0 %v1139_v13  ;;  %1927 = vmatprep.mubr.f32.mxu1 %v1272_v44  ;;  %v1203_v13 = vld [vmem:[#allocation7 + $0x14a0] sm:$0xff]  ;;  %v698_v44 = vld [vmem:[#allocation7 + $0x4d8] sm:$0xff] }
 0x24b   : > { %3113 = vmatprep.mubr.f32.mxu0 %v1148_v25  ;;  %v1212_v25 = vld [vmem:[#allocation7 + $0x14e8] sm:$0xff] }
 0x24d   : > { %1928 = vmatmul.mubr.f32.gmra.mrb[182].mxu1 %v1271_v0  ;;  %v697_v0 = vld [vmem:[#allocation7 + $0x4d0] sm:$0xff] }
 0x24e   : > { %3114 = vmatmul.mubr.f32.gmra.mrb[150].mxu0 %v1147_v50  ;;  %1933 = vmatprep.mubr.f32.mxu1 %v1280_v5  ;;  %v1211_v50 = vld [vmem:[#allocation7 + $0x14e0] sm:$0xff]  ;;  %v706_v5 = vld [vmem:[#allocation7 + $0x518] sm:$0xff] }
 0x24f   : > { %3119 = vmatprep.mubr.f32.mxu0 %v1156_v8  ;;  %v1220_v8 = vld [vmem:[#allocation7 + $0x1528] sm:$0xff] }
 0x251   : > { %1934 = vmatmul.mubr.f32.gmra.mrb[184].mxu1 %v1279_v9  ;;  %v705_v9 = vld [vmem:[#allocation7 + $0x510] sm:$0xff] }
 0x252   : > { %3120 = vmatmul.mubr.f32.gmra.mrb[152].mxu0 %v1155_v3  ;;  %1939 = vmatprep.mubr.f32.mxu1 %v1288_v10  ;;  %v1219_v3 = vld [vmem:[#allocation7 + $0x1520] sm:$0xff]  ;;  %v714_v10 = vld [vmem:[#allocation7 + $0x558] sm:$0xff] }
 0x253   : > { %3125 = vmatprep.mubr.f32.mxu0 %v1164_v11  ;;  %v1228_v11 = vld [vmem:[#allocation7 + $0x1568] sm:$0xff] }
 0x255   : > { %1940 = vmatmul.mubr.f32.gmra.mrb[186].mxu1 %v1287_v18  ;;  %v713_v18 = vld [vmem:[#allocation7 + $0x550] sm:$0xff] }
 0x256   : > { %3126 = vmatmul.mubr.f32.gmra.mrb[154].mxu0 %v1163_v43  ;;  %1945 = vmatprep.mubr.f32.mxu1 %v1296_v20  ;;  %v1227_v43 = vld [vmem:[#allocation7 + $0x1560] sm:$0xff]  ;;  %v722_v20 = vld [vmem:[#allocation7 + $0x598] sm:$0xff] }
 0x257   : > { %3131 = vmatprep.mubr.f32.mxu0 %v1172_v23  ;;  %v1236_v23 = vld [vmem:[#allocation7 + $0x15a8] sm:$0xff] }
 0x259   : > { %1946 = vmatmul.mubr.f32.gmra.mrb[188].mxu1 %v1295_v47  ;;  %v721_v47 = vld [vmem:[#allocation7 + $0x590] sm:$0xff] }
 0x25a   : > { %3132 = vmatmul.mubr.f32.gmra.mrb[156].mxu0 %v1171_v7  ;;  %1951 = vmatprep.mubr.f32.mxu1 %v1304_v26  ;;  %v1235_v7 = vld [vmem:[#allocation7 + $0x15a0] sm:$0xff]  ;;  %v730_v26 = vld [vmem:[#allocation7 + $0x5d8] sm:$0xff] }
 0x25b   : > { %3137 = vmatprep.mubr.f32.mxu0 %v1180_v28  ;;  %v1244_v28 = vld [vmem:[#allocation7 + $0x15e8] sm:$0xff] }
 0x25d   : > { %1952 = vmatmul.mubr.f32.gmra.mrb[190].mxu1 %v1303_v29  ;;  %v729_v29 = vld [vmem:[#allocation7 + $0x5d0] sm:$0xff] }
 0x25e   : > { %3138 = vmatmul.mubr.f32.gmra.mrb[158].mxu0 %v1179_v31  ;;  %2118 = vmatprep.mubr.f32.mxu1 %v674_v37  ;;  %v1243_v31 = vld [vmem:[#allocation7 + $0x15e0] sm:$0xff]  ;;  %v738_v37 = vld [vmem:[#allocation7 + $0x618] sm:$0xff] }
 0x25f   : > { %3143 = vmatprep.mubr.f32.mxu0 %v1188_v39  ;;  %v1252_v39 = vld [vmem:[#allocation7 + $0x1628] sm:$0xff] }
 0x261   : > { %2119 = vmatmul.mubr.f32.vlgmr.msra.gmra.mrb[32].mxu1 %v673_v40  ;;  %v737_v40 = vld [vmem:[#allocation7 + $0x610] sm:$0xff] }
 0x262   : > { %3144 = vmatmul.mubr.f32.gmra.mrb[160].mxu0 %v1187_v53  ;;  %2124 = vmatprep.mubr.f32.mxu1 %v682_v63  ;;  %v1251_v53 = vld [vmem:[#allocation7 + $0x1620] sm:$0xff]  ;;  %v746_v63 = vld [vmem:[#allocation7 + $0x658] sm:$0xff] }
 0x263   : > { %3149 = vmatprep.mubr.f32.mxu0 %v1196_v12  ;;  %v1260_v12 = vld [vmem:[#allocation7 + $0x1668] sm:$0xff] }
 0x265   : > { %2125 = vmatmul.mubr.f32.gmra.mrb[34].mxu1 %v681_v4  ;;  %v745_v4 = vld [vmem:[#allocation7 + $0x650] sm:$0xff] }
 0x266   : > { %3150 = vmatmul.mubr.f32.gmra.mrb[162].mxu0 %v1195_v48  ;;  %2130 = vmatprep.mubr.f32.mxu1 %v690_v24  ;;  %v1259_v48 = vld [vmem:[#allocation7 + $0x1660] sm:$0xff]  ;;  %v754_v24 = vld [vmem:[#allocation7 + $0x698] sm:$0xff] }
 0x267   : > { %3155 = vmatprep.mubr.f32.mxu0 %v1204_v52  ;;  %v1268_v52 = vld [vmem:[#allocation7 + $0x16a8] sm:$0xff] }
 0x269   : > { %2131 = vmatmul.mubr.f32.gmra.mrb[36].mxu1 %v689_v57  ;;  %v753_v57 = vld [vmem:[#allocation7 + $0x690] sm:$0xff] }
 0x26a   : > { %3156 = vmatmul.mubr.f32.gmra.mrb[164].mxu0 %v1203_v13  ;;  %2136 = vmatprep.mubr.f32.mxu1 %v698_v44  ;;  %v1267_v13 = vld [vmem:[#allocation7 + $0x16a0] sm:$0xff]  ;;  %v762_v44 = vld [vmem:[#allocation7 + $0x6d8] sm:$0xff] }
 0x26b   : > { %3161 = vmatprep.mubr.f32.mxu0 %v1212_v25  ;;  %v1276_v25 = vld [vmem:[#allocation7 + $0x16e8] sm:$0xff] }
 0x26d   : > { %2137 = vmatmul.mubr.f32.gmra.mrb[38].mxu1 %v697_v0  ;;  %v761_v0 = vld [vmem:[#allocation7 + $0x6d0] sm:$0xff] }
 0x26e   : > { %3162 = vmatmul.mubr.f32.gmra.mrb[166].mxu0 %v1211_v50  ;;  %2142 = vmatprep.mubr.f32.mxu1 %v706_v5  ;;  %v1275_v50 = vld [vmem:[#allocation7 + $0x16e0] sm:$0xff]  ;;  %v770_v5 = vld [vmem:[#allocation7 + $0x718] sm:$0xff] }
 0x26f   : > { %3167 = vmatprep.mubr.f32.mxu0 %v1220_v8  ;;  %v1284_v8 = vld [vmem:[#allocation7 + $0x1728] sm:$0xff] }
 0x271   : > { %2143 = vmatmul.mubr.f32.gmra.mrb[40].mxu1 %v705_v9  ;;  %v769_v9 = vld [vmem:[#allocation7 + $0x710] sm:$0xff] }
 0x272   : > { %3168 = vmatmul.mubr.f32.gmra.mrb[168].mxu0 %v1219_v3  ;;  %2148 = vmatprep.mubr.f32.mxu1 %v714_v10  ;;  %v1283_v3 = vld [vmem:[#allocation7 + $0x1720] sm:$0xff]  ;;  %v778_v10 = vld [vmem:[#allocation7 + $0x758] sm:$0xff] }
 0x273   : > { %3173 = vmatprep.mubr.f32.mxu0 %v1228_v11  ;;  %v1292_v11 = vld [vmem:[#allocation7 + $0x1768] sm:$0xff] }
 0x275   : > { %2149 = vmatmul.mubr.f32.gmra.mrb[42].mxu1 %v713_v18  ;;  %v777_v18 = vld [vmem:[#allocation7 + $0x750] sm:$0xff] }
 0x276   : > { %3174 = vmatmul.mubr.f32.gmra.mrb[170].mxu0 %v1227_v43  ;;  %2154 = vmatprep.mubr.f32.mxu1 %v722_v20  ;;  %v1291_v43 = vld [vmem:[#allocation7 + $0x1760] sm:$0xff]  ;;  %v786_v20 = vld [vmem:[#allocation7 + $0x798] sm:$0xff] }
 0x277   : > { %3179 = vmatprep.mubr.f32.mxu0 %v1236_v23  ;;  %v1300_v23 = vld [vmem:[#allocation7 + $0x17a8] sm:$0xff] }
 0x279   : > { %2155 = vmatmul.mubr.f32.gmra.mrb[44].mxu1 %v721_v47  ;;  %v785_v47 = vld [vmem:[#allocation7 + $0x790] sm:$0xff] }
 0x27a   : > { %3180 = vmatmul.mubr.f32.gmra.mrb[172].mxu0 %v1235_v7  ;;  %2160 = vmatprep.mubr.f32.mxu1 %v730_v26  ;;  %v1299_v7 = vld [vmem:[#allocation7 + $0x17a0] sm:$0xff]  ;;  %v794_v26 = vld [vmem:[#allocation7 + $0x7d8] sm:$0xff] }
 0x27b   : > { %3185 = vmatprep.mubr.f32.mxu0 %v1244_v28  ;;  %v1308_v28 = vld [vmem:[#allocation7 + $0x17e8] sm:$0xff] }
 0x27d   : > { %2161 = vmatmul.mubr.f32.gmra.mrb[46].mxu1 %v729_v29  ;;  %v793_v29 = vld [vmem:[#allocation7 + $0x7d0] sm:$0xff] }
 0x27e   : > { %3186 = vmatmul.mubr.f32.gmra.mrb[174].mxu0 %v1243_v31  ;;  %2166 = vmatprep.mubr.f32.mxu1 %v738_v37  ;;  %v1307_v31 = vld [vmem:[#allocation7 + $0x17e0] sm:$0xff]  ;;  %v802_v37 = vld [vmem:[#allocation7 + $0x818] sm:$0xff] }
 0x27f   : > { %3191 = vmatprep.mubr.f32.mxu0 %v1252_v39  ;;  %v550_v39 = vld [vmem:[#allocation7 + $0x38] sm:$0xff] }
 0x281   : > { %2167 = vmatmul.mubr.f32.gmra.mrb[48].mxu1 %v737_v40  ;;  %v801_v40 = vld [vmem:[#allocation7 + $0x810] sm:$0xff] }
 0x282   : > { %3192 = vmatmul.mubr.f32.gmra.mrb[176].mxu0 %v1251_v53  ;;  %2172 = vmatprep.mubr.f32.mxu1 %v746_v63  ;;  %v549_v53 = vld [vmem:[#allocation7 + $0x30] sm:$0xff]  ;;  %v810_v63 = vld [vmem:[#allocation7 + $0x858] sm:$0xff] }
 0x283   : > { %3197 = vmatprep.mubr.f32.mxu0 %v1260_v12  ;;  %v558_v12 = vld [vmem:[#allocation7 + $0x78] sm:$0xff] }
 0x285   : > { %2173 = vmatmul.mubr.f32.gmra.mrb[50].mxu1 %v745_v4  ;;  %v809_v4 = vld [vmem:[#allocation7 + $0x850] sm:$0xff] }
 0x286   : > { %3198 = vmatmul.mubr.f32.gmra.mrb[178].mxu0 %v1259_v48  ;;  %2178 = vmatprep.mubr.f32.mxu1 %v754_v24  ;;  %v557_v48 = vld [vmem:[#allocation7 + $0x70] sm:$0xff]  ;;  %v818_v24 = vld [vmem:[#allocation7 + $0x898] sm:$0xff] }
 0x287   : > { %3203 = vmatprep.mubr.f32.mxu0 %v1268_v52  ;;  %v566_v52 = vld [vmem:[#allocation7 + $0xb8] sm:$0xff] }
 0x289   : > { %2179 = vmatmul.mubr.f32.gmra.mrb[52].mxu1 %v753_v57  ;;  %v817_v57 = vld [vmem:[#allocation7 + $0x890] sm:$0xff] }
 0x28a   : > { %3204 = vmatmul.mubr.f32.gmra.mrb[180].mxu0 %v1267_v13  ;;  %2184 = vmatprep.mubr.f32.mxu1 %v762_v44  ;;  %v565_v13 = vld [vmem:[#allocation7 + $0xb0] sm:$0xff]  ;;  %v826_v44 = vld [vmem:[#allocation7 + $0x8d8] sm:$0xff] }
 0x28b   : > { %3209 = vmatprep.mubr.f32.mxu0 %v1276_v25  ;;  %v574_v25 = vld [vmem:[#allocation7 + $0xf8] sm:$0xff] }
 0x28d   : > { %2185 = vmatmul.mubr.f32.gmra.mrb[54].mxu1 %v761_v0  ;;  %v825_v0 = vld [vmem:[#allocation7 + $0x8d0] sm:$0xff] }
 0x28e   : > { %3210 = vmatmul.mubr.f32.gmra.mrb[182].mxu0 %v1275_v50  ;;  %2190 = vmatprep.mubr.f32.mxu1 %v770_v5  ;;  %v573_v50 = vld [vmem:[#allocation7 + $0xf0] sm:$0xff]  ;;  %v834_v5 = vld [vmem:[#allocation7 + $0x918] sm:$0xff] }
 0x28f   : > { %3215 = vmatprep.mubr.f32.mxu0 %v1284_v8  ;;  %v582_v8 = vld [vmem:[#allocation7 + $0x138] sm:$0xff] }
 0x291   : > { %2191 = vmatmul.mubr.f32.gmra.mrb[56].mxu1 %v769_v9  ;;  %v833_v9 = vld [vmem:[#allocation7 + $0x910] sm:$0xff] }
 0x292   : > { %3216 = vmatmul.mubr.f32.gmra.mrb[184].mxu0 %v1283_v3  ;;  %2196 = vmatprep.mubr.f32.mxu1 %v778_v10  ;;  %v581_v3 = vld [vmem:[#allocation7 + $0x130] sm:$0xff]  ;;  %v842_v10 = vld [vmem:[#allocation7 + $0x958] sm:$0xff] }
 0x293   : > { %3221 = vmatprep.mubr.f32.mxu0 %v1292_v11  ;;  %v590_v11 = vld [vmem:[#allocation7 + $0x178] sm:$0xff] }
 0x295   : > { %2197 = vmatmul.mubr.f32.gmra.mrb[58].mxu1 %v777_v18  ;;  %v841_v18 = vld [vmem:[#allocation7 + $0x950] sm:$0xff] }
 0x296   : > { %3222 = vmatmul.mubr.f32.gmra.mrb[186].mxu0 %v1291_v43  ;;  %2202 = vmatprep.mubr.f32.mxu1 %v786_v20  ;;  %v589_v43 = vld [vmem:[#allocation7 + $0x170] sm:$0xff]  ;;  %v850_v20 = vld [vmem:[#allocation7 + $0x998] sm:$0xff] }
 0x297   : > { %3227 = vmatprep.mubr.f32.mxu0 %v1300_v23  ;;  %v598_v23 = vld [vmem:[#allocation7 + $0x1b8] sm:$0xff] }
 0x299   : > { %2203 = vmatmul.mubr.f32.gmra.mrb[60].mxu1 %v785_v47  ;;  %v849_v47 = vld [vmem:[#allocation7 + $0x990] sm:$0xff] }
 0x29a   : > { %3228 = vmatmul.mubr.f32.gmra.mrb[188].mxu0 %v1299_v7  ;;  %2208 = vmatprep.mubr.f32.mxu1 %v794_v26  ;;  %v597_v7 = vld [vmem:[#allocation7 + $0x1b0] sm:$0xff]  ;;  %v858_v26 = vld [vmem:[#allocation7 + $0x9d8] sm:$0xff] }
 0x29b   : > { %3233 = vmatprep.mubr.f32.mxu0 %v1308_v28  ;;  %v606_v28 = vld [vmem:[#allocation7 + $0x1f8] sm:$0xff] }
 0x29d   : > { %2209 = vmatmul.mubr.f32.gmra.mrb[62].mxu1 %v793_v29  ;;  %v857_v29 = vld [vmem:[#allocation7 + $0x9d0] sm:$0xff] }
 0x29e   : > { %3234 = vmatmul.mubr.f32.gmra.mrb[190].mxu0 %v1307_v31  ;;  %2214 = vmatprep.mubr.f32.mxu1 %v802_v37  ;;  %v605_v31 = vld [vmem:[#allocation7 + $0x1f0] sm:$0xff]  ;;  %v866_v37 = vld [vmem:[#allocation7 + $0xa18] sm:$0xff] }
 0x29f   : > { %3304 = vmatprep.mubr.f32.mxu0 %v550_v39  ;;  %v614_v39 = vld [vmem:[#allocation7 + $0x238] sm:$0xff] }
 0x2a1   : > { %2215 = vmatmul.mubr.f32.gmra.mrb[64].mxu1 %v801_v40  ;;  %v865_v40 = vld [vmem:[#allocation7 + $0xa10] sm:$0xff] }
 0x2a2   : > { %3305 = vmatmul.mubr.f32.vlgmr.msra.gmra.mrb[0].mxu0 %v549_v53  ;;  %2220 = vmatprep.mubr.f32.mxu1 %v810_v63  ;;  %v613_v53 = vld [vmem:[#allocation7 + $0x230] sm:$0xff]  ;;  %v874_v63 = vld [vmem:[#allocation7 + $0xa58] sm:$0xff] }
 0x2a3   : > { %3310 = vmatprep.mubr.f32.mxu0 %v558_v12  ;;  %v622_v12 = vld [vmem:[#allocation7 + $0x278] sm:$0xff] }
 0x2a5   : > { %2221 = vmatmul.mubr.f32.gmra.mrb[66].mxu1 %v809_v4  ;;  %v873_v4 = vld [vmem:[#allocation7 + $0xa50] sm:$0xff] }
 0x2a6   : > { %3311 = vmatmul.mubr.f32.gmra.mrb[2].mxu0 %v557_v48  ;;  %2226 = vmatprep.mubr.f32.mxu1 %v818_v24  ;;  %v621_v48 = vld [vmem:[#allocation7 + $0x270] sm:$0xff]  ;;  %v882_v24 = vld [vmem:[#allocation7 + $0xa98] sm:$0xff] }
 0x2a7   : > { %3316 = vmatprep.mubr.f32.mxu0 %v566_v52  ;;  %v630_v52 = vld [vmem:[#allocation7 + $0x2b8] sm:$0xff] }
 0x2a9   : > { %2227 = vmatmul.mubr.f32.gmra.mrb[68].mxu1 %v817_v57  ;;  %v881_v57 = vld [vmem:[#allocation7 + $0xa90] sm:$0xff] }
 0x2aa   : > { %3317 = vmatmul.mubr.f32.gmra.mrb[4].mxu0 %v565_v13  ;;  %2232 = vmatprep.mubr.f32.mxu1 %v826_v44  ;;  %v629_v13 = vld [vmem:[#allocation7 + $0x2b0] sm:$0xff]  ;;  %v890_v44 = vld [vmem:[#allocation7 + $0xad8] sm:$0xff] }
 0x2ab   : > { %3322 = vmatprep.mubr.f32.mxu0 %v574_v25  ;;  %v638_v25 = vld [vmem:[#allocation7 + $0x2f8] sm:$0xff] }
 0x2ad   : > { %2233 = vmatmul.mubr.f32.gmra.mrb[70].mxu1 %v825_v0  ;;  %v889_v0 = vld [vmem:[#allocation7 + $0xad0] sm:$0xff] }
 0x2ae   : > { %3323 = vmatmul.mubr.f32.gmra.mrb[6].mxu0 %v573_v50  ;;  %2238 = vmatprep.mubr.f32.mxu1 %v834_v5  ;;  %v637_v50 = vld [vmem:[#allocation7 + $0x2f0] sm:$0xff]  ;;  %v898_v5 = vld [vmem:[#allocation7 + $0xb18] sm:$0xff] }
 0x2af   : > { %3328 = vmatprep.mubr.f32.mxu0 %v582_v8  ;;  %v646_v8 = vld [vmem:[#allocation7 + $0x338] sm:$0xff] }
 0x2b1   : > { %2239 = vmatmul.mubr.f32.gmra.mrb[72].mxu1 %v833_v9  ;;  %v897_v9 = vld [vmem:[#allocation7 + $0xb10] sm:$0xff] }
 0x2b2   : > { %3329 = vmatmul.mubr.f32.gmra.mrb[8].mxu0 %v581_v3  ;;  %2244 = vmatprep.mubr.f32.mxu1 %v842_v10  ;;  %v645_v3 = vld [vmem:[#allocation7 + $0x330] sm:$0xff]  ;;  %v906_v10 = vld [vmem:[#allocation7 + $0xb58] sm:$0xff] }
 0x2b3   : > { %3334 = vmatprep.mubr.f32.mxu0 %v590_v11  ;;  %v654_v11 = vld [vmem:[#allocation7 + $0x378] sm:$0xff] }
 0x2b5   : > { %2245 = vmatmul.mubr.f32.gmra.mrb[74].mxu1 %v841_v18  ;;  %v905_v18 = vld [vmem:[#allocation7 + $0xb50] sm:$0xff] }
 0x2b6   : > { %3335 = vmatmul.mubr.f32.gmra.mrb[10].mxu0 %v589_v43  ;;  %2250 = vmatprep.mubr.f32.mxu1 %v850_v20  ;;  %v653_v43 = vld [vmem:[#allocation7 + $0x370] sm:$0xff]  ;;  %v914_v20 = vld [vmem:[#allocation7 + $0xb98] sm:$0xff] }
 0x2b7   : > { %3340 = vmatprep.mubr.f32.mxu0 %v598_v23  ;;  %v662_v23 = vld [vmem:[#allocation7 + $0x3b8] sm:$0xff] }
 0x2b9   : > { %2251 = vmatmul.mubr.f32.gmra.mrb[76].mxu1 %v849_v47  ;;  %v913_v47 = vld [vmem:[#allocation7 + $0xb90] sm:$0xff] }
 0x2ba   : > { %3341 = vmatmul.mubr.f32.gmra.mrb[12].mxu0 %v597_v7  ;;  %2256 = vmatprep.mubr.f32.mxu1 %v858_v26  ;;  %v661_v7 = vld [vmem:[#allocation7 + $0x3b0] sm:$0xff]  ;;  %v922_v26 = vld [vmem:[#allocation7 + $0xbd8] sm:$0xff] }
 0x2bb   : > { %3346 = vmatprep.mubr.f32.mxu0 %v606_v28  ;;  %v670_v28 = vld [vmem:[#allocation7 + $0x3f8] sm:$0xff] }
 0x2bd   : > { %2257 = vmatmul.mubr.f32.gmra.mrb[78].mxu1 %v857_v29  ;;  %v921_v29 = vld [vmem:[#allocation7 + $0xbd0] sm:$0xff] }
 0x2be   : > { %3347 = vmatmul.mubr.f32.gmra.mrb[14].mxu0 %v605_v31  ;;  %2262 = vmatprep.mubr.f32.mxu1 %v866_v37  ;;  %v669_v31 = vld [vmem:[#allocation7 + $0x3f0] sm:$0xff]  ;;  %v930_v37 = vld [vmem:[#allocation7 + $0xc18] sm:$0xff] }
 0x2bf   : > { %3352 = vmatprep.mubr.f32.mxu0 %v614_v39  ;;  %v678_v39 = vld [vmem:[#allocation7 + $0x438] sm:$0xff] }
 0x2c1   : > { %2263 = vmatmul.mubr.f32.gmra.mrb[80].mxu1 %v865_v40  ;;  %v929_v40 = vld [vmem:[#allocation7 + $0xc10] sm:$0xff] }
 0x2c2   : > { %3353 = vmatmul.mubr.f32.gmra.mrb[16].mxu0 %v613_v53  ;;  %2268 = vmatprep.mubr.f32.mxu1 %v874_v63  ;;  %v677_v53 = vld [vmem:[#allocation7 + $0x430] sm:$0xff]  ;;  %v938_v63 = vld [vmem:[#allocation7 + $0xc58] sm:$0xff] }
 0x2c3   : > { %3358 = vmatprep.mubr.f32.mxu0 %v622_v12  ;;  %v686_v12 = vld [vmem:[#allocation7 + $0x478] sm:$0xff] }
 0x2c5   : > { %2269 = vmatmul.mubr.f32.gmra.mrb[82].mxu1 %v873_v4  ;;  %v937_v4 = vld [vmem:[#allocation7 + $0xc50] sm:$0xff] }
 0x2c6   : > { %3359 = vmatmul.mubr.f32.gmra.mrb[18].mxu0 %v621_v48  ;;  %2274 = vmatprep.mubr.f32.mxu1 %v882_v24  ;;  %v685_v48 = vld [vmem:[#allocation7 + $0x470] sm:$0xff]  ;;  %v946_v24 = vld [vmem:[#allocation7 + $0xc98] sm:$0xff] }
 0x2c7   : > { %3364 = vmatprep.mubr.f32.mxu0 %v630_v52  ;;  %v694_v52 = vld [vmem:[#allocation7 + $0x4b8] sm:$0xff] }
 0x2c9   : > { %2275 = vmatmul.mubr.f32.gmra.mrb[84].mxu1 %v881_v57  ;;  %v945_v57 = vld [vmem:[#allocation7 + $0xc90] sm:$0xff] }
 0x2ca   : > { %3365 = vmatmul.mubr.f32.gmra.mrb[20].mxu0 %v629_v13  ;;  %2280 = vmatprep.mubr.f32.mxu1 %v890_v44  ;;  %v693_v13 = vld [vmem:[#allocation7 + $0x4b0] sm:$0xff]  ;;  %v954_v44 = vld [vmem:[#allocation7 + $0xcd8] sm:$0xff] }
 0x2cb   : > { %3370 = vmatprep.mubr.f32.mxu0 %v638_v25  ;;  %v702_v25 = vld [vmem:[#allocation7 + $0x4f8] sm:$0xff] }
 0x2cd   : > { %2281 = vmatmul.mubr.f32.gmra.mrb[86].mxu1 %v889_v0  ;;  %v953_v0 = vld [vmem:[#allocation7 + $0xcd0] sm:$0xff] }
 0x2ce   : > { %3371 = vmatmul.mubr.f32.gmra.mrb[22].mxu0 %v637_v50  ;;  %2286 = vmatprep.mubr.f32.mxu1 %v898_v5  ;;  %v701_v50 = vld [vmem:[#allocation7 + $0x4f0] sm:$0xff]  ;;  %v962_v5 = vld [vmem:[#allocation7 + $0xd18] sm:$0xff] }
 0x2cf   : > { %3376 = vmatprep.mubr.f32.mxu0 %v646_v8  ;;  %v710_v8 = vld [vmem:[#allocation7 + $0x538] sm:$0xff] }
 0x2d1   : > { %2287 = vmatmul.mubr.f32.gmra.mrb[88].mxu1 %v897_v9  ;;  %v961_v9 = vld [vmem:[#allocation7 + $0xd10] sm:$0xff] }
 0x2d2   : > { %3377 = vmatmul.mubr.f32.gmra.mrb[24].mxu0 %v645_v3  ;;  %2292 = vmatprep.mubr.f32.mxu1 %v906_v10  ;;  %v709_v3 = vld [vmem:[#allocation7 + $0x530] sm:$0xff]  ;;  %v970_v10 = vld [vmem:[#allocation7 + $0xd58] sm:$0xff] }
 0x2d3   : > { %3382 = vmatprep.mubr.f32.mxu0 %v654_v11  ;;  %v718_v11 = vld [vmem:[#allocation7 + $0x578] sm:$0xff] }
 0x2d5   : > { %2293 = vmatmul.mubr.f32.gmra.mrb[90].mxu1 %v905_v18  ;;  %v969_v18 = vld [vmem:[#allocation7 + $0xd50] sm:$0xff] }
 0x2d6   : > { %3383 = vmatmul.mubr.f32.gmra.mrb[26].mxu0 %v653_v43  ;;  %2298 = vmatprep.mubr.f32.mxu1 %v914_v20  ;;  %v717_v43 = vld [vmem:[#allocation7 + $0x570] sm:$0xff]  ;;  %v978_v20 = vld [vmem:[#allocation7 + $0xd98] sm:$0xff] }
 0x2d7   : > { %3388 = vmatprep.mubr.f32.mxu0 %v662_v23  ;;  %v726_v23 = vld [vmem:[#allocation7 + $0x5b8] sm:$0xff] }
 0x2d9   : > { %2299 = vmatmul.mubr.f32.gmra.mrb[92].mxu1 %v913_v47  ;;  %v977_v47 = vld [vmem:[#allocation7 + $0xd90] sm:$0xff] }
 0x2da   : > { %3389 = vmatmul.mubr.f32.gmra.mrb[28].mxu0 %v661_v7  ;;  %2304 = vmatprep.mubr.f32.mxu1 %v922_v26  ;;  %v725_v7 = vld [vmem:[#allocation7 + $0x5b0] sm:$0xff]  ;;  %v986_v26 = vld [vmem:[#allocation7 + $0xdd8] sm:$0xff] }
 0x2db   : > { %3394 = vmatprep.mubr.f32.mxu0 %v670_v28  ;;  %v734_v28 = vld [vmem:[#allocation7 + $0x5f8] sm:$0xff] }
 0x2dd   : > { %2305 = vmatmul.mubr.f32.gmra.mrb[94].mxu1 %v921_v29  ;;  %v985_v29 = vld [vmem:[#allocation7 + $0xdd0] sm:$0xff] }
 0x2de   : > { %3395 = vmatmul.mubr.f32.gmra.mrb[30].mxu0 %v669_v31  ;;  %2310 = vmatprep.mubr.f32.mxu1 %v930_v37  ;;  %v733_v31 = vld [vmem:[#allocation7 + $0x5f0] sm:$0xff]  ;;  %v994_v37 = vld [vmem:[#allocation7 + $0xe18] sm:$0xff] }
 0x2df   : > { %3400 = vmatprep.mubr.f32.mxu0 %v678_v39  ;;  %v742_v39 = vld [vmem:[#allocation7 + $0x638] sm:$0xff] }
 0x2e1   : > { %2311 = vmatmul.mubr.f32.gmra.mrb[96].mxu1 %v929_v40  ;;  %v993_v40 = vld [vmem:[#allocation7 + $0xe10] sm:$0xff] }
 0x2e2   : > { %3401 = vmatmul.mubr.f32.gmra.mrb[32].mxu0 %v677_v53  ;;  %2316 = vmatprep.mubr.f32.mxu1 %v938_v63  ;;  %v741_v53 = vld [vmem:[#allocation7 + $0x630] sm:$0xff]  ;;  %v1002_v63 = vld [vmem:[#allocation7 + $0xe58] sm:$0xff] }
 0x2e3   : > { %3406 = vmatprep.mubr.f32.mxu0 %v686_v12  ;;  %v750_v12 = vld [vmem:[#allocation7 + $0x678] sm:$0xff] }
 0x2e5   : > { %2317 = vmatmul.mubr.f32.gmra.mrb[98].mxu1 %v937_v4  ;;  %v1001_v4 = vld [vmem:[#allocation7 + $0xe50] sm:$0xff] }
 0x2e6   : > { %3407 = vmatmul.mubr.f32.gmra.mrb[34].mxu0 %v685_v48  ;;  %2322 = vmatprep.mubr.f32.mxu1 %v946_v24  ;;  %v749_v48 = vld [vmem:[#allocation7 + $0x670] sm:$0xff]  ;;  %v1010_v24 = vld [vmem:[#allocation7 + $0xe98] sm:$0xff] }
 0x2e7   : > { %3412 = vmatprep.mubr.f32.mxu0 %v694_v52  ;;  %v758_v52 = vld [vmem:[#allocation7 + $0x6b8] sm:$0xff] }
 0x2e9   : > { %2323 = vmatmul.mubr.f32.gmra.mrb[100].mxu1 %v945_v57  ;;  %v1009_v57 = vld [vmem:[#allocation7 + $0xe90] sm:$0xff] }
 0x2ea   : > { %3413 = vmatmul.mubr.f32.gmra.mrb[36].mxu0 %v693_v13  ;;  %2328 = vmatprep.mubr.f32.mxu1 %v954_v44  ;;  %v757_v13 = vld [vmem:[#allocation7 + $0x6b0] sm:$0xff]  ;;  %v1018_v44 = vld [vmem:[#allocation7 + $0xed8] sm:$0xff] }
 0x2eb   : > { %3418 = vmatprep.mubr.f32.mxu0 %v702_v25  ;;  %v766_v25 = vld [vmem:[#allocation7 + $0x6f8] sm:$0xff] }
 0x2ed   : > { %2329 = vmatmul.mubr.f32.gmra.mrb[102].mxu1 %v953_v0  ;;  %v1017_v0 = vld [vmem:[#allocation7 + $0xed0] sm:$0xff] }
 0x2ee   : > { %3419 = vmatmul.mubr.f32.gmra.mrb[38].mxu0 %v701_v50  ;;  %2334 = vmatprep.mubr.f32.mxu1 %v962_v5  ;;  %v765_v50 = vld [vmem:[#allocation7 + $0x6f0] sm:$0xff]  ;;  %v1026_v5 = vld [vmem:[#allocation7 + $0xf18] sm:$0xff] }
 0x2ef   : > { %3424 = vmatprep.mubr.f32.mxu0 %v710_v8  ;;  %v774_v8 = vld [vmem:[#allocation7 + $0x738] sm:$0xff] }
 0x2f1   : > { %2335 = vmatmul.mubr.f32.gmra.mrb[104].mxu1 %v961_v9  ;;  %v1025_v9 = vld [vmem:[#allocation7 + $0xf10] sm:$0xff] }
 0x2f2   : > { %3425 = vmatmul.mubr.f32.gmra.mrb[40].mxu0 %v709_v3  ;;  %2340 = vmatprep.mubr.f32.mxu1 %v970_v10  ;;  %v773_v3 = vld [vmem:[#allocation7 + $0x730] sm:$0xff]  ;;  %v1034_v10 = vld [vmem:[#allocation7 + $0xf58] sm:$0xff] }
 0x2f3   : > { %3430 = vmatprep.mubr.f32.mxu0 %v718_v11  ;;  %v782_v11 = vld [vmem:[#allocation7 + $0x778] sm:$0xff] }
 0x2f5   : > { %2341 = vmatmul.mubr.f32.gmra.mrb[106].mxu1 %v969_v18  ;;  %v1033_v18 = vld [vmem:[#allocation7 + $0xf50] sm:$0xff] }
 0x2f6   : > { %3431 = vmatmul.mubr.f32.gmra.mrb[42].mxu0 %v717_v43  ;;  %2346 = vmatprep.mubr.f32.mxu1 %v978_v20  ;;  %v781_v43 = vld [vmem:[#allocation7 + $0x770] sm:$0xff]  ;;  %v1042_v20 = vld [vmem:[#allocation7 + $0xf98] sm:$0xff] }
 0x2f7   : > { %3436 = vmatprep.mubr.f32.mxu0 %v726_v23  ;;  %v790_v23 = vld [vmem:[#allocation7 + $0x7b8] sm:$0xff] }
 0x2f9   : > { %2347 = vmatmul.mubr.f32.gmra.mrb[108].mxu1 %v977_v47  ;;  %v1041_v47 = vld [vmem:[#allocation7 + $0xf90] sm:$0xff] }
 0x2fa   : > { %3437 = vmatmul.mubr.f32.gmra.mrb[44].mxu0 %v725_v7  ;;  %2352 = vmatprep.mubr.f32.mxu1 %v986_v26  ;;  %v789_v7 = vld [vmem:[#allocation7 + $0x7b0] sm:$0xff]  ;;  %v1050_v26 = vld [vmem:[#allocation7 + $0xfd8] sm:$0xff] }
 0x2fb   : > { %3442 = vmatprep.mubr.f32.mxu0 %v734_v28  ;;  %v798_v28 = vld [vmem:[#allocation7 + $0x7f8] sm:$0xff] }
 0x2fd   : > { %2353 = vmatmul.mubr.f32.gmra.mrb[110].mxu1 %v985_v29  ;;  %v1049_v29 = vld [vmem:[#allocation7 + $0xfd0] sm:$0xff] }
 0x2fe   : > { %3443 = vmatmul.mubr.f32.gmra.mrb[46].mxu0 %v733_v31  ;;  %2358 = vmatprep.mubr.f32.mxu1 %v994_v37  ;;  %v797_v31 = vld [vmem:[#allocation7 + $0x7f0] sm:$0xff]  ;;  %v1058_v37 = vld [vmem:[#allocation7 + $0x1018] sm:$0xff] }
 0x2ff   : > { %3448 = vmatprep.mubr.f32.mxu0 %v742_v39  ;;  %v806_v39 = vld [vmem:[#allocation7 + $0x838] sm:$0xff] }
 0x301   : > { %2359 = vmatmul.mubr.f32.gmra.mrb[112].mxu1 %v993_v40  ;;  %v1057_v40 = vld [vmem:[#allocation7 + $0x1010] sm:$0xff] }
 0x302   : > { %3449 = vmatmul.mubr.f32.gmra.mrb[48].mxu0 %v741_v53  ;;  %2364 = vmatprep.mubr.f32.mxu1 %v1002_v63  ;;  %v805_v53 = vld [vmem:[#allocation7 + $0x830] sm:$0xff]  ;;  %v1066_v63 = vld [vmem:[#allocation7 + $0x1058] sm:$0xff] }
 0x303   : > { %3454 = vmatprep.mubr.f32.mxu0 %v750_v12  ;;  %v814_v12 = vld [vmem:[#allocation7 + $0x878] sm:$0xff] }
 0x305   : > { %2365 = vmatmul.mubr.f32.gmra.mrb[114].mxu1 %v1001_v4  ;;  %v1065_v4 = vld [vmem:[#allocation7 + $0x1050] sm:$0xff] }
 0x306   : > { %3455 = vmatmul.mubr.f32.gmra.mrb[50].mxu0 %v749_v48  ;;  %2370 = vmatprep.mubr.f32.mxu1 %v1010_v24  ;;  %v813_v48 = vld [vmem:[#allocation7 + $0x870] sm:$0xff]  ;;  %v1074_v24 = vld [vmem:[#allocation7 + $0x1098] sm:$0xff] }
 0x307   : > { %3460 = vmatprep.mubr.f32.mxu0 %v758_v52  ;;  %v822_v52 = vld [vmem:[#allocation7 + $0x8b8] sm:$0xff] }
 0x309   : > { %2371 = vmatmul.mubr.f32.gmra.mrb[116].mxu1 %v1009_v57  ;;  %v1073_v57 = vld [vmem:[#allocation7 + $0x1090] sm:$0xff] }
 0x30a   : > { %3461 = vmatmul.mubr.f32.gmra.mrb[52].mxu0 %v757_v13  ;;  %2376 = vmatprep.mubr.f32.mxu1 %v1018_v44  ;;  %v821_v13 = vld [vmem:[#allocation7 + $0x8b0] sm:$0xff]  ;;  %v1082_v44 = vld [vmem:[#allocation7 + $0x10d8] sm:$0xff] }
 0x30b   : > { %3466 = vmatprep.mubr.f32.mxu0 %v766_v25  ;;  %v830_v25 = vld [vmem:[#allocation7 + $0x8f8] sm:$0xff] }
 0x30d   : > { %2377 = vmatmul.mubr.f32.gmra.mrb[118].mxu1 %v1017_v0  ;;  %v1081_v0 = vld [vmem:[#allocation7 + $0x10d0] sm:$0xff] }
 0x30e   : > { %3467 = vmatmul.mubr.f32.gmra.mrb[54].mxu0 %v765_v50  ;;  %2382 = vmatprep.mubr.f32.mxu1 %v1026_v5  ;;  %v829_v50 = vld [vmem:[#allocation7 + $0x8f0] sm:$0xff]  ;;  %v1090_v5 = vld [vmem:[#allocation7 + $0x1118] sm:$0xff] }
 0x30f   : > { %3472 = vmatprep.mubr.f32.mxu0 %v774_v8  ;;  %v838_v8 = vld [vmem:[#allocation7 + $0x938] sm:$0xff] }
 0x311   : > { %2383 = vmatmul.mubr.f32.gmra.mrb[120].mxu1 %v1025_v9  ;;  %v1089_v9 = vld [vmem:[#allocation7 + $0x1110] sm:$0xff] }
 0x312   : > { %3473 = vmatmul.mubr.f32.gmra.mrb[56].mxu0 %v773_v3  ;;  %2388 = vmatprep.mubr.f32.mxu1 %v1034_v10  ;;  %v837_v3 = vld [vmem:[#allocation7 + $0x930] sm:$0xff]  ;;  %v1098_v10 = vld [vmem:[#allocation7 + $0x1158] sm:$0xff] }
 0x313   : > { %3478 = vmatprep.mubr.f32.mxu0 %v782_v11  ;;  %v846_v11 = vld [vmem:[#allocation7 + $0x978] sm:$0xff] }
 0x315   : > { %2389 = vmatmul.mubr.f32.gmra.mrb[122].mxu1 %v1033_v18  ;;  %v1097_v18 = vld [vmem:[#allocation7 + $0x1150] sm:$0xff] }
 0x316   : > { %3479 = vmatmul.mubr.f32.gmra.mrb[58].mxu0 %v781_v43  ;;  %2394 = vmatprep.mubr.f32.mxu1 %v1042_v20  ;;  %v845_v43 = vld [vmem:[#allocation7 + $0x970] sm:$0xff]  ;;  %v1106_v20 = vld [vmem:[#allocation7 + $0x1198] sm:$0xff] }
 0x317   : > { %3484 = vmatprep.mubr.f32.mxu0 %v790_v23 }
 0x319   : > { %2395 = vmatmul.mubr.f32.gmra.mrb[124].mxu1 %v1041_v47  ;;  %v854_v47 = vld [vmem:[#allocation7 + $0x9b8] sm:$0xff] }
 0x31a   : > { %3485 = vmatmul.mubr.f32.gmra.mrb[60].mxu0 %v789_v7  ;;  %2400 = vmatprep.mubr.f32.mxu1 %v1050_v26  ;;  %v1105_v26 = vld [vmem:[#allocation7 + $0x1190] sm:$0xff] }
 0x31b   : > { %3490 = vmatprep.mubr.f32.mxu0 %v798_v28  ;;  %v853_v28 = vld [vmem:[#allocation7 + $0x9b0] sm:$0xff] }
 0x31d   : > { %2401 = vmatmul.mubr.f32.gmra.mrb[126].mxu1 %v1049_v29  ;;  %v1114_v29 = vld [vmem:[#allocation7 + $0x11d8] sm:$0xff] }
 0x31e   : > { %3491 = vmatmul.mubr.f32.gmra.mrb[62].mxu0 %v797_v31  ;;  %2406 = vmatprep.mubr.f32.mxu1 %v1058_v37  ;;  %v862_v37 = vld [vmem:[#allocation7 + $0x9f8] sm:$0xff] }
 0x31f   : > { %3496 = vmatprep.mubr.f32.mxu0 %v806_v39 }
 0x321   : > { %2407 = vmatmul.mubr.f32.gmra.mrb[128].mxu1 %v1057_v40  ;;  %v1113_v40 = vld [vmem:[#allocation7 + $0x11d0] sm:$0xff] }
 0x322   : > { %3497 = vmatmul.mubr.f32.gmra.mrb[64].mxu0 %v805_v53  ;;  %2412 = vmatprep.mubr.f32.mxu1 %v1066_v63  ;;  %v861_v53 = vld [vmem:[#allocation7 + $0x9f0] sm:$0xff]  ;;  %v1122_v63 = vld [vmem:[#allocation7 + $0x1218] sm:$0xff] }
 0x323   : > { %3502 = vmatprep.mubr.f32.mxu0 %v814_v12 }
 0x325   : > { %2413 = vmatmul.mubr.f32.gmra.mrb[130].mxu1 %v1065_v4  ;;  %v870_v4 = vld [vmem:[#allocation7 + $0xa38] sm:$0xff] }
 0x326   : > { %3503 = vmatmul.mubr.f32.gmra.mrb[66].mxu0 %v813_v48  ;;  %2418 = vmatprep.mubr.f32.mxu1 %v1074_v24  ;;  %v1121_v24 = vld [vmem:[#allocation7 + $0x1210] sm:$0xff] }
 0x327   : > { %3508 = vmatprep.mubr.f32.mxu0 %v822_v52  ;;  %v869_v52 = vld [vmem:[#allocation7 + $0xa30] sm:$0xff] }
 0x329   : > { %2419 = vmatmul.mubr.f32.gmra.mrb[132].mxu1 %v1073_v57  ;;  %v1130_v57 = vld [vmem:[#allocation7 + $0x1258] sm:$0xff] }
 0x32a   : > { %3509 = vmatmul.mubr.f32.gmra.mrb[68].mxu0 %v821_v13  ;;  %2424 = vmatprep.mubr.f32.mxu1 %v1082_v44  ;;  %v878_v44 = vld [vmem:[#allocation7 + $0xa78] sm:$0xff] }
 0x32b   : > { %3514 = vmatprep.mubr.f32.mxu0 %v830_v25 }
 0x32d   : > { %2425 = vmatmul.mubr.f32.gmra.mrb[134].mxu1 %v1081_v0  ;;  %v1129_v0 = vld [vmem:[#allocation7 + $0x1250] sm:$0xff] }
 0x32e   : > { %3515 = vmatmul.mubr.f32.gmra.mrb[70].mxu0 %v829_v50  ;;  %2430 = vmatprep.mubr.f32.mxu1 %v1090_v5  ;;  %v877_v50 = vld [vmem:[#allocation7 + $0xa70] sm:$0xff]  ;;  %v1138_v5 = vld [vmem:[#allocation7 + $0x1298] sm:$0xff] }
 0x32f   : > { %3520 = vmatprep.mubr.f32.mxu0 %v838_v8 }
 0x331   : > { %2431 = vmatmul.mubr.f32.gmra.mrb[136].mxu1 %v1089_v9  ;;  %v886_v9 = vld [vmem:[#allocation7 + $0xab8] sm:$0xff] }
 0x332   : > { %3521 = vmatmul.mubr.f32.gmra.mrb[72].mxu0 %v837_v3  ;;  %2436 = vmatprep.mubr.f32.mxu1 %v1098_v10  ;;  %v1137_v10 = vld [vmem:[#allocation7 + $0x1290] sm:$0xff] }
 0x333   : > { %3526 = vmatprep.mubr.f32.mxu0 %v846_v11  ;;  %v885_v11 = vld [vmem:[#allocation7 + $0xab0] sm:$0xff] }
 0x334   : > { %v6451_v23 = vpop.f32.mrb[32].mxu1 }
 0x335   : > { %v6453_v7 = vpop.f32.mrb[33].mxu1  ;;  %2437 = vmatmul.mubr.f32.gmra.mrb[138].mxu1 %v1097_v18  ;;  %v1146_v18 = vld [vmem:[#allocation7 + $0x12d8] sm:$0xff] }
 0x336   : > { %3527 = vmatmul.mubr.f32.gmra.mrb[74].mxu0 %v845_v43  ;;  %2442 = vmatprep.mubr.f32.mxu1 %v1106_v20  ;;  %v894_v20 = vld [vmem:[#allocation7 + $0xaf8] sm:$0xff] }
 0x337   : > { %3532 = vmatprep.mubr.f32.mxu0 %v854_v47 }
 0x338   : > { %v6455_v31 = vpop.f32.mrb[34].mxu1 }
 0x339   : > { %v6457_v39 = vpop.f32.mrb[35].mxu1  ;;  %2443 = vmatmul.mubr.f32.gmra.mrb[140].mxu1 %v1105_v26  ;;  %v1145_v26 = vld [vmem:[#allocation7 + $0x12d0] sm:$0xff] }
 0x33a   : > { %3533 = vmatmul.mubr.f32.gmra.mrb[76].mxu0 %v853_v28  ;;  %2448 = vmatprep.mubr.f32.mxu1 %v1114_v29  ;;  %v893_v28 = vld [vmem:[#allocation7 + $0xaf0] sm:$0xff]  ;;  %v1154_v29 = vld [vmem:[#allocation7 + $0x1318] sm:$0xff] }
 0x33b   : > { %3538 = vmatprep.mubr.f32.mxu0 %v862_v37 }
 0x33c   : > { %v6459_v12 = vpop.f32.mrb[36].mxu1 }
 0x33d   : > { %v6461_v48 = vpop.f32.mrb[37].mxu1  ;;  %2449 = vmatmul.mubr.f32.gmra.mrb[142].mxu1 %v1113_v40  ;;  %v902_v40 = vld [vmem:[#allocation7 + $0xb38] sm:$0xff] }
 0x33e   : > { %3539 = vmatmul.mubr.f32.gmra.mrb[78].mxu0 %v861_v53  ;;  %2454 = vmatprep.mubr.f32.mxu1 %v1122_v63  ;;  %v1153_v63 = vld [vmem:[#allocation7 + $0x1310] sm:$0xff] }
 0x33f   : > { %3544 = vmatprep.mubr.f32.mxu0 %v870_v4  ;;  %v901_v4 = vld [vmem:[#allocation7 + $0xb30] sm:$0xff] }
 0x340   : > { %v6463_v13 = vpop.f32.mrb[38].mxu1 }
 0x341   : > { %v6465_v25 = vpop.f32.mrb[39].mxu1  ;;  %2455 = vmatmul.mubr.f32.gmra.mrb[144].mxu1 %v1121_v24  ;;  %v1162_v24 = vld [vmem:[#allocation7 + $0x1358] sm:$0xff] }
 0x342   : > { %3545 = vmatmul.mubr.f32.gmra.mrb[80].mxu0 %v869_v52  ;;  %2460 = vmatprep.mubr.f32.mxu1 %v1130_v57  ;;  %v910_v57 = vld [vmem:[#allocation7 + $0xb78] sm:$0xff] }
 0x343   : > { %3550 = vmatprep.mubr.f32.mxu0 %v878_v44 }
 0x344   : > { %v6467_v8 = vpop.f32.mrb[40].mxu1 }
 0x345   : > { %v6469_v3 = vpop.f32.mrb[41].mxu1  ;;  %2461 = vmatmul.mubr.f32.gmra.mrb[146].mxu1 %v1129_v0  ;;  %v1161_v0 = vld [vmem:[#allocation7 + $0x1350] sm:$0xff] }
 0x346   : > { %3551 = vmatmul.mubr.f32.gmra.mrb[82].mxu0 %v877_v50  ;;  %2466 = vmatprep.mubr.f32.mxu1 %v1138_v5  ;;  %v909_v50 = vld [vmem:[#allocation7 + $0xb70] sm:$0xff]  ;;  %v1170_v5 = vld [vmem:[#allocation7 + $0x1398] sm:$0xff] }
 0x347   : > { %3556 = vmatprep.mubr.f32.mxu0 %v886_v9 }
 0x348   : > { %v6471_v43 = vpop.f32.mrb[42].mxu1 }
 0x349   : > { %v6473_v47 = vpop.f32.mrb[43].mxu1  ;;  %2467 = vmatmul.mubr.f32.gmra.mrb[148].mxu1 %v1137_v10  ;;  %v918_v10 = vld [vmem:[#allocation7 + $0xbb8] sm:$0xff] }
 0x34a   : > { %3557 = vmatmul.mubr.f32.gmra.mrb[84].mxu0 %v885_v11  ;;  %2472 = vmatprep.mubr.f32.mxu1 %v1146_v18  ;;  %v1169_v18 = vld [vmem:[#allocation7 + $0x1390] sm:$0xff] }
 0x34b   : > { %3562 = vmatprep.mubr.f32.mxu0 %v894_v20  ;;  %v917_v20 = vld [vmem:[#allocation7 + $0xbb0] sm:$0xff] }
 0x34c   : > { %v6475_v37 = vpop.f32.mrb[44].mxu1 }
 0x34d   : > { %v6477_v53 = vpop.f32.mrb[45].mxu1  ;;  %2473 = vmatmul.mubr.f32.gmra.mrb[150].mxu1 %v1145_v26  ;;  %v1178_v26 = vld [vmem:[#allocation7 + $0x13d8] sm:$0xff] }
 0x34e   : > { %3563 = vmatmul.mubr.f32.gmra.mrb[86].mxu0 %v893_v28  ;;  %2478 = vmatprep.mubr.f32.mxu1 %v1154_v29  ;;  %v926_v29 = vld [vmem:[#allocation7 + $0xbf8] sm:$0xff] }
 0x34f   : > { %3568 = vmatprep.mubr.f32.mxu0 %v902_v40 }
 0x350   : > { %v6479_v52 = vpop.f32.mrb[46].mxu1 }
 0x351   : > { %7073 = vst [vmem:[#allocation19_spill] sm:$0xff] %v6479_v52  ;;  %v6481_v44 = vpop.f32.mrb[47].mxu1  ;;  %2479 = vmatmul.mubr.f32.gmra.mrb[152].mxu1 %v1153_v63  ;;  %v1177_v63 = vld [vmem:[#allocation7 + $0x13d0] sm:$0xff] }
 0x352   : > { %7074 = vst [vmem:[#allocation20_spill] sm:$0xff] %v6481_v44  ;;  %3569 = vmatmul.mubr.f32.gmra.mrb[88].mxu0 %v901_v4  ;;  %2484 = vmatprep.mubr.f32.mxu1 %v1162_v24  ;;  %v925_v4 = vld [vmem:[#allocation7 + $0xbf0] sm:$0xff]  ;;  %v1186_v24 = vld [vmem:[#allocation7 + $0x1418] sm:$0xff] }
 0x353   : > { %3574 = vmatprep.mubr.f32.mxu0 %v910_v57 }
 0x354   : > { %v6483_v9 = vpop.f32.mrb[48].mxu1 }
 0x355   : > { %7075 = vst [vmem:[#allocation21_spill] sm:$0xff] %v6483_v9  ;;  %v6485_v11 = vpop.f32.mrb[49].mxu1  ;;  %2485 = vmatmul.mubr.f32.gmra.mrb[154].mxu1 %v1161_v0  ;;  %v934_v0 = vld [vmem:[#allocation7 + $0xc38] sm:$0xff] }
 0x356   : > { %7076 = vst [vmem:[#allocation22_spill] sm:$0xff] %v6485_v11  ;;  %3575 = vmatmul.mubr.f32.gmra.mrb[90].mxu0 %v909_v50  ;;  %2490 = vmatprep.mubr.f32.mxu1 %v1170_v5  ;;  %v1185_v5 = vld [vmem:[#allocation7 + $0x1410] sm:$0xff]  ;;  %v990_v11 = vld [vmem:[#allocation7 + $0xdf8] sm:$0xff] }
 0x357   : > { %3580 = vmatprep.mubr.f32.mxu0 %v918_v10  ;;  %v933_v10 = vld [vmem:[#allocation7 + $0xc30] sm:$0xff] }
 0x358   : > { %v6487_v28 = vpop.f32.mrb[50].mxu1 }
 0x359   : > { %7077 = vst [vmem:[#allocation23_spill] sm:$0xff] %v6487_v28  ;;  %v6489_v40 = vpop.f32.mrb[51].mxu1  ;;  %2491 = vmatmul.mubr.f32.gmra.mrb[156].mxu1 %v1169_v18  ;;  %v1194_v28 = vld [vmem:[#allocation7 + $0x1458] sm:$0xff] }
 0x35a   : > { %7078 = vst [vmem:[#allocation24_spill] sm:$0xff] %v6489_v40  ;;  %3581 = vmatmul.mubr.f32.gmra.mrb[92].mxu0 %v917_v20  ;;  %2496 = vmatprep.mubr.f32.mxu1 %v1178_v26  ;;  %v942_v18 = vld [vmem:[#allocation7 + $0xc78] sm:$0xff]  ;;  %v1193_v26 = vld [vmem:[#allocation7 + $0x1450] sm:$0xff] }
 0x35b   : > { %3586 = vmatprep.mubr.f32.mxu0 %v926_v29  ;;  %v941_v29 = vld [vmem:[#allocation7 + $0xc70] sm:$0xff] }
 0x35c   : > { %v6491_v57 = vpop.f32.mrb[52].mxu1 }
 0x35d   : > { %7079 = vst [vmem:[#allocation25_spill] sm:$0xff] %v6491_v57  ;;  %v6493_v50 = vpop.f32.mrb[53].mxu1  ;;  %2497 = vmatmul.mubr.f32.gmra.mrb[158].mxu1 %v1177_v63  ;;  %v1202_v57 = vld [vmem:[#allocation7 + $0x1498] sm:$0xff] }
 0x35e   : > { %7080 = vst [vmem:[#allocation26_spill] sm:$0xff] %v6493_v50  ;;  %3587 = vmatmul.mubr.f32.gmra.mrb[94].mxu0 %v925_v4  ;;  %2502 = vmatprep.mubr.f32.mxu1 %v1186_v24  ;;  %v950_v63 = vld [vmem:[#allocation7 + $0xcb8] sm:$0xff]  ;;  %v1201_v24 = vld [vmem:[#allocation7 + $0x1490] sm:$0xff] }
 0x35f   : > { %3592 = vmatprep.mubr.f32.mxu0 %v934_v0  ;;  %v949_v0 = vld [vmem:[#allocation7 + $0xcb0] sm:$0xff] }
 0x360   : > { %v6495_v40 = vpop.f32.mrb[54].mxu1 }
 0x361   : > { %7081 = vst [vmem:[#allocation27_spill] sm:$0xff] %v6495_v40  ;;  %v6497_v20 = vpop.f32.mrb[55].mxu1  ;;  %2503 = vmatmul.mubr.f32.gmra.mrb[160].mxu1 %v1185_v5  ;;  %v1210_v40 = vld [vmem:[#allocation7 + $0x14d8] sm:$0xff] }
 0x362   : > { %7082 = vst [vmem:[#allocation28_spill] sm:$0xff] %v6497_v20  ;;  %3593 = vmatmul.mubr.f32.gmra.mrb[96].mxu0 %v933_v10  ;;  %2508 = vmatprep.mubr.f32.mxu1 %v1194_v28  ;;  %v958_v5 = vld [vmem:[#allocation7 + $0xcf8] sm:$0xff]  ;;  %v1209_v10 = vld [vmem:[#allocation7 + $0x14d0] sm:$0xff] }
 0x363   : > { %3598 = vmatprep.mubr.f32.mxu0 %v942_v18  ;;  %v957_v18 = vld [vmem:[#allocation7 + $0xcf0] sm:$0xff] }
 0x364   : > { %v6499_v50 = vpop.f32.mrb[56].mxu1 }
 0x365   : > { %7083 = vst [vmem:[#allocation29_spill] sm:$0xff] %v6499_v50  ;;  %v6501_v4 = vpop.f32.mrb[57].mxu1  ;;  %2509 = vmatmul.mubr.f32.gmra.mrb[162].mxu1 %v1193_v26  ;;  %v1218_v50 = vld [vmem:[#allocation7 + $0x1518] sm:$0xff] }
 0x366   : > { %7084 = vst [vmem:[#allocation30_spill] sm:$0xff] %v6501_v4  ;;  %3599 = vmatmul.mubr.f32.gmra.mrb[98].mxu0 %v941_v29  ;;  %2514 = vmatprep.mubr.f32.mxu1 %v1202_v57  ;;  %v966_v26 = vld [vmem:[#allocation7 + $0xd38] sm:$0xff]  ;;  %v1217_v29 = vld [vmem:[#allocation7 + $0x1510] sm:$0xff] }
 0x367   : > { %3604 = vmatprep.mubr.f32.mxu0 %v950_v63  ;;  %v965_v63 = vld [vmem:[#allocation7 + $0xd30] sm:$0xff] }
 0x368   : > { %v6503_v20 = vpop.f32.mrb[58].mxu1 }
 0x369   : > { %7085 = vst [vmem:[#allocation31_spill] sm:$0xff] %v6503_v20  ;;  %v6505_v28 = vpop.f32.mrb[59].mxu1  ;;  %2515 = vmatmul.mubr.f32.gmra.mrb[164].mxu1 %v1201_v24  ;;  %v1226_v20 = vld [vmem:[#allocation7 + $0x1558] sm:$0xff] }
 0x36a   : > { %7086 = vst [vmem:[#allocation32_spill] sm:$0xff] %v6505_v28  ;;  %3605 = vmatmul.mubr.f32.gmra.mrb[100].mxu0 %v949_v0  ;;  %2520 = vmatprep.mubr.f32.mxu1 %v1210_v40  ;;  %v974_v24 = vld [vmem:[#allocation7 + $0xd78] sm:$0xff]  ;;  %v1225_v0 = vld [vmem:[#allocation7 + $0x1550] sm:$0xff] }
 0x36b   : > { %3610 = vmatprep.mubr.f32.mxu0 %v958_v5  ;;  %v973_v5 = vld [vmem:[#allocation7 + $0xd70] sm:$0xff] }
 0x36c   : > { %v6507_v4 = vpop.f32.mrb[60].mxu1 }
 0x36d   : > { %7087 = vst [vmem:[#allocation33_spill] sm:$0xff] %v6507_v4  ;;  %v6509_v57 = vpop.f32.mrb[61].mxu1  ;;  %2521 = vmatmul.mubr.f32.gmra.mrb[166].mxu1 %v1209_v10  ;;  %v1234_v4 = vld [vmem:[#allocation7 + $0x1598] sm:$0xff] }
 0x36e   : > { %7088 = vst [vmem:[#allocation34_spill] sm:$0xff] %v6509_v57  ;;  %3611 = vmatmul.mubr.f32.gmra.mrb[102].mxu0 %v957_v18  ;;  %2526 = vmatprep.mubr.f32.mxu1 %v1218_v50  ;;  %v982_v10 = vld [vmem:[#allocation7 + $0xdb8] sm:$0xff] }
 0x36f   : > { %3616 = vmatprep.mubr.f32.mxu0 %v966_v26 }
 0x370   : > { %v6511_v28 = vpop.f32.mrb[62].mxu1 }
 0x371   : > { %7089 = vst [vmem:[#allocation35_spill] sm:$0xff] %v6511_v28  ;;  %v6513_v40 = vpop.f32.mrb[63].mxu1  ;;  %2527 = vmatmul.mubr.f32.gmra.mrb[168].mxu1 %v1217_v29 }
 0x372   : > { %7090 = vst [vmem:[#allocation36_spill] sm:$0xff] %v6513_v40  ;;  %3617 = vmatmul.mubr.f32.gmra.mrb[104].mxu0 %v965_v63  ;;  %2532 = vmatprep.mubr.f32.mxu1 %v1226_v20  ;;  %v1233_v40 = vld [vmem:[#allocation7 + $0x1590] sm:$0xff]  ;;  %v1242_v63 = vld [vmem:[#allocation7 + $0x15d8] sm:$0xff] }
 0x373   : > { %3622 = vmatprep.mubr.f32.mxu0 %v974_v24  ;;  %v981_v20 = vld [vmem:[#allocation7 + $0xdb0] sm:$0xff] }
 0x374   : > { %v6515_v57 = vpop.f32.mrb[64].mxu1 }
 0x375   : > { %7091 = vst [vmem:[#allocation37_spill] sm:$0xff] %v6515_v57  ;;  %v3306_v50 = vpop.f32.mrb[0].mxu0  ;;  %v6517_v18 = vpop.f32.mrb[65].mxu1  ;;  %2533 = vmatmul.mubr.f32.gmra.mrb[170].mxu1 %v1225_v0 }
 0x376   : > { %7092 = vst [vmem:[#allocation38_spill] sm:$0xff] %v6517_v18  ;;  %v4852_v26 = vadd.f32 %v3306_v50, %v6359_v55  ;;  %v3308_v28 = vpop.f32.mrb[1].mxu0  ;;  %3623 = vmatmul.mubr.f32.gmra.mrb[106].mxu0 %v973_v5  ;;  %2538 = vmatprep.mubr.f32.mxu1 %v1234_v4  ;;  %v1241_v55 = vld [vmem:[#allocation7 + $0x15d0] sm:$0xff]  ;;  %v998_v50 = vld [vmem:[#allocation7 + $0xe38] sm:$0xff] }
 0x377   : > { %v4853_v29 = vadd.f32 %v3308_v28, %v6361_v42  ;;  %3628 = vmatprep.mubr.f32.mxu0 %v982_v10  ;;  %v989_v42 = vld [vmem:[#allocation7 + $0xdf0] sm:$0xff]  ;;  %v1250_v28 = vld [vmem:[#allocation7 + $0x1618] sm:$0xff] }
 0x378   : > { %v6521_v24 = vpop.f32.mrb[66].mxu1 }
 0x379   : > { %7093 = vst [vmem:[#allocation39_spill] sm:$0xff] %v6521_v24  ;;  %v3312_v57 = vpop.f32.mrb[2].mxu0  ;;  %v6523_v9 = vpop.f32.mrb[67].mxu1  ;;  %2539 = vmatmul.mubr.f32.gmra.mrb[172].mxu1 %v1233_v40  ;;  %v1249_v40 = vld [vmem:[#allocation7 + $0x1610] sm:$0xff] }
 0x37a   : > { %v4854_v0 = vadd.f32 %v3312_v57, %v6363_v34  ;;  %v3314_v18 = vpop.f32.mrb[3].mxu0  ;;  %3629 = vmatmul.mubr.f32.gmra.mrb[108].mxu0 %v981_v20  ;;  %2544 = vmatprep.mubr.f32.mxu1 %v1242_v63 }
 0x37b   : > { %v4855_v4 = vadd.f32 %v3314_v18, %v6365_v35  ;;  %3634 = vmatprep.mubr.f32.mxu0 %v990_v11  ;;  %v997_v11 = vld [vmem:[#allocation7 + $0xe30] sm:$0xff]  ;;  %v1258_v18 = vld [vmem:[#allocation7 + $0x1658] sm:$0xff] }
 0x37c   : > { %v4630_v5 = vpack.c.bf16 %v4854_v0, %v4852_v26  ;;  %v6527_v10 = vpop.f32.mrb[68].mxu1  ;;  %v1257_v0 = vld [vmem:[#allocation7 + $0x1650] sm:$0xff] }
 0x37d   : > { %v4628_v24 = vpack.c.bf16 %v4855_v4, %v4853_v29  ;;  %v3318_v44 = vpop.f32.mrb[4].mxu0  ;;  %v6529_v52 = vpop.f32.mrb[69].mxu1  ;;  %2545 = vmatmul.mubr.f32.gmra.mrb[174].mxu1 %v1241_v55  ;;  %v1006_v29 = vld [vmem:[#allocation7 + $0xe78] sm:$0xff] }
 0x37e   : > { %v4856_v34 = vadd.f32 %v3318_v44, %v6369_v14  ;;  %v3320_v57 = vpop.f32.mrb[5].mxu0  ;;  %3635 = vmatmul.mubr.f32.gmra.mrb[110].mxu0 %v989_v42  ;;  %2550 = vmatprep.mubr.f32.mxu1 %v1250_v28  ;;  %v1266_v55 = vld [vmem:[#allocation7 + $0x1698] sm:$0xff] }
 0x37f   : > { %v4857_v35 = vadd.f32 %v3320_v57, %v6371_v46  ;;  %4629 = vmatprep.subr.bf16.mxu1 %v4628_v24  ;;  %3640 = vmatprep.mubr.f32.mxu0 %v998_v50  ;;  %v1005_v24 = vld [vmem:[#allocation7 + $0xe70] sm:$0xff]  ;;  %v1014_v28 = vld [vmem:[#allocation7 + $0xeb8] sm:$0xff] }
 0x380   : > { %4631 = vmatpush1.bf16.msra.mxu1 %v4630_v5  ;;  %v6533_v26 = vpop.f32.mrb[70].mxu1 }
 0x381   : > { %v3324_v20 = vpop.f32.mrb[6].mxu0  ;;  %v6535_v63 = vpop.f32.mrb[71].mxu1  ;;  %2551 = vmatmul.mubr.f32.gmra.mrb[176].mxu1 %v1249_v40 }
 0x382   : > { %v4858_v14 = vadd.f32 %v3324_v20, %v6375_v54  ;;  %v3326_v44 = vpop.f32.mrb[7].mxu0  ;;  %3641 = vmatmul.mubr.f32.gmra.mrb[112].mxu0 %v997_v11  ;;  %2556 = vmatprep.mubr.f32.mxu1 %v1258_v18  ;;  %v1265_v11 = vld [vmem:[#allocation7 + $0x1690] sm:$0xff] }
 0x383   : > { %v4859_v46 = vadd.f32 %v3326_v44, %v6377_v32  ;;  %3646 = vmatprep.mubr.f32.mxu0 %v1006_v29  ;;  %v1013_v18 = vld [vmem:[#allocation7 + $0xeb0] sm:$0xff] }
 0x384   : > { %v4634_v4 = vpack.c.bf16 %v4858_v14, %v4856_v34  ;;  %v6539_v42 = vpop.f32.mrb[72].mxu1  ;;  %v1274_v34 = vld [vmem:[#allocation7 + $0x16d8] sm:$0xff] }
 0x385   : > { %v4632_v5 = vpack.c.bf16 %v4859_v46, %v4857_v35  ;;  %v3330_v50 = vpop.f32.mrb[8].mxu0  ;;  %v6541_v57 = vpop.f32.mrb[73].mxu1  ;;  %2557 = vmatmul.mubr.f32.gmra.mrb[178].mxu1 %v1257_v0  ;;  %v1022_v35 = vld [vmem:[#allocation7 + $0xef8] sm:$0xff]  ;;  %v1273_v0 = vld [vmem:[#allocation7 + $0x16d0] sm:$0xff] }
 0x386   : > { %v4860_v54 = vadd.f32 %v3330_v50, %v6379_v19  ;;  %v3332_v40 = vpop.f32.mrb[9].mxu0  ;;  %3647 = vmatmul.mubr.f32.gmra.mrb[114].mxu0 %v1005_v24  ;;  %2562 = vmatprep.mubr.f32.mxu1 %v1266_v55  ;;  %v1021_v46 = vld [vmem:[#allocation7 + $0xef0] sm:$0xff]  ;;  %v1282_v24 = vld [vmem:[#allocation7 + $0x1718] sm:$0xff] }
 0x387   : > { %v4861_v32 = vadd.f32 %v3332_v40, %v6381_v62  ;;  %4633 = vmatprep.subr.bf16.mxu1 %v4632_v5  ;;  %3652 = vmatprep.mubr.f32.mxu0 %v1014_v28  ;;  %v1030_v28 = vld [vmem:[#allocation7 + $0xf38] sm:$0xff] }
 0x388   : > { %4635 = vmatpush1.bf16.msra.mxu1 %v4634_v4  ;;  %v6545_v29 = vpop.f32.mrb[74].mxu1 }
 0x389   : > { %v3336_v20 = vpop.f32.mrb[10].mxu0  ;;  %v6547_v14 = vpop.f32.mrb[75].mxu1  ;;  %2563 = vmatmul.mubr.f32.gmra.mrb[180].mxu1 %v1265_v11 }
 0x38a   : > { %v4862_v19 = vadd.f32 %v3336_v20, %v6383_v1  ;;  %v3338_v44 = vpop.f32.mrb[11].mxu0  ;;  %3653 = vmatmul.mubr.f32.gmra.mrb[116].mxu0 %v1013_v18  ;;  %2568 = vmatprep.mubr.f32.mxu1 %v1274_v34  ;;  %v1281_v18 = vld [vmem:[#allocation7 + $0x1710] sm:$0xff] }
 0x38b   : > { %v4863_v62 = vadd.f32 %v3338_v44, %v6385_v30  ;;  %3658 = vmatprep.mubr.f32.mxu0 %v1022_v35  ;;  %v1029_v34 = vld [vmem:[#allocation7 + $0xf30] sm:$0xff] }
 0x38c   : > { %v4638_v55 = vpack.c.bf16 %v4862_v19, %v4860_v54  ;;  %v6551_v4 = vpop.f32.mrb[76].mxu1  ;;  %v1290_v54 = vld [vmem:[#allocation7 + $0x1758] sm:$0xff] }
 0x38d   : > { %v4636_v5 = vpack.c.bf16 %v4863_v62, %v4861_v32  ;;  %v3342_v50 = vpop.f32.mrb[12].mxu0  ;;  %v6553_v40 = vpop.f32.mrb[77].mxu1  ;;  %2569 = vmatmul.mubr.f32.gmra.mrb[182].mxu1 %v1273_v0  ;;  %v1038_v32 = vld [vmem:[#allocation7 + $0xf78] sm:$0xff]  ;;  %v1289_v0 = vld [vmem:[#allocation7 + $0x1750] sm:$0xff] }
 0x38e   : > { %v4864_v1 = vadd.f32 %v3342_v50, %v6387_v60  ;;  %v3344_v11 = vpop.f32.mrb[13].mxu0  ;;  %3659 = vmatmul.mubr.f32.gmra.mrb[118].mxu0 %v1021_v46  ;;  %2574 = vmatprep.mubr.f32.mxu1 %v1282_v24  ;;  %v1037_v62 = vld [vmem:[#allocation7 + $0xf70] sm:$0xff]  ;;  %v1298_v46 = vld [vmem:[#allocation7 + $0x1798] sm:$0xff] }
 0x38f   : > { %v4865_v30 = vadd.f32 %v3344_v11, %v6389_v33  ;;  %4637 = vmatprep.subr.bf16.mxu1 %v4636_v5  ;;  %3664 = vmatprep.mubr.f32.mxu0 %v1030_v28  ;;  %v1046_v28 = vld [vmem:[#allocation7 + $0xfb8] sm:$0xff] }
 0x390   : > { %4639 = vmatpush1.bf16.msra.mxu1 %v4638_v55  ;;  %v6557_v35 = vpop.f32.mrb[78].mxu1 }
 0x391   : > { %v3348_v20 = vpop.f32.mrb[14].mxu0  ;;  %v6559_v19 = vpop.f32.mrb[79].mxu1  ;;  %2575 = vmatmul.mubr.f32.gmra.mrb[184].mxu1 %v1281_v18 }
 0x392   : > { %v4866_v60 = vadd.f32 %v3348_v20, %v6391_v38  ;;  %v3350_v44 = vpop.f32.mrb[15].mxu0  ;;  %3665 = vmatmul.mubr.f32.gmra.mrb[120].mxu0 %v1029_v34  ;;  %2580 = vmatprep.mubr.f32.mxu1 %v1290_v54  ;;  %v1297_v34 = vld [vmem:[#allocation7 + $0x1790] sm:$0xff] }
 0x393   : > { %v4867_v33 = vadd.f32 %v3350_v44, %v6393_v15  ;;  %3670 = vmatprep.mubr.f32.mxu0 %v1038_v32  ;;  %v1045_v54 = vld [vmem:[#allocation7 + $0xfb0] sm:$0xff] }
 0x394   : > { %v4642_v24 = vpack.c.bf16 %v4866_v60, %v4864_v1  ;;  %v6563_v55 = vpop.f32.mrb[80].mxu1  ;;  %v1306_v1 = vld [vmem:[#allocation7 + $0x17d8] sm:$0xff] }
 0x395   : > { %v4640_v5 = vpack.c.bf16 %v4867_v33, %v4865_v30  ;;  %v3354_v50 = vpop.f32.mrb[16].mxu0  ;;  %v6565_v11 = vpop.f32.mrb[81].mxu1  ;;  %2581 = vmatmul.mubr.f32.gmra.mrb[186].mxu1 %v1289_v0  ;;  %v1054_v30 = vld [vmem:[#allocation7 + $0xff8] sm:$0xff]  ;;  %v1305_v0 = vld [vmem:[#allocation7 + $0x17d0] sm:$0xff] }
 0x396   : > { %v4868_v38 = vadd.f32 %v3354_v50, %v6397_v21  ;;  %v3356_v18 = vpop.f32.mrb[17].mxu0  ;;  %3671 = vmatmul.mubr.f32.gmra.mrb[122].mxu0 %v1037_v62  ;;  %2586 = vmatprep.mubr.f32.mxu1 %v1298_v46  ;;  %v1053_v33 = vld [vmem:[#allocation7 + $0xff0] sm:$0xff] }
 0x397   : > { %v4869_v15 = vadd.f32 %v3356_v18, %v6399_v22  ;;  %4641 = vmatprep.subr.bf16.mxu1 %v4640_v5  ;;  %3676 = vmatprep.mubr.f32.mxu0 %v1046_v28  ;;  %v1312_v62 = vld [vmem:[%s5997_s17 + $0x8] sm:$0xff] }
 0x398   : > { %4643 = vmatpush1.bf16.msra.mxu1 %v4642_v24  ;;  %v6569_v32 = vpop.f32.mrb[82].mxu1  ;;  %v1062_v28 = vld [vmem:[#allocation7 + $0x1038] sm:$0xff] }
 0x399   : > { %v3360_v20 = vpop.f32.mrb[18].mxu0  ;;  %v6571_v60 = vpop.f32.mrb[83].mxu1  ;;  %2587 = vmatmul.mubr.f32.gmra.mrb[188].mxu1 %v1297_v34 }
 0x39a   : > { %v4870_v21 = vadd.f32 %v3360_v20, %v6403_v61  ;;  %v3362_v44 = vpop.f32.mrb[19].mxu0  ;;  %3677 = vmatmul.mubr.f32.gmra.mrb[124].mxu0 %v1045_v54  ;;  %2592 = vmatprep.mubr.f32.mxu1 %v1306_v1  ;;  %v1070_v1 = vld [vmem:[#allocation7 + $0x1078] sm:$0xff] }
 0x39b   : > { %v4871_v22 = vadd.f32 %v3362_v44, %v6405_v56  ;;  %3682 = vmatprep.mubr.f32.mxu0 %v1054_v30  ;;  %v1061_v56 = vld [vmem:[#allocation7 + $0x1030] sm:$0xff] }
 0x39c   : > { %v4646_v46 = vpack.c.bf16 %v4870_v21, %v4868_v38  ;;  %v6576_v24 = vpop.f32.mrb[84].mxu1  ;;  %v1069_v44 = vld [vmem:[#allocation7 + $0x1070] sm:$0xff] }
 0x39d   : > { %v4644_v5 = vpack.c.bf16 %v4871_v22, %v4869_v15  ;;  %v3366_v50 = vpop.f32.mrb[20].mxu0  ;;  %v6578_v18 = vpop.f32.mrb[85].mxu1  ;;  %2593 = vmatmul.mubr.f32.gmra.mrb[190].mxu1 %v1305_v0  ;;  %v1078_v22 = vld [vmem:[#allocation7 + $0x10b8] sm:$0xff] }
 0x39e   : > { %v4872_v61 = vadd.f32 %v3366_v50, %v6407_v6  ;;  %v3368_v34 = vpop.f32.mrb[21].mxu0  ;;  %3683 = vmatmul.mubr.f32.gmra.mrb[126].mxu0 %v1053_v33  ;;  %3990 = vmatprep.mubr.f32.mxu1 %v1312_v62  ;;  %v1077_v50 = vld [vmem:[#allocation7 + $0x10b0] sm:$0xff] }
 0x39f   : > { %v4873_v54 = vadd.f32 %v3368_v34, %v6409_v45  ;;  %4645 = vmatprep.subr.bf16.mxu1 %v4644_v5  ;;  %3688 = vmatprep.mubr.f32.mxu0 %v1062_v28 }
 0x3a0   : > { %4647 = vmatpush1.bf16.msra.mxu1 %v4646_v46  ;;  %v6582_v38 = vpop.f32.mrb[86].mxu1 }
 0x3a1   : > { %v3372_v30 = vpop.f32.mrb[22].mxu0  ;;  %v6584_v15 = vpop.f32.mrb[87].mxu1 }
 0x3a2   : > { %v4874_v20 = vadd.f32 %v3372_v30, %v6411_v49  ;;  %v3374_v21 = vpop.f32.mrb[23].mxu0  ;;  %3689 = vmatmul.mubr.f32.gmra.mrb[128].mxu0 %v1061_v56  ;;  %v1085_v30 = vld [vmem:[#allocation7 + $0x10f0] sm:$0xff] }
 0x3a3   : > { %v4875_v6 = vadd.f32 %v3374_v21, %v6413_v17  ;;  %3694 = vmatprep.mubr.f32.mxu0 %v1070_v1  ;;  %v1094_v21 = vld [vmem:[#allocation7 + $0x1138] sm:$0xff] }
 0x3a4   : > { %v4650_v0 = vpack.c.bf16 %v4874_v20, %v4872_v61  ;;  %v6588_v45 = vpop.f32.mrb[88].mxu1  ;;  %v1086_v61 = vld [vmem:[#allocation7 + $0x10f8] sm:$0xff] }
 0x3a5   : > { %v4648_v33 = vpack.c.bf16 %v4875_v6, %v4873_v54  ;;  %v3378_v62 = vpop.f32.mrb[24].mxu0  ;;  %v6590_v46 = vpop.f32.mrb[89].mxu1 }
 0x3a6   : > { %v4876_v28 = vadd.f32 %v3378_v62, %v6415_v58  ;;  %v3380_v5 = vpop.f32.mrb[25].mxu0  ;;  %3695 = vmatmul.mubr.f32.gmra.mrb[130].mxu0 %v1069_v44  ;;  %v1093_v62 = vld [vmem:[#allocation7 + $0x1130] sm:$0xff] }
 0x3a7   : > { %v4877_v49 = vadd.f32 %v3380_v5, %v6417_v59  ;;  %4649 = vmatprep.subr.bf16.mxu1 %v4648_v33  ;;  %3700 = vmatprep.mubr.f32.mxu0 %v1078_v22 }
 0x3a8   : > { %4651 = vmatpush1.bf16.msra.mxu1 %v4650_v0  ;;  %v6594_v17 = vpop.f32.mrb[90].mxu1 }
 0x3a9   : > { %v3384_v34 = vpop.f32.mrb[26].mxu0  ;;  %v6596_v56 = vpop.f32.mrb[91].mxu1 }
 0x3aa   : > { %v4878_v54 = vadd.f32 %v3384_v34, %v6419_v2  ;;  %v3386_v1 = vpop.f32.mrb[27].mxu0  ;;  %3701 = vmatmul.mubr.f32.gmra.mrb[132].mxu0 %v1077_v50  ;;  %v1101_v34 = vld [vmem:[#allocation7 + $0x1170] sm:$0xff] }
 0x3ab   : > { %v4879_v58 = vadd.f32 %v3386_v1, %v6421_v27  ;;  %3706 = vmatprep.mubr.f32.mxu0 %v1086_v61  ;;  %v1110_v1 = vld [vmem:[#allocation7 + $0x11b8] sm:$0xff] }
 0x3ac   : > { %v4654_v20 = vpack.c.bf16 %v4878_v54, %v4876_v28  ;;  %v6600_v59 = vpop.f32.mrb[92].mxu1  ;;  %v1102_v28 = vld [vmem:[#allocation7 + $0x1178] sm:$0xff] }
 0x3ad   : > { %v4652_v6 = vpack.c.bf16 %v4879_v58, %v4877_v49  ;;  %v3390_v44 = vpop.f32.mrb[28].mxu0  ;;  %v6602_v0 = vpop.f32.mrb[93].mxu1 }
 0x3ae   : > { %v4880_v22 = vadd.f32 %v3390_v44, %v6425_v41  ;;  %v3392_v33 = vpop.f32.mrb[29].mxu0  ;;  %3707 = vmatmul.mubr.f32.gmra.mrb[134].mxu0 %v1085_v30  ;;  %v1109_v44 = vld [vmem:[#allocation7 + $0x11b0] sm:$0xff] }
 0x3af   : > { %v4881_v2 = vadd.f32 %v3392_v33, %v6427_v16  ;;  %4653 = vmatprep.subr.bf16.mxu1 %v4652_v6  ;;  %3712 = vmatprep.mubr.f32.mxu0 %v1094_v21 }
 0x3b0   : > { %4655 = vmatpush1.bf16.msra.mxu1 %v4654_v20  ;;  %v6606_v27 = vpop.f32.mrb[94].mxu1 }
 0x3b1   : > { %v3396_v5 = vpop.f32.mrb[30].mxu0  ;;  %v6608_v50 = vpop.f32.mrb[95].mxu1 }
 0x3b2   : > { %v4882_v49 = vadd.f32 %v3396_v5, %v6431_v36  ;;  %v3398_v61 = vpop.f32.mrb[31].mxu0  ;;  %3713 = vmatmul.mubr.f32.gmra.mrb[136].mxu0 %v1093_v62  ;;  %v1117_v5 = vld [vmem:[#allocation7 + $0x11f0] sm:$0xff] }
 0x3b3   : > { %v4883_v41 = vadd.f32 %v3398_v61, %v6433_v51  ;;  %3718 = vmatprep.mubr.f32.mxu0 %v1102_v28  ;;  %v1126_v61 = vld [vmem:[#allocation7 + $0x1238] sm:$0xff] }
 0x3b4   : > { %v4658_v54 = vpack.c.bf16 %v4882_v49, %v4880_v22  ;;  %v6612_v16 = vpop.f32.mrb[96].mxu1  ;;  %v1118_v22 = vld [vmem:[#allocation7 + $0x11f8] sm:$0xff] }
 0x3b5   : > { %v4656_v58 = vpack.c.bf16 %v4883_v41, %v4881_v2  ;;  %v3402_v30 = vpop.f32.mrb[32].mxu0  ;;  %v6614_v20 = vpop.f32.mrb[97].mxu1 }
 0x3b6   : > { %v4884_v21 = vadd.f32 %v3402_v30, %v6451_v23  ;;  %v3404_v6 = vpop.f32.mrb[33].mxu0  ;;  %3719 = vmatmul.mubr.f32.gmra.mrb[138].mxu0 %v1101_v34  ;;  %v1125_v30 = vld [vmem:[#allocation7 + $0x1230] sm:$0xff] }
 0x3b7   : > { %v4885_v36 = vadd.f32 %v3404_v6, %v6453_v7  ;;  %4657 = vmatprep.subr.bf16.mxu1 %v4656_v58  ;;  %3724 = vmatprep.mubr.f32.mxu0 %v1110_v1 }
 0x3b8   : > { %4659 = vmatpush1.bf16.msra.mxu1 %v4658_v54  ;;  %v6618_v51 = vpop.f32.mrb[98].mxu1 }
 0x3b9   : > { %v3408_v33 = vpop.f32.mrb[34].mxu0  ;;  %v6620_v62 = vpop.f32.mrb[99].mxu1 }
 0x3ba   : > { %v4886_v2 = vadd.f32 %v3408_v33, %v6455_v31  ;;  %v3410_v28 = vpop.f32.mrb[35].mxu0  ;;  %3725 = vmatmul.mubr.f32.gmra.mrb[140].mxu0 %v1109_v44  ;;  %v1133_v33 = vld [vmem:[#allocation7 + $0x1270] sm:$0xff] }
 0x3bb   : > { %v4887_v23 = vadd.f32 %v3410_v28, %v6457_v39  ;;  %3730 = vmatprep.mubr.f32.mxu0 %v1118_v22  ;;  %v1142_v28 = vld [vmem:[#allocation7 + $0x12b8] sm:$0xff] }
 0x3bc   : > { %v4662_v49 = vpack.c.bf16 %v4886_v2, %v4884_v21  ;;  %v6624_v7 = vpop.f32.mrb[100].mxu1  ;;  %v1134_v21 = vld [vmem:[#allocation7 + $0x1278] sm:$0xff] }
 0x3bd   : > { %v4660_v41 = vpack.c.bf16 %v4887_v23, %v4885_v36  ;;  %v3414_v34 = vpop.f32.mrb[36].mxu0  ;;  %v6626_v54 = vpop.f32.mrb[101].mxu1 }
 0x3be   : > { %v4888_v1 = vadd.f32 %v3414_v34, %v6459_v12  ;;  %v3416_v58 = vpop.f32.mrb[37].mxu0  ;;  %3731 = vmatmul.mubr.f32.gmra.mrb[142].mxu0 %v1117_v5  ;;  %v1141_v34 = vld [vmem:[#allocation7 + $0x12b0] sm:$0xff] }
 0x3bf   : > { %v4889_v31 = vadd.f32 %v3416_v58, %v6461_v48  ;;  %4661 = vmatprep.subr.bf16.mxu1 %v4660_v41  ;;  %3736 = vmatprep.mubr.f32.mxu0 %v1126_v61 }
 0x3c0   : > { %4663 = vmatpush1.bf16.msra.mxu1 %v4662_v49  ;;  %v6630_v39 = vpop.f32.mrb[102].mxu1 }
 0x3c1   : > { %v3420_v6 = vpop.f32.mrb[38].mxu0  ;;  %v6632_v44 = vpop.f32.mrb[103].mxu1 }
 0x3c2   : > { %v4890_v36 = vadd.f32 %v3420_v6, %v6463_v13  ;;  %v3422_v22 = vpop.f32.mrb[39].mxu0  ;;  %3737 = vmatmul.mubr.f32.gmra.mrb[144].mxu0 %v1125_v30  ;;  %v1149_v6 = vld [vmem:[#allocation7 + $0x12f0] sm:$0xff] }
 0x3c3   : > { %v4891_v12 = vadd.f32 %v3422_v22, %v6465_v25  ;;  %3742 = vmatprep.mubr.f32.mxu0 %v1134_v21  ;;  %v1158_v22 = vld [vmem:[#allocation7 + $0x1338] sm:$0xff] }
 0x3c4   : > { %v4666_v2 = vpack.c.bf16 %v4890_v36, %v4888_v1  ;;  %v6636_v48 = vpop.f32.mrb[104].mxu1  ;;  %v1150_v1 = vld [vmem:[#allocation7 + $0x12f8] sm:$0xff] }
 0x3c5   : > { %v4664_v23 = vpack.c.bf16 %v4891_v12, %v4889_v31  ;;  %v3426_v5 = vpop.f32.mrb[40].mxu0  ;;  %v6638_v49 = vpop.f32.mrb[105].mxu1 }
 0x3c6   : > { %v4892_v61 = vadd.f32 %v3426_v5, %v6467_v8  ;;  %v3428_v41 = vpop.f32.mrb[41].mxu0  ;;  %3743 = vmatmul.mubr.f32.gmra.mrb[146].mxu0 %v1133_v33  ;;  %v1157_v5 = vld [vmem:[#allocation7 + $0x1330] sm:$0xff] }
 0x3c7   : > { %v4893_v13 = vadd.f32 %v3428_v41, %v6469_v3  ;;  %4665 = vmatprep.subr.bf16.mxu1 %v4664_v23  ;;  %3748 = vmatprep.mubr.f32.mxu0 %v1142_v28 }
 0x3c8   : > { %4667 = vmatpush1.bf16.msra.mxu1 %v4666_v2  ;;  %v6642_v25 = vpop.f32.mrb[106].mxu1 }
 0x3c9   : > { %v3432_v58 = vpop.f32.mrb[42].mxu0  ;;  %v6644_v30 = vpop.f32.mrb[107].mxu1 }
 0x3ca   : > { %v4894_v31 = vadd.f32 %v3432_v58, %v6471_v43  ;;  %v3434_v21 = vpop.f32.mrb[43].mxu0  ;;  %3749 = vmatmul.mubr.f32.gmra.mrb[148].mxu0 %v1141_v34 }
 0x3cb   : > { %v4895_v8 = vadd.f32 %v3434_v21, %v6473_v47  ;;  %3754 = vmatprep.mubr.f32.mxu0 %v1150_v1  ;;  %v1165_v21 = vld [vmem:[#allocation7 + $0x1370] sm:$0xff] }
 0x3cc   : > { %v4670_v36 = vpack.c.bf16 %v4894_v31, %v4892_v61  ;;  %v6648_v3 = vpop.f32.mrb[108].mxu1  ;;  %v1166_v61 = vld [vmem:[#allocation7 + $0x1378] sm:$0xff] }
 0x3cd   : > { %v4668_v12 = vpack.c.bf16 %v4895_v8, %v4893_v13  ;;  %v3438_v33 = vpop.f32.mrb[44].mxu0  ;;  %v6650_v2 = vpop.f32.mrb[109].mxu1  ;;  %v7096_v13 = vld [vmem:[#allocation19_spill] sm:$0xff]  ;;  %v7097_v31 = vld [vmem:[#allocation20_spill] sm:$0xff] }
 0x3ce   : > { %v4896_v28 = vadd.f32 %v3438_v33, %v6475_v37  ;;  %v3440_v23 = vpop.f32.mrb[45].mxu0  ;;  %3755 = vmatmul.mubr.f32.gmra.mrb[150].mxu0 %v1149_v6  ;;  %v1174_v6 = vld [vmem:[#allocation7 + $0x13b8] sm:$0xff] }
 0x3cf   : > { %v4897_v43 = vadd.f32 %v3440_v23, %v6477_v53  ;;  %4669 = vmatprep.subr.bf16.mxu1 %v4668_v12  ;;  %3760 = vmatprep.mubr.f32.mxu0 %v1158_v22  ;;  %v7100_v33 = vld [vmem:[#allocation21_spill] sm:$0xff] }
 0x3d0   : > { %4671 = vmatpush1.bf16.msra.mxu1 %v4670_v36  ;;  %v6654_v47 = vpop.f32.mrb[110].mxu1 }
 0x3d1   : > { %7094 = vst [vmem:[#allocation40_spill] sm:$0xff] %v6654_v47  ;;  %v3444_v41 = vpop.f32.mrb[46].mxu0  ;;  %v6656_v34 = vpop.f32.mrb[111].mxu1 }
 0x3d2   : > { %7095 = vst [vmem:[#allocation41_spill] sm:$0xff] %v6656_v34  ;;  %v4898_v1 = vadd.f32 %v3444_v41, %v7096_v13  ;;  %v3446_v58 = vpop.f32.mrb[47].mxu0  ;;  %3761 = vmatmul.mubr.f32.gmra.mrb[152].mxu0 %v1157_v5  ;;  %v7101_v34 = vld [vmem:[#allocation22_spill] sm:$0xff]  ;;  %v1173_v5 = vld [vmem:[#allocation7 + $0x13b0] sm:$0xff] }
 0x3d3   : > { %v4899_v37 = vadd.f32 %v3446_v58, %v7097_v31  ;;  %3766 = vmatprep.mubr.f32.mxu0 %v1166_v61 }
 0x3d4   : > { %v4674_v8 = vpack.c.bf16 %v4898_v1, %v4896_v28  ;;  %v6660_v53 = vpop.f32.mrb[112].mxu1  ;;  %v1182_v28 = vld [vmem:[#allocation7 + $0x13f8] sm:$0xff] }
 0x3d5   : > { %7098 = vst [vmem:[#allocation19_spill] sm:$0xff] %v6660_v53  ;;  %v4672_v22 = vpack.c.bf16 %v4899_v37, %v4897_v43  ;;  %v3450_v36 = vpop.f32.mrb[48].mxu0  ;;  %v6662_v12 = vpop.f32.mrb[113].mxu1  ;;  %v7104_v43 = vld [vmem:[#allocation23_spill] sm:$0xff]  ;;  %v7105_v37 = vld [vmem:[#allocation24_spill] sm:$0xff] }
 0x3d6   : > { %7099 = vst [vmem:[#allocation20_spill] sm:$0xff] %v6662_v12  ;;  %v4900_v23 = vadd.f32 %v3450_v36, %v7100_v33  ;;  %v3452_v47 = vpop.f32.mrb[49].mxu0  ;;  %3767 = vmatmul.mubr.f32.gmra.mrb[154].mxu0 %v1165_v21  ;;  %v1181_v21 = vld [vmem:[#allocation7 + $0x13f0] sm:$0xff] }
 0x3d7   : > { %v4901_v41 = vadd.f32 %v3452_v47, %v7101_v34  ;;  %4673 = vmatprep.subr.bf16.mxu1 %v4672_v22  ;;  %3772 = vmatprep.mubr.f32.mxu0 %v1174_v6  ;;  %v1190_v34 = vld [vmem:[#allocation7 + $0x1438] sm:$0xff] }
 0x3d8   : > { %4675 = vmatpush1.bf16.msra.mxu1 %v4674_v8  ;;  %v6666_v61 = vpop.f32.mrb[114].mxu1 }
 0x3d9   : > { %7102 = vst [vmem:[#allocation21_spill] sm:$0xff] %v6666_v61  ;;  %v3456_v13 = vpop.f32.mrb[50].mxu0  ;;  %v6668_v1 = vpop.f32.mrb[115].mxu1  ;;  %v7108_v61 = vld [vmem:[#allocation25_spill] sm:$0xff] }
 0x3da   : > { %7103 = vst [vmem:[#allocation22_spill] sm:$0xff] %v6668_v1  ;;  %v4902_v58 = vadd.f32 %v3456_v13, %v7104_v43  ;;  %v3458_v31 = vpop.f32.mrb[51].mxu0  ;;  %3773 = vmatmul.mubr.f32.gmra.mrb[156].mxu0 %v1173_v5  ;;  %v7109_v1 = vld [vmem:[#allocation26_spill] sm:$0xff]  ;;  %v1189_v5 = vld [vmem:[#allocation7 + $0x1430] sm:$0xff] }
 0x3db   : > { %v4903_v36 = vadd.f32 %v3458_v31, %v7105_v37  ;;  %3778 = vmatprep.mubr.f32.mxu0 %v1182_v28 }
 0x3dc   : > { %v4678_v33 = vpack.c.bf16 %v4902_v58, %v4900_v23  ;;  %v6672_v47 = vpop.f32.mrb[116].mxu1  ;;  %v1198_v23 = vld [vmem:[#allocation7 + $0x1478] sm:$0xff] }
 0x3dd   : > { %7106 = vst [vmem:[#allocation23_spill] sm:$0xff] %v6672_v47  ;;  %v4676_v6 = vpack.c.bf16 %v4903_v36, %v4901_v41  ;;  %v3462_v8 = vpop.f32.mrb[52].mxu0  ;;  %v6674_v22 = vpop.f32.mrb[117].mxu1  ;;  %v7112_v41 = vld [vmem:[#allocation27_spill] sm:$0xff]  ;;  %v7113_v36 = vld [vmem:[#allocation28_spill] sm:$0xff] }
 0x3de   : > { %7107 = vst [vmem:[#allocation24_spill] sm:$0xff] %v6674_v22  ;;  %v4904_v12 = vadd.f32 %v3462_v8, %v7108_v61  ;;  %v3464_v53 = vpop.f32.mrb[53].mxu0  ;;  %3779 = vmatmul.mubr.f32.gmra.mrb[158].mxu0 %v1181_v21  ;;  %v1197_v21 = vld [vmem:[#allocation7 + $0x1470] sm:$0xff] }
 0x3df   : > { %v4905_v13 = vadd.f32 %v3464_v53, %v7109_v1  ;;  %4677 = vmatprep.subr.bf16.mxu1 %v4676_v6  ;;  %3784 = vmatprep.mubr.f32.mxu0 %v1190_v34  ;;  %v1206_v1 = vld [vmem:[#allocation7 + $0x14b8] sm:$0xff] }
 0x3e0   : > { %4679 = vmatpush1.bf16.msra.mxu1 %v4678_v33  ;;  %v6678_v28 = vpop.f32.mrb[118].mxu1 }
 0x3e1   : > { %7110 = vst [vmem:[#allocation25_spill] sm:$0xff] %v6678_v28  ;;  %v3468_v43 = vpop.f32.mrb[54].mxu0  ;;  %v6680_v58 = vpop.f32.mrb[119].mxu1  ;;  %v7116_v28 = vld [vmem:[#allocation29_spill] sm:$0xff] }
 0x3e2   : > { %7111 = vst [vmem:[#allocation26_spill] sm:$0xff] %v6680_v58  ;;  %v4906_v31 = vadd.f32 %v3468_v43, %v7112_v41  ;;  %v3470_v37 = vpop.f32.mrb[55].mxu0  ;;  %3785 = vmatmul.mubr.f32.gmra.mrb[160].mxu0 %v1189_v5  ;;  %v7117_v58 = vld [vmem:[#allocation30_spill] sm:$0xff]  ;;  %v1205_v5 = vld [vmem:[#allocation7 + $0x14b0] sm:$0xff] }
 0x3e3   : > { %v4907_v61 = vadd.f32 %v3470_v37, %v7113_v36  ;;  %3790 = vmatprep.mubr.f32.mxu0 %v1198_v23 }
 0x3e4   : > { %v4682_v8 = vpack.c.bf16 %v4906_v31, %v4904_v12  ;;  %v6684_v53 = vpop.f32.mrb[120].mxu1  ;;  %v1214_v12 = vld [vmem:[#allocation7 + $0x14f8] sm:$0xff] }
 0x3e5   : > { %7114 = vst [vmem:[#allocation27_spill] sm:$0xff] %v6684_v53  ;;  %v4680_v34 = vpack.c.bf16 %v4907_v61, %v4905_v13  ;;  %v3474_v33 = vpop.f32.mrb[56].mxu0  ;;  %v6686_v6 = vpop.f32.mrb[121].mxu1  ;;  %v7120_v13 = vld [vmem:[#allocation31_spill] sm:$0xff]  ;;  %v7121_v61 = vld [vmem:[#allocation32_spill] sm:$0xff] }
 0x3e6   : > { %7115 = vst [vmem:[#allocation28_spill] sm:$0xff] %v6686_v6  ;;  %v4908_v22 = vadd.f32 %v3474_v33, %v7116_v28  ;;  %v3476_v47 = vpop.f32.mrb[57].mxu0  ;;  %3791 = vmatmul.mubr.f32.gmra.mrb[162].mxu0 %v1197_v21  ;;  %v1213_v21 = vld [vmem:[#allocation7 + $0x14f0] sm:$0xff] }
 0x3e7   : > { %v4909_v43 = vadd.f32 %v3476_v47, %v7117_v58  ;;  %4681 = vmatprep.subr.bf16.mxu1 %v4680_v34  ;;  %3796 = vmatprep.mubr.f32.mxu0 %v1206_v1  ;;  %v1222_v58 = vld [vmem:[#allocation7 + $0x1538] sm:$0xff] }
 0x3e8   : > { %4683 = vmatpush1.bf16.msra.mxu1 %v4682_v8  ;;  %v6690_v23 = vpop.f32.mrb[122].mxu1 }
 0x3e9   : > { %7118 = vst [vmem:[#allocation29_spill] sm:$0xff] %v6690_v23  ;;  %v3480_v41 = vpop.f32.mrb[58].mxu0  ;;  %v6692_v31 = vpop.f32.mrb[123].mxu1  ;;  %v7123_v23 = vld [vmem:[#allocation33_spill] sm:$0xff] }
 0x3ea   : > { %7119 = vst [vmem:[#allocation30_spill] sm:$0xff] %v6692_v31  ;;  %v4910_v37 = vadd.f32 %v3480_v41, %v7120_v13  ;;  %v3482_v36 = vpop.f32.mrb[59].mxu0  ;;  %3797 = vmatmul.mubr.f32.gmra.mrb[164].mxu0 %v1205_v5  ;;  %v7124_v31 = vld [vmem:[#allocation34_spill] sm:$0xff]  ;;  %v1221_v5 = vld [vmem:[#allocation7 + $0x1530] sm:$0xff] }
 0x3eb   : > { %v4911_v28 = vadd.f32 %v3482_v36, %v7121_v61  ;;  %3802 = vmatprep.mubr.f32.mxu0 %v1214_v12 }
 0x3ec   : > { %v4686_v33 = vpack.c.bf16 %v4910_v37, %v4908_v22  ;;  %v6696_v47 = vpop.f32.mrb[124].mxu1  ;;  %v1230_v22 = vld [vmem:[#allocation7 + $0x1578] sm:$0xff] }
 0x3ed   : > { %v4684_v1 = vpack.c.bf16 %v4911_v28, %v4909_v43  ;;  %v3486_v8 = vpop.f32.mrb[60].mxu0  ;;  %v6698_v34 = vpop.f32.mrb[125].mxu1  ;;  %v7127_v43 = vld [vmem:[#allocation35_spill] sm:$0xff]  ;;  %v7128_v28 = vld [vmem:[#allocation36_spill] sm:$0xff] }
 0x3ee   : > { %7122 = vst [vmem:[#allocation31_spill] sm:$0xff] %v6698_v34  ;;  %v4912_v6 = vadd.f32 %v3486_v8, %v7123_v23  ;;  %v3488_v53 = vpop.f32.mrb[61].mxu0  ;;  %3803 = vmatmul.mubr.f32.gmra.mrb[166].mxu0 %v1213_v21  ;;  %v1229_v21 = vld [vmem:[#allocation7 + $0x1570] sm:$0xff] }
 0x3ef   : > { %v4913_v41 = vadd.f32 %v3488_v53, %v7124_v31  ;;  %4685 = vmatprep.subr.bf16.mxu1 %v4684_v1  ;;  %3808 = vmatprep.mubr.f32.mxu0 %v1222_v58  ;;  %v1238_v31 = vld [vmem:[#allocation7 + $0x15b8] sm:$0xff] }
 0x3f0   : > { %4687 = vmatpush1.bf16.msra.mxu1 %v4686_v33  ;;  %v6702_v12 = vpop.f32.mrb[126].mxu1 }
 0x3f1   : > { %7125 = vst [vmem:[#allocation32_spill] sm:$0xff] %v6702_v12  ;;  %v3492_v13 = vpop.f32.mrb[62].mxu0  ;;  %v6704_v37 = vpop.f32.mrb[127].mxu1  ;;  %v7129_v12 = vld [vmem:[#allocation37_spill] sm:$0xff] }
 0x3f2   : > { %7126 = vst [vmem:[#allocation33_spill] sm:$0xff] %v6704_v37  ;;  %v4914_v36 = vadd.f32 %v3492_v13, %v7127_v43  ;;  %v3494_v61 = vpop.f32.mrb[63].mxu0  ;;  %3809 = vmatmul.mubr.f32.gmra.mrb[168].mxu0 %v1221_v5  ;;  %v7130_v13 = vld [vmem:[#allocation38_spill] sm:$0xff]  ;;  %v1237_v5 = vld [vmem:[#allocation7 + $0x15b0] sm:$0xff] }
 0x3f3   : > { %v4915_v23 = vadd.f32 %v3494_v61, %v7128_v28  ;;  %3814 = vmatprep.mubr.f32.mxu0 %v1230_v22  ;;  %v7133_v28 = vld [vmem:[#allocation39_spill] sm:$0xff] }
 0x3f4   : > { %v4690_v8 = vpack.c.bf16 %v4914_v36, %v4912_v6  ;;  %v6708_v53 = vpop.f32.mrb[128].mxu1  ;;  %v1246_v6 = vld [vmem:[#allocation7 + $0x15f8] sm:$0xff] }
 0x3f5   : > { %v4688_v33 = vpack.c.bf16 %v4915_v23, %v4913_v41  ;;  %v3498_v58 = vpop.f32.mrb[64].mxu0  ;;  %v6710_v1 = vpop.f32.mrb[129].mxu1  ;;  %v6717_v36 = vld [vmem:[%s5997_s17] sm:$0xff] }
 0x3f6   : > { %v4916_v34 = vadd.f32 %v3498_v58, %v7129_v12  ;;  %v3500_v37 = vpop.f32.mrb[65].mxu0  ;;  %3815 = vmatmul.mubr.f32.gmra.mrb[170].mxu0 %v1229_v21 }
 0x3f7   : > { %v4917_v43 = vadd.f32 %v3500_v37, %v7130_v13  ;;  %4689 = vmatprep.subr.bf16.mxu1 %v4688_v33  ;;  %3820 = vmatprep.mubr.f32.mxu0 %v1238_v31  ;;  %v1245_v37 = vld [vmem:[#allocation7 + $0x15f0] sm:$0xff]  ;;  %v1254_v33 = vld [vmem:[#allocation7 + $0x1638] sm:$0xff] }
 0x3f8   : > { %4691 = vmatpush1.bf16.msra.mxu1 %v4690_v8  ;;  %v6714_v22 = vpop.f32.mrb[130].mxu1 }
 0x3f9   : > { %7131 = vst [vmem:[#allocation34_spill] sm:$0xff] %v6714_v22  ;;  %v3504_v61 = vpop.f32.mrb[66].mxu0  ;;  %v6719_v41 = vpop.f32.mrb[131].mxu1 }
 0x3fa   : > { %7132 = vst [vmem:[#allocation35_spill] sm:$0xff] %v6719_v41  ;;  %v4918_v23 = vadd.f32 %v3504_v61, %v7133_v28  ;;  %v3506_v12 = vpop.f32.mrb[67].mxu0  ;;  %3821 = vmatmul.mubr.f32.gmra.mrb[172].mxu0 %v1237_v5  ;;  %v6730_v28 = vld [vmem:[%s5997_s17 + $0x18] sm:$0xff] }
 0x3fb   : > { %v4919_v21 = vadd.f32 %v3506_v12, %v6523_v9  ;;  %3826 = vmatprep.mubr.f32.mxu0 %v1246_v6  ;;  %3991 = vmatmul.mubr.f32.vlgmr.msra.gmra.mrb[192].mxu1 %v6717_v36  ;;  %v1253_v5 = vld [vmem:[#allocation7 + $0x1630] sm:$0xff]  ;;  %v1262_v6 = vld [vmem:[#allocation7 + $0x1678] sm:$0xff] }
 0x3fc   : > { %v4694_v8 = vpack.c.bf16 %v4918_v23, %v4916_v34  ;;  %v6724_v31 = vpop.f32.mrb[132].mxu1  ;;  %4061 = vmatprep.mubr.f32.mxu1 %v6730_v28 }
 0x3fd   : > { %v4692_v58 = vpack.c.bf16 %v4919_v21, %v4917_v43  ;;  %v3510_v13 = vpop.f32.mrb[68].mxu0  ;;  %v6726_v22 = vpop.f32.mrb[133].mxu1 }
 0x3fe   : > { %7134 = vst [vmem:[#allocation36_spill] sm:$0xff] %v6726_v22  ;;  %v4920_v41 = vadd.f32 %v3510_v13, %v6527_v10  ;;  %v3512_v61 = vpop.f32.mrb[69].mxu0  ;;  %3827 = vmatmul.mubr.f32.gmra.mrb[174].mxu0 %v1245_v37 }
 0x3ff   : > { %v4921_v9 = vadd.f32 %v3512_v61, %v6529_v52  ;;  %4693 = vmatprep.subr.bf16.mxu1 %v4692_v58  ;;  %3832 = vmatprep.mubr.f32.mxu0 %v1254_v33  ;;  %v1261_v52 = vld [vmem:[#allocation7 + $0x1670] sm:$0xff] }
 0x400   : > { %4695 = vmatpush1.bf16.msra.mxu1 %v4694_v8  ;;  %v6733_v34 = vpop.f32.mrb[134].mxu1  ;;  %v1270_v8 = vld [vmem:[#allocation7 + $0x16b8] sm:$0xff] }
 0x401   : > { %7135 = vst [vmem:[#allocation37_spill] sm:$0xff] %v6733_v34  ;;  %v3516_v43 = vpop.f32.mrb[70].mxu0  ;;  %v6736_v23 = vpop.f32.mrb[135].mxu1 }
 0x402   : > { %v4922_v10 = vadd.f32 %v3516_v43, %v6533_v26  ;;  %v3518_v12 = vpop.f32.mrb[71].mxu0  ;;  %3833 = vmatmul.mubr.f32.gmra.mrb[176].mxu0 %v1253_v5  ;;  %v1269_v5 = vld [vmem:[#allocation7 + $0x16b0] sm:$0xff] }
 0x403   : > { %v4923_v21 = vadd.f32 %v3518_v12, %v6535_v63  ;;  %3838 = vmatprep.mubr.f32.mxu0 %v1262_v6  ;;  %v1277_v12 = vld [vmem:[#allocation7 + $0x16f0] sm:$0xff] }
 0x404   : > { %v4698_v37 = vpack.c.bf16 %v4922_v10, %v4920_v41  ;;  %v6740_v33 = vpop.f32.mrb[136].mxu1  ;;  %v1278_v41 = vld [vmem:[#allocation7 + $0x16f8] sm:$0xff] }
 0x405   : > { %v4696_v58 = vpack.c.bf16 %v4923_v21, %v4921_v9  ;;  %v3522_v13 = vpop.f32.mrb[72].mxu0  ;;  %v6742_v61 = vpop.f32.mrb[137].mxu1 }
 0x406   : > { %v4924_v34 = vadd.f32 %v3522_v13, %v6539_v42  ;;  %v3524_v22 = vpop.f32.mrb[73].mxu0  ;;  %3839 = vmatmul.mubr.f32.gmra.mrb[178].mxu0 %v1261_v52 }
 0x407   : > { %v4925_v26 = vadd.f32 %v3524_v22, %v6541_v57  ;;  %4697 = vmatprep.subr.bf16.mxu1 %v4696_v58  ;;  %3844 = vmatprep.mubr.f32.mxu0 %v1270_v8  ;;  %v1286_v22 = vld [vmem:[#allocation7 + $0x1738] sm:$0xff] }
 0x408   : > { %4699 = vmatpush1.bf16.msra.mxu1 %v4698_v37  ;;  %v6746_v63 = vpop.f32.mrb[138].mxu1 }
 0x409   : > { %v3528_v6 = vpop.f32.mrb[74].mxu0  ;;  %v6748_v43 = vpop.f32.mrb[139].mxu1 }
 0x40a   : > { %v4926_v9 = vadd.f32 %v3528_v6, %v6545_v29  ;;  %v3530_v10 = vpop.f32.mrb[75].mxu0  ;;  %3845 = vmatmul.mubr.f32.gmra.mrb[180].mxu0 %v1269_v5  ;;  %v1285_v5 = vld [vmem:[#allocation7 + $0x1730] sm:$0xff] }
 0x40b   : > { %v4927_v42 = vadd.f32 %v3530_v10, %v6547_v14  ;;  %3850 = vmatprep.mubr.f32.mxu0 %v1278_v41  ;;  %v1293_v10 = vld [vmem:[#allocation7 + $0x1770] sm:$0xff] }
 0x40c   : > { %v4702_v21 = vpack.c.bf16 %v4926_v9, %v4924_v34  ;;  %v6752_v57 = vpop.f32.mrb[140].mxu1  ;;  %v1294_v34 = vld [vmem:[#allocation7 + $0x1778] sm:$0xff] }
 0x40d   : > { %v4700_v52 = vpack.c.bf16 %v4927_v42, %v4925_v26  ;;  %v3534_v37 = vpop.f32.mrb[76].mxu0  ;;  %v6754_v8 = vpop.f32.mrb[141].mxu1 }
 0x40e   : > { %v4928_v58 = vadd.f32 %v3534_v37, %v6551_v4  ;;  %v3536_v13 = vpop.f32.mrb[77].mxu0  ;;  %3851 = vmatmul.mubr.f32.gmra.mrb[182].mxu0 %v1277_v12  ;;  %v1302_v12 = vld [vmem:[#allocation7 + $0x17b8] sm:$0xff] }
 0x40f   : > { %v4929_v29 = vadd.f32 %v3536_v13, %v6553_v40  ;;  %4701 = vmatprep.subr.bf16.mxu1 %v4700_v52  ;;  %3856 = vmatprep.mubr.f32.mxu0 %v1286_v22 }
 0x410   : > { %4703 = vmatpush1.bf16.msra.mxu1 %v4702_v21  ;;  %v6758_v14 = vpop.f32.mrb[142].mxu1 }
 0x411   : > { %v3540_v41 = vpop.f32.mrb[78].mxu0  ;;  %v6760_v6 = vpop.f32.mrb[143].mxu1 }
 0x412   : > { %v4930_v26 = vadd.f32 %v3540_v41, %v6557_v35  ;;  %v3542_v9 = vpop.f32.mrb[79].mxu0  ;;  %3857 = vmatmul.mubr.f32.gmra.mrb[184].mxu0 %v1285_v5  ;;  %v1301_v5 = vld [vmem:[#allocation7 + $0x17b0] sm:$0xff] }
 0x413   : > { %v4931_v4 = vadd.f32 %v3542_v9, %v6559_v19  ;;  %3862 = vmatprep.mubr.f32.mxu0 %v1294_v34  ;;  %v1309_v9 = vld [vmem:[#allocation7 + $0x17f0] sm:$0xff] }
 0x414   : > { %v4706_v42 = vpack.c.bf16 %v4930_v26, %v4928_v58  ;;  %v6764_v40 = vpop.f32.mrb[144].mxu1  ;;  %v1310_v58 = vld [vmem:[#allocation7 + $0x17f8] sm:$0xff] }
 0x415   : > { %v4704_v22 = vpack.c.bf16 %v4931_v4, %v4929_v29  ;;  %v3546_v21 = vpop.f32.mrb[80].mxu0  ;;  %v6766_v52 = vpop.f32.mrb[145].mxu1 }
 0x416   : > { %v4932_v37 = vadd.f32 %v3546_v21, %v6563_v55  ;;  %v3548_v13 = vpop.f32.mrb[81].mxu0  ;;  %3863 = vmatmul.mubr.f32.gmra.mrb[186].mxu0 %v1293_v10 }
 0x417   : > { %v4933_v35 = vadd.f32 %v3548_v13, %v6565_v11  ;;  %4705 = vmatprep.subr.bf16.mxu1 %v4704_v22  ;;  %3868 = vmatprep.mubr.f32.mxu0 %v1302_v12 }
 0x418   : > { %4707 = vmatpush1.bf16.msra.mxu1 %v4706_v42  ;;  %v6770_v19 = vpop.f32.mrb[146].mxu1 }
 0x419   : > { %v3552_v34 = vpop.f32.mrb[82].mxu0  ;;  %v6772_v41 = vpop.f32.mrb[147].mxu1 }
 0x41a   : > { %v4934_v29 = vadd.f32 %v3552_v34, %v6569_v32  ;;  %v3554_v26 = vpop.f32.mrb[83].mxu0  ;;  %3869 = vmatmul.mubr.f32.gmra.mrb[188].mxu0 %v1301_v5 }
 0x41b   : > { %v4935_v55 = vadd.f32 %v3554_v26, %v6571_v60  ;;  %3874 = vmatprep.mubr.f32.mxu0 %v1310_v58 }
 0x41c   : > { %v4710_v4 = vpack.c.bf16 %v4934_v29, %v4932_v37  ;;  %v6776_v11 = vpop.f32.mrb[148].mxu1 }
 0x41d   : > { %v4708_v10 = vpack.c.bf16 %v4935_v55, %v4933_v35  ;;  %v3558_v12 = vpop.f32.mrb[84].mxu0  ;;  %v6778_v42 = vpop.f32.mrb[149].mxu1 }
 0x41e   : > { %v4936_v22 = vadd.f32 %v3558_v12, %v6576_v24  ;;  %v3560_v21 = vpop.f32.mrb[85].mxu0  ;;  %3875 = vmatmul.mubr.f32.gmra.mrb[190].mxu0 %v1309_v9 }
 0x41f   : > { %v4937_v13 = vadd.f32 %v3560_v21, %v6578_v18  ;;  %4709 = vmatprep.subr.bf16.mxu1 %v4708_v10 }
 0x420   : > { %4711 = vmatpush1.bf16.msra.mxu1 %v4710_v4  ;;  %v6782_v32 = vpop.f32.mrb[150].mxu1 }
 0x421   : > { %v3564_v60 = vpop.f32.mrb[86].mxu0  ;;  %v6784_v5 = vpop.f32.mrb[151].mxu1 }
 0x422   : > { %v4938_v37 = vadd.f32 %v3564_v60, %v6582_v38  ;;  %v3566_v58 = vpop.f32.mrb[87].mxu0 }
 0x423   : > { %v4939_v35 = vadd.f32 %v3566_v58, %v6584_v15 }
 0x424   : > { %v4714_v34 = vpack.c.bf16 %v4938_v37, %v4936_v22  ;;  %v6788_v29 = vpop.f32.mrb[152].mxu1 }
 0x425   : > { %v4712_v24 = vpack.c.bf16 %v4939_v35, %v4937_v13  ;;  %v3570_v26 = vpop.f32.mrb[88].mxu0  ;;  %v6790_v55 = vpop.f32.mrb[153].mxu1 }
 0x426   : > { %v4940_v18 = vadd.f32 %v3570_v26, %v6588_v45  ;;  %v3572_v9 = vpop.f32.mrb[89].mxu0 }
 0x427   : > { %v4941_v4 = vadd.f32 %v3572_v9, %v6590_v46  ;;  %4713 = vmatprep.subr.bf16.mxu1 %v4712_v24 }
 0x428   : > { %4715 = vmatpush1.bf16.msra.mxu1 %v4714_v34  ;;  %v6794_v10 = vpop.f32.mrb[154].mxu1 }
 0x429   : > { %v3576_v38 = vpop.f32.mrb[90].mxu0  ;;  %v6796_v12 = vpop.f32.mrb[155].mxu1 }
 0x42a   : > { %v4942_v15 = vadd.f32 %v3576_v38, %v6594_v17  ;;  %v3578_v22 = vpop.f32.mrb[91].mxu0 }
 0x42b   : > { %v4943_v21 = vadd.f32 %v3578_v22, %v6596_v56 }
 0x42c   : > { %v4718_v13 = vpack.c.bf16 %v4942_v15, %v4940_v18  ;;  %v6800_v60 = vpop.f32.mrb[156].mxu1 }
 0x42d   : > { %v4716_v37 = vpack.c.bf16 %v4943_v21, %v4941_v4  ;;  %v3582_v45 = vpop.f32.mrb[92].mxu0  ;;  %v6802_v58 = vpop.f32.mrb[157].mxu1 }
 0x42e   : > { %v4944_v46 = vadd.f32 %v3582_v45, %v6600_v59  ;;  %v3584_v35 = vpop.f32.mrb[93].mxu0 }
 0x42f   : > { %v4945_v34 = vadd.f32 %v3584_v35, %v6602_v0  ;;  %4717 = vmatprep.subr.bf16.mxu1 %v4716_v37 }
 0x430   : > { %4719 = vmatpush1.bf16.msra.mxu1 %v4718_v13  ;;  %v6806_v24 = vpop.f32.mrb[158].mxu1 }
 0x431   : > { %v3588_v17 = vpop.f32.mrb[94].mxu0  ;;  %v6808_v26 = vpop.f32.mrb[159].mxu1 }
 0x432   : > { %v4946_v56 = vadd.f32 %v3588_v17, %v6606_v27  ;;  %v3590_v18 = vpop.f32.mrb[95].mxu0 }
 0x433   : > { %v4947_v9 = vadd.f32 %v3590_v18, %v6608_v50 }
 0x434   : > { %v4722_v4 = vpack.c.bf16 %v4946_v56, %v4944_v46  ;;  %v6812_v38 = vpop.f32.mrb[160].mxu1 }
 0x435   : > { %v4720_v15 = vpack.c.bf16 %v4947_v9, %v4945_v34  ;;  %v3594_v59 = vpop.f32.mrb[96].mxu0  ;;  %v6814_v22 = vpop.f32.mrb[161].mxu1 }
 0x436   : > { %v4948_v0 = vadd.f32 %v3594_v59, %v6612_v16  ;;  %v3596_v21 = vpop.f32.mrb[97].mxu0 }
 0x437   : > { %v4949_v13 = vadd.f32 %v3596_v21, %v6614_v20  ;;  %4721 = vmatprep.subr.bf16.mxu1 %v4720_v15 }
 0x438   : > { %4723 = vmatpush1.bf16.msra.mxu1 %v4722_v4  ;;  %v6818_v37 = vpop.f32.mrb[162].mxu1 }
 0x439   : > { %v3600_v27 = vpop.f32.mrb[98].mxu0  ;;  %v6820_v45 = vpop.f32.mrb[163].mxu1 }
 0x43a   : > { %v4950_v50 = vadd.f32 %v3600_v27, %v6618_v51  ;;  %v3602_v46 = vpop.f32.mrb[99].mxu0 }
 0x43b   : > { %v4951_v35 = vadd.f32 %v3602_v46, %v6620_v62 }
 0x43c   : > { %v4726_v34 = vpack.c.bf16 %v4950_v50, %v4948_v0  ;;  %v6824_v17 = vpop.f32.mrb[164].mxu1 }
 0x43d   : > { %v4724_v56 = vpack.c.bf16 %v4951_v35, %v4949_v13  ;;  %v3606_v16 = vpop.f32.mrb[100].mxu0  ;;  %v6826_v18 = vpop.f32.mrb[165].mxu1 }
 0x43e   : > { %v4952_v20 = vadd.f32 %v3606_v16, %v6624_v7  ;;  %v3608_v9 = vpop.f32.mrb[101].mxu0 }
 0x43f   : > { %v4953_v4 = vadd.f32 %v3608_v9, %v6626_v54  ;;  %4725 = vmatprep.subr.bf16.mxu1 %v4724_v56 }
 0x440   : > { %4727 = vmatpush1.bf16.msra.mxu1 %v4726_v34  ;;  %v6830_v15 = vpop.f32.mrb[166].mxu1 }
 0x441   : > { %v3612_v51 = vpop.f32.mrb[102].mxu0  ;;  %v6832_v59 = vpop.f32.mrb[167].mxu1 }
 0x442   : > { %v4954_v62 = vadd.f32 %v3612_v51, %v6630_v39  ;;  %v3614_v0 = vpop.f32.mrb[103].mxu0 }
 0x443   : > { %v4955_v21 = vadd.f32 %v3614_v0, %v6632_v44 }
 0x444   : > { %v4730_v13 = vpack.c.bf16 %v4954_v62, %v4952_v20  ;;  %v6836_v27 = vpop.f32.mrb[168].mxu1 }
 0x445   : > { %7136 = vst [vmem:[#allocation38_spill] sm:$0xff] %v6836_v27  ;;  %v4728_v50 = vpack.c.bf16 %v4955_v21, %v4953_v4  ;;  %v3618_v7 = vpop.f32.mrb[104].mxu0  ;;  %v6838_v46 = vpop.f32.mrb[169].mxu1 }
 0x446   : > { %7137 = vst [vmem:[#allocation39_spill] sm:$0xff] %v6838_v46  ;;  %v4956_v54 = vadd.f32 %v3618_v7, %v6636_v48  ;;  %v3620_v35 = vpop.f32.mrb[105].mxu0  ;;  %v1313_v46 = vld [vmem:[%s5997_s17 + $0x10] sm:$0xff] }
 0x447   : > { %v4957_v34 = vadd.f32 %v3620_v35, %v6638_v49  ;;  %4729 = vmatprep.subr.bf16.mxu1 %v4728_v50 }
 0x448   : > { %4731 = vmatpush1.bf16.msra.mxu1 %v4730_v13  ;;  %v6842_v56 = vpop.f32.mrb[170].mxu1 }
 0x449   : > { %7138 = vst [vmem:[#allocation42_spill] sm:$0xff] %v6842_v56  ;;  %v3624_v39 = vpop.f32.mrb[106].mxu0  ;;  %v6844_v16 = vpop.f32.mrb[171].mxu1 }
 0x44a   : > { %7139 = vst [vmem:[#allocation43_spill] sm:$0xff] %v6844_v16  ;;  %v4958_v44 = vadd.f32 %v3624_v39, %v6642_v25  ;;  %v3626_v20 = vpop.f32.mrb[107].mxu0  ;;  %v7145_v39 = vld [vmem:[#allocation41_spill] sm:$0xff] }
 0x44b   : > { %v4959_v9 = vadd.f32 %v3626_v20, %v6644_v30  ;;  %v7144_v30 = vld [vmem:[#allocation40_spill] sm:$0xff] }
 0x44c   : > { %v4734_v4 = vpack.c.bf16 %v4958_v44, %v4956_v54  ;;  %v6848_v51 = vpop.f32.mrb[172].mxu1 }
 0x44d   : > { %7140 = vst [vmem:[#allocation44_spill] sm:$0xff] %v6848_v51  ;;  %v4732_v62 = vpack.c.bf16 %v4959_v9, %v4957_v34  ;;  %v3630_v48 = vpop.f32.mrb[108].mxu0  ;;  %v6850_v0 = vpop.f32.mrb[173].mxu1 }
 0x44e   : > { %7141 = vst [vmem:[#allocation45_spill] sm:$0xff] %v6850_v0  ;;  %v4960_v49 = vadd.f32 %v3630_v48, %v6648_v3  ;;  %v3632_v21 = vpop.f32.mrb[109].mxu0 }
 0x44f   : > { %v4961_v13 = vadd.f32 %v3632_v21, %v6650_v2  ;;  %4733 = vmatprep.subr.bf16.mxu1 %v4732_v62  ;;  %v7148_v2 = vld [vmem:[#allocation19_spill] sm:$0xff]  ;;  %v7149_v21 = vld [vmem:[#allocation20_spill] sm:$0xff] }
 0x450   : > { %4735 = vmatpush1.bf16.msra.mxu1 %v4734_v4  ;;  %v6854_v50 = vpop.f32.mrb[174].mxu1 }
 0x451   : > { %7142 = vst [vmem:[#allocation46_spill] sm:$0xff] %v6854_v50  ;;  %v3636_v25 = vpop.f32.mrb[110].mxu0  ;;  %v6856_v7 = vpop.f32.mrb[175].mxu1 }
 0x452   : > { %7143 = vst [vmem:[#allocation47_spill] sm:$0xff] %v6856_v7  ;;  %v4962_v54 = vadd.f32 %v3636_v25, %v7144_v30  ;;  %v3638_v35 = vpop.f32.mrb[111].mxu0 }
 0x453   : > { %v4963_v34 = vadd.f32 %v3638_v35, %v7145_v39  ;;  %v7152_v35 = vld [vmem:[#allocation21_spill] sm:$0xff]  ;;  %v7153_v39 = vld [vmem:[#allocation22_spill] sm:$0xff] }
 0x454   : > { %v4738_v44 = vpack.c.bf16 %v4962_v54, %v4960_v49  ;;  %v6860_v20 = vpop.f32.mrb[176].mxu1 }
 0x455   : > { %7146 = vst [vmem:[#allocation40_spill] sm:$0xff] %v6860_v20  ;;  %v4736_v9 = vpack.c.bf16 %v4963_v34, %v4961_v13  ;;  %v3642_v3 = vpop.f32.mrb[112].mxu0  ;;  %v6862_v48 = vpop.f32.mrb[177].mxu1 }
 0x456   : > { %7147 = vst [vmem:[#allocation41_spill] sm:$0xff] %v6862_v48  ;;  %v4964_v62 = vadd.f32 %v3642_v3, %v7148_v2  ;;  %v3644_v4 = vpop.f32.mrb[113].mxu0 }
 0x457   : > { %v4965_v50 = vadd.f32 %v3644_v4, %v7149_v21  ;;  %4737 = vmatprep.subr.bf16.mxu1 %v4736_v9  ;;  %v7156_v4 = vld [vmem:[#allocation23_spill] sm:$0xff]  ;;  %v7157_v21 = vld [vmem:[#allocation24_spill] sm:$0xff] }
 0x458   : > { %4739 = vmatpush1.bf16.msra.mxu1 %v4738_v44  ;;  %v6866_v7 = vpop.f32.mrb[178].mxu1 }
 0x459   : > { %7150 = vst [vmem:[#allocation19_spill] sm:$0xff] %v6866_v7  ;;  %v3648_v25 = vpop.f32.mrb[114].mxu0  ;;  %v6868_v30 = vpop.f32.mrb[179].mxu1 }
 0x45a   : > { %7151 = vst [vmem:[#allocation20_spill] sm:$0xff] %v6868_v30  ;;  %v4966_v49 = vadd.f32 %v3648_v25, %v7152_v35  ;;  %v3650_v54 = vpop.f32.mrb[115].mxu0 }
 0x45b   : > { %v4967_v13 = vadd.f32 %v3650_v54, %v7153_v39  ;;  %v7160_v54 = vld [vmem:[#allocation25_spill] sm:$0xff]  ;;  %v7058_v39 = vlaneseq }
 0x45c   : > { %v4742_v34 = vpack.c.bf16 %v4966_v49, %v4964_v62  ;;  %v6872_v20 = vpop.f32.mrb[180].mxu1 }
 0x45d   : > { %7154 = vst [vmem:[#allocation21_spill] sm:$0xff] %v6872_v20  ;;  %v4740_v48 = vpack.c.bf16 %v4967_v13, %v4965_v50  ;;  %v3654_v3 = vpop.f32.mrb[116].mxu0  ;;  %v6874_v2 = vpop.f32.mrb[181].mxu1  ;;  %v7161_v50 = vld [vmem:[#allocation26_spill] sm:$0xff] }
 0x45e   : > { %7155 = vst [vmem:[#allocation22_spill] sm:$0xff] %v6874_v2  ;;  %v4968_v9 = vadd.f32 %v3654_v3, %v7156_v4  ;;  %v3656_v44 = vpop.f32.mrb[117].mxu0 }
 0x45f   : > { %v4969_v7 = vadd.f32 %v3656_v44, %v7157_v21  ;;  %4741 = vmatprep.subr.bf16.mxu1 %v4740_v48  ;;  %v7164_v48 = vld [vmem:[#allocation27_spill] sm:$0xff]  ;;  %v6890_v21 = vshrl.u32 %v7058_v39, 7  ;;  %v3881_v39 = vld [vmem:[#allocation9] sm:$0x3f] }
 0x460   : > { %4743 = vmatpush1.bf16.msra.mxu1 %v4742_v34  ;;  %v6878_v30 = vpop.f32.mrb[182].mxu1 }
 0x461   : > { %7158 = vst [vmem:[#allocation23_spill] sm:$0xff] %v6878_v30  ;;  %v3660_v25 = vpop.f32.mrb[118].mxu0  ;;  %v6880_v35 = vpop.f32.mrb[183].mxu1  ;;  %v3893_v16 = vsub.s32 2, %v6890_v21 }
 0x462   : > { %7159 = vst [vmem:[#allocation24_spill] sm:$0xff] %v6880_v35  ;;  %v4970_v62 = vadd.f32 %v3660_v25, %v7160_v54  ;;  %v3662_v49 = vpop.f32.mrb[119].mxu0  ;;  %v7165_v35 = vld [vmem:[#allocation28_spill] sm:$0xff] }
 0x463   : > { %v4971_v13 = vadd.f32 %v3662_v49, %v7161_v50  ;;  %v3885_v50 = vsub.s32 0, %v6890_v21 }
 0x464   : > { %v4746_v20 = vpack.c.bf16 %v4970_v62, %v4968_v9  ;;  %v6884_v2 = vpop.f32.mrb[184].mxu1  ;;  %v7168_v62 = vld [vmem:[#allocation29_spill] sm:$0xff] }
 0x465   : > { %7162 = vst [vmem:[#allocation25_spill] sm:$0xff] %v6884_v2  ;;  %v4744_v3 = vpack.c.bf16 %v4971_v13, %v4969_v7  ;;  %v3666_v4 = vpop.f32.mrb[120].mxu0  ;;  %v6886_v0 = vpop.f32.mrb[185].mxu1  ;;  %v3889_v13 = vsub.s32 1, %v6890_v21 }
 0x466   : > { %7163 = vst [vmem:[#allocation26_spill] sm:$0xff] %v6886_v0  ;;  %v4972_v34 = vadd.f32 %v3666_v4, %v7164_v48  ;;  %v3668_v44 = vpop.f32.mrb[121].mxu0  ;;  %v7169_v4 = vld [vmem:[#allocation30_spill] sm:$0xff] }
 0x467   : > { %v4973_v30 = vadd.f32 %v3668_v44, %v7165_v35  ;;  %4745 = vmatprep.subr.bf16.mxu1 %v4744_v3 }
 0x468   : > { %4747 = vmatpush1.bf16.msra.mxu1 %v4746_v20  ;;  %v6893_v25 = vpop.f32.mrb[186].mxu1 }
 0x469   : > { %7166 = vst [vmem:[#allocation27_spill] sm:$0xff] %v6893_v25  ;;  %v3672_v54 = vpop.f32.mrb[122].mxu0  ;;  %v6895_v9 = vpop.f32.mrb[187].mxu1  ;;  %v7172_v25 = vld [vmem:[#allocation31_spill] sm:$0xff] }
 0x46a   : > { %7167 = vst [vmem:[#allocation28_spill] sm:$0xff] %v6895_v9  ;;  %v4974_v7 = vadd.f32 %v3672_v54, %v7168_v62  ;;  %v3674_v49 = vpop.f32.mrb[123].mxu0  ;;  %v3886_v54 = vrot.slane %v3881_v39, %v3885_v50  ;;  %v3890_v62 = vrot.slane %v3881_v39, %v3889_v13  ;;  %v5529_v13 = vld [vmem:[%s5997_s17 + $0x8] sm:$0xff] }
 0x46b   : > { %v4975_v48 = vadd.f32 %v3674_v49, %v7169_v4  ;;  %v7175_v4 = vld [vmem:[#allocation32_spill] sm:$0xff] }
 0x46c   : > { %v4750_v0 = vpack.c.bf16 %v4974_v7, %v4972_v34  ;;  %v6901_v2 = vpop.f32.mrb[188].mxu1  ;;  %v3897_v7 = vsub.s32 3, %v6890_v21  ;;  %v3913_v50 = vmul.f32 %v3886_v54, %v6717_v36 }
 0x46d   : > { %7170 = vst [vmem:[#allocation29_spill] sm:$0xff] %v6901_v2  ;;  %v4748_v35 = vpack.c.bf16 %v4975_v48, %v4973_v30  ;;  %v3678_v20 = vpop.f32.mrb[124].mxu0  ;;  %v6903_v3 = vpop.f32.mrb[189].mxu1 }
 0x46e   : > { %7171 = vst [vmem:[#allocation30_spill] sm:$0xff] %v6903_v3  ;;  %v4976_v44 = vadd.f32 %v3678_v20, %v6696_v47  ;;  %v3680_v9 = vpop.f32.mrb[125].mxu0  ;;  %v3914_v20 = vmul.f32 %v5529_v13, %v3890_v62  ;;  %v3898_v2 = vrot.slane %v3881_v39, %v3897_v7  ;;  %v1316_v62 = vld [vmem:[%s5997_s17 + $0x28] sm:$0xff] }
 0x46f   : > { %v4977_v51 = vadd.f32 %v3680_v9, %v7172_v25  ;;  %4749 = vmatprep.subr.bf16.mxu1 %v4748_v35  ;;  %v7176_v25 = vld [vmem:[#allocation33_spill] sm:$0xff]  ;;  %v3894_v35 = vrot.slane %v3881_v39, %v3893_v16 }
 0x470   : > { %4751 = vmatpush1.bf16.msra.mxu1 %v4750_v0  ;;  %v6908_v49 = vpop.f32.mrb[190].mxu1  ;;  %v3919_v27 = vadd.f32 %v3914_v20, %v3913_v50  ;;  %v3916_v54 = vmul.f32 %v3898_v2, %v6730_v28 }
 0x471   : > { %7173 = vst [vmem:[#allocation31_spill] sm:$0xff] %v6908_v49  ;;  %v3684_v34 = vpop.f32.mrb[126].mxu0  ;;  %v6910_v30 = vpop.f32.mrb[191].mxu1 }
 0x472   : > { %7174 = vst [vmem:[#allocation48_spill] sm:$0xff] %v6910_v30  ;;  %v4978_v48 = vadd.f32 %v3684_v34, %v7175_v4  ;;  %v3686_v47 = vpop.f32.mrb[127].mxu0  ;;  %v3915_v4 = vmul.f32 %v3894_v35, %v1313_v46 }
 0x473   : > { %v4979_v9 = vadd.f32 %v3686_v47, %v7176_v25  ;;  %v7177_v47 = vld [vmem:[#allocation34_spill] sm:$0xff] }
 0x474   : > { %v4754_v0 = vpack.c.bf16 %v4978_v48, %v4976_v44  ;;  %v7178_v44 = vld [vmem:[#allocation35_spill] sm:$0xff]  ;;  %v3920_v48 = vadd.f32 %v3919_v27, %v3915_v4  ;;  %v7180_v4 = vld [vmem:[#allocation37_spill] sm:$0xff] }
 0x475   : > { %v4752_v3 = vpack.c.bf16 %v4979_v9, %v4977_v51  ;;  %v3690_v49 = vpop.f32.mrb[128].mxu0  ;;  %v6928_v25 = vld [vmem:[%s5997_s17 + $0x20] sm:$0xff] }
 0x476   : > { %v4980_v56 = vadd.f32 %v3690_v49, %v6708_v53  ;;  %v3692_v30 = vpop.f32.mrb[129].mxu0  ;;  %v3901_v53 = vsub.s32 4, %v6890_v21  ;;  %v3905_v49 = vsub.s32 5, %v6890_v21  ;;  %v3921_v28 = vadd.f32 %v3920_v48, %v3916_v54  ;;  %v7179_v9 = vld [vmem:[#allocation36_spill] sm:$0xff] }
 0x477   : > { %v4981_v34 = vadd.f32 %v3692_v30, %v6710_v1  ;;  %4753 = vmatprep.subr.bf16.mxu1 %v4752_v3 }
 0x478   : > { %4755 = vmatpush1.bf16.msra.mxu1 %v4754_v0  ;;  %v3902_v50 = vrot.slane %v3881_v39, %v3901_v53  ;;  %v3906_v13 = vrot.slane %v3881_v39, %v3905_v49 }
 0x479   : > { %v3696_v36 = vpop.f32.mrb[130].mxu0 }
 0x47a   : > { %v4982_v16 = vadd.f32 %v3696_v36, %v7177_v47  ;;  %v3698_v51 = vpop.f32.mrb[131].mxu0  ;;  %v3918_v0 = vmul.f32 %v3906_v13, %v1316_v62 }
 0x47b   : > { %v4983_v7 = vadd.f32 %v3698_v51, %v7178_v44  ;;  %4062 = vmatmul.mubr.f32.vlgmr.msra.gmra.mrb[192].mxu1 %v1313_v46  ;;  %v3917_v46 = vmul.f32 %v3902_v50, %v6928_v25 }
 0x47c   : > { %v4758_v1 = vpack.c.bf16 %v4982_v16, %v4980_v56  ;;  %4132 = vmatprep.mubr.f32.mxu1 %v1316_v62 }
 0x47d   : > { %v4756_v3 = vpack.c.bf16 %v4983_v7, %v4981_v34  ;;  %v3702_v30 = vpop.f32.mrb[132].mxu0  ;;  %v3922_v56 = vadd.f32 %v3921_v28, %v3917_v46 }
 0x47e   : > { %v4984_v2 = vadd.f32 %v3702_v30, %v6724_v31  ;;  %v3704_v20 = vpop.f32.mrb[133].mxu0 }
 0x47f   : > { %v4985_v35 = vadd.f32 %v3704_v20, %v7179_v9  ;;  %4757 = vmatprep.subr.bf16.mxu1 %v4756_v3  ;;  %v3923_v54 = vadd.f32 %v3922_v56, %v3918_v0 }
 0x480   : > { %4759 = vmatpush1.bf16.msra.mxu1 %v4758_v1 }
 0x481   : > { %v3708_v27 = vpop.f32.mrb[134].mxu0  ;;  %3924 = vadd.xlane.f32.xlu0 %v3923_v54 }
 0x482   : > { %v4986_v34 = vadd.f32 %v3708_v27, %v7180_v4  ;;  %v3710_v36 = vpop.f32.mrb[135].mxu0 }
 0x483   : > { %v4987_v39 = vadd.f32 %v3710_v36, %v6736_v23 }
 0x484   : > { %v4762_v47 = vpack.c.bf16 %v4986_v34, %v4984_v2 }
 0x485   : > { %v4760_v31 = vpack.c.bf16 %v4987_v39, %v4985_v35  ;;  %v3714_v16 = vpop.f32.mrb[136].mxu0 }
 0x486   : > { %v4988_v51 = vadd.f32 %v3714_v16, %v6740_v33  ;;  %v3716_v44 = vpop.f32.mrb[137].mxu0 }
 0x487   : > { %v4989_v7 = vadd.f32 %v3716_v44, %v6742_v61  ;;  %4761 = vmatprep.subr.bf16.mxu1 %v4760_v31 }
 0x488   : > { %4763 = vmatpush1.bf16.msra.mxu1 %v4762_v47 }
 0x489   : > { %v3720_v62 = vpop.f32.mrb[138].mxu0 }
 0x48a   : > { %v4990_v53 = vadd.f32 %v3720_v62, %v6746_v63  ;;  %v3722_v49 = vpop.f32.mrb[139].mxu0 }
 0x48b   : > { %v4991_v48 = vadd.f32 %v3722_v49, %v6748_v43 }
 0x48c   : > { %v4766_v1 = vpack.c.bf16 %v4990_v53, %v4988_v51 }
 0x48d   : > { %v4764_v23 = vpack.c.bf16 %v4991_v48, %v4989_v7  ;;  %v3726_v3 = vpop.f32.mrb[140].mxu0 }
 0x48e   : > { %v4992_v30 = vadd.f32 %v3726_v3, %v6752_v57  ;;  %v3728_v50 = vpop.f32.mrb[141].mxu0 }
 0x48f   : > { %v4993_v13 = vadd.f32 %v3728_v50, %v6754_v8  ;;  %4765 = vmatprep.subr.bf16.mxu1 %v4764_v23 }
 0x490   : > { %4767 = vmatpush1.bf16.msra.mxu1 %v4766_v1 }
 0x491   : > { %v3732_v33 = vpop.f32.mrb[142].mxu0 }
 0x492   : > { %v4994_v61 = vadd.f32 %v3732_v33, %v6758_v14  ;;  %v3734_v28 = vpop.f32.mrb[143].mxu0 }
 0x493   : > { %v4995_v2 = vadd.f32 %v3734_v28, %v6760_v6 }
 0x494   : > { %v4770_v63 = vpack.c.bf16 %v4994_v61, %v4992_v30 }
 0x495   : > { %v4768_v20 = vpack.c.bf16 %v4995_v2, %v4993_v13  ;;  %v3738_v9 = vpop.f32.mrb[144].mxu0 }
 0x496   : > { %v4996_v43 = vadd.f32 %v3738_v9, %v6764_v40  ;;  %v3740_v35 = vpop.f32.mrb[145].mxu0 }
 0x497   : > { %v4997_v46 = vadd.f32 %v3740_v35, %v6766_v52  ;;  %4769 = vmatprep.subr.bf16.mxu1 %v4768_v20 }
 0x498   : > { %4771 = vmatpush1.bf16.msra.mxu1 %v4770_v63 }
 0x499   : > { %v3744_v57 = vpop.f32.mrb[146].mxu0 }
 0x49a   : > { %v4998_v8 = vadd.f32 %v3744_v57, %v6770_v19  ;;  %v3746_v0 = vpop.f32.mrb[147].mxu0 }
 0x49b   : > { %v4999_v27 = vadd.f32 %v3746_v0, %v6772_v41  ;;  %v7182_v0 = vld [vmem:[#allocation39_spill] sm:$0xff] }
 0x49c   : > { %v4774_v14 = vpack.c.bf16 %v4998_v8, %v4996_v43 }
 0x49d   : > { %v4772_v56 = vpack.c.bf16 %v4999_v27, %v4997_v46  ;;  %v3750_v4 = vpop.f32.mrb[148].mxu0 }
 0x49e   : > { %v5000_v6 = vadd.f32 %v3750_v4, %v6776_v11  ;;  %v3752_v34 = vpop.f32.mrb[149].mxu0  ;;  %v7184_v4 = vld [vmem:[#allocation43_spill] sm:$0xff] }
 0x49f   : > { %v5001_v36 = vadd.f32 %v3752_v34, %v6778_v42  ;;  %4773 = vmatprep.subr.bf16.mxu1 %v4772_v56 }
 0x4a0   : > { %4775 = vmatpush1.bf16.msra.mxu1 %v4774_v14 }
 0x4a1   : > { %v3756_v40 = vpop.f32.mrb[150].mxu0 }
 0x4a2   : > { %v5002_v52 = vadd.f32 %v3756_v40, %v6782_v32  ;;  %v3758_v39 = vpop.f32.mrb[151].mxu0 }
 0x4a3   : > { %v5003_v54 = vadd.f32 %v3758_v39, %v6784_v5  ;;  %v7186_v39 = vld [vmem:[#allocation45_spill] sm:$0xff] }
 0x4a4   : > { %v4778_v19 = vpack.c.bf16 %v5002_v52, %v5000_v6 }
 0x4a5   : > { %v4776_v47 = vpack.c.bf16 %v5003_v54, %v5001_v36  ;;  %v3762_v31 = vpop.f32.mrb[152].mxu0 }
 0x4a6   : > { %v5004_v41 = vadd.f32 %v3762_v31, %v6788_v29  ;;  %v3764_v16 = vpop.f32.mrb[153].mxu0 }
 0x4a7   : > { %v5005_v51 = vadd.f32 %v3764_v16, %v6790_v55  ;;  %4777 = vmatprep.subr.bf16.mxu1 %v4776_v47  ;;  %v7187_v47 = vld [vmem:[#allocation46_spill] sm:$0xff]  ;;  %v7188_v16 = vld [vmem:[#allocation47_spill] sm:$0xff] }
 0x4a8   : > { %4779 = vmatpush1.bf16.msra.mxu1 %v4778_v19 }
 0x4a9   : > { %v3768_v11 = vpop.f32.mrb[154].mxu0 }
 0x4aa   : > { %v5006_v42 = vadd.f32 %v3768_v11, %v6794_v10  ;;  %v3770_v44 = vpop.f32.mrb[155].mxu0 }
 0x4ab   : > { %v5007_v7 = vadd.f32 %v3770_v44, %v6796_v12 }
 0x4ac   : > { %v4782_v32 = vpack.c.bf16 %v5006_v42, %v5004_v41 }
 0x4ad   : > { %v4780_v62 = vpack.c.bf16 %v5007_v7, %v5005_v51  ;;  %v3774_v53 = vpop.f32.mrb[156].mxu0  ;;  %v7189_v7 = vld [vmem:[#allocation40_spill] sm:$0xff] }
 0x4ae   : > { %v5008_v5 = vadd.f32 %v3774_v53, %v6800_v60  ;;  %v3776_v49 = vpop.f32.mrb[157].mxu0  ;;  %v7190_v53 = vld [vmem:[#allocation41_spill] sm:$0xff] }
 0x4af   : > { %v5009_v48 = vadd.f32 %v3776_v49, %v6802_v58  ;;  %4781 = vmatprep.subr.bf16.mxu1 %v4780_v62 }
 0x4b0   : > { %4783 = vmatpush1.bf16.msra.mxu1 %v4782_v32 }
 0x4b1   : > { %v3780_v29 = vpop.f32.mrb[158].mxu0 }
 0x4b2   : > { %v5010_v55 = vadd.f32 %v3780_v29, %v6806_v24  ;;  %v3782_v1 = vpop.f32.mrb[159].mxu0 }
 0x4b3   : > { %v5011_v23 = vadd.f32 %v3782_v1, %v6808_v26  ;;  %v7192_v1 = vld [vmem:[#allocation20_spill] sm:$0xff] }
 0x4b4   : > { %v4786_v10 = vpack.c.bf16 %v5010_v55, %v5008_v5 }
 0x4b5   : > { %v4784_v3 = vpack.c.bf16 %v5011_v23, %v5009_v48  ;;  %v3786_v30 = vpop.f32.mrb[160].mxu0  ;;  %v7191_v48 = vld [vmem:[#allocation19_spill] sm:$0xff] }
 0x4b6   : > { %v5012_v12 = vadd.f32 %v3786_v30, %v6812_v38  ;;  %v3788_v50 = vpop.f32.mrb[161].mxu0 }
 0x4b7   : > { %v5013_v13 = vadd.f32 %v3788_v50, %v6814_v22  ;;  %4785 = vmatprep.subr.bf16.mxu1 %v4784_v3 }
 0x4b8   : > { %4787 = vmatpush1.bf16.msra.mxu1 %v4786_v10 }
 0x4b9   : > { %v3792_v60 = vpop.f32.mrb[162].mxu0 }
 0x4ba   : > { %v5014_v58 = vadd.f32 %v3792_v60, %v6818_v37  ;;  %v3794_v33 = vpop.f32.mrb[163].mxu0  ;;  %v7194_v60 = vld [vmem:[#allocation22_spill] sm:$0xff] }
 0x4bb   : > { %v5015_v61 = vadd.f32 %v3794_v33, %v6820_v45  ;;  %v7181_v45 = vld [vmem:[#allocation38_spill] sm:$0xff] }
 0x4bc   : > { %v4790_v24 = vpack.c.bf16 %v5014_v58, %v5012_v12  ;;  %v7193_v12 = vld [vmem:[#allocation21_spill] sm:$0xff] }
 0x4bd   : > { %v4788_v28 = vpack.c.bf16 %v5015_v61, %v5013_v13  ;;  %v3798_v2 = vpop.f32.mrb[164].mxu0  ;;  %v7195_v61 = vld [vmem:[#allocation23_spill] sm:$0xff] }
 0x4be   : > { %v5016_v26 = vadd.f32 %v3798_v2, %v6824_v17  ;;  %v3800_v63 = vpop.f32.mrb[165].mxu0  ;;  %v7196_v2 = vld [vmem:[#allocation24_spill] sm:$0xff] }
 0x4bf   : > { %v5017_v20 = vadd.f32 %v3800_v63, %v6826_v18  ;;  %4789 = vmatprep.subr.bf16.mxu1 %v4788_v28  ;;  %v7183_v18 = vld [vmem:[#allocation42_spill] sm:$0xff] }
 0x4c0   : > { %4791 = vmatpush1.bf16.msra.mxu1 %v4790_v24 }
 0x4c1   : > { %v3804_v38 = vpop.f32.mrb[166].mxu0 }
 0x4c2   : > { %v5018_v22 = vadd.f32 %v3804_v38, %v6830_v15  ;;  %v3806_v9 = vpop.f32.mrb[167].mxu0 }
 0x4c3   : > { %v5019_v43 = vadd.f32 %v3806_v9, %v6832_v59  ;;  %v7185_v59 = vld [vmem:[#allocation44_spill] sm:$0xff] }
 0x4c4   : > { %v4794_v37 = vpack.c.bf16 %v5018_v22, %v5016_v26  ;;  %v7197_v22 = vld [vmem:[#allocation25_spill] sm:$0xff] }
 0x4c5   : > { %v4792_v35 = vpack.c.bf16 %v5019_v43, %v5017_v20  ;;  %v3810_v46 = vpop.f32.mrb[168].mxu0 }
 0x4c6   : > { %v5020_v57 = vadd.f32 %v3810_v46, %v7181_v45  ;;  %v3812_v8 = vpop.f32.mrb[169].mxu0  ;;  %v7199_v45 = vld [vmem:[#allocation27_spill] sm:$0xff] }
 0x4c7   : > { %v5021_v27 = vadd.f32 %v3812_v8, %v7182_v0  ;;  %4793 = vmatprep.subr.bf16.mxu1 %v4792_v35  ;;  %v7200_v0 = vld [vmem:[#allocation28_spill] sm:$0xff] }
 0x4c8   : > { %4795 = vmatpush1.bf16.msra.mxu1 %v4794_v37  ;;  %v7198_v37 = vld [vmem:[#allocation26_spill] sm:$0xff] }
 0x4c9   : > { %v3816_v17 = vpop.f32.mrb[170].mxu0 }
 0x4ca   : > { %v5022_v14 = vadd.f32 %v3816_v17, %v7183_v18  ;;  %v3818_v56 = vpop.f32.mrb[171].mxu0 }
 0x4cb   : > { %v5023_v6 = vadd.f32 %v3818_v56, %v7184_v4  ;;  %v7201_v56 = vld [vmem:[#allocation29_spill] sm:$0xff] }
 0x4cc   : > { %v4798_v15 = vpack.c.bf16 %v5022_v14, %v5020_v57 }
 0x4cd   : > { %v4796_v34 = vpack.c.bf16 %v5023_v6, %v5021_v27  ;;  %v3822_v36 = vpop.f32.mrb[172].mxu0 }
 0x4ce   : > { %v5024_v40 = vadd.f32 %v3822_v36, %v7185_v59  ;;  %v3824_v52 = vpop.f32.mrb[173].mxu0  ;;  %v7203_v59 = vld [vmem:[#allocation31_spill] sm:$0xff] }
 0x4cf   : > { %v5025_v54 = vadd.f32 %v3824_v52, %v7186_v39  ;;  %4797 = vmatprep.subr.bf16.mxu1 %v4796_v34  ;;  %v7204_v39 = vld [vmem:[#allocation48_spill] sm:$0xff] }
 0x4d0   : > { %4799 = vmatpush1.bf16.msra.mxu1 %v4798_v15  ;;  %v7202_v15 = vld [vmem:[#allocation30_spill] sm:$0xff] }
 0x4d1   : > { %v3828_v19 = vpop.f32.mrb[174].mxu0 }
 0x4d2   : > { %v5026_v31 = vadd.f32 %v3828_v19, %v7187_v47  ;;  %v3830_v41 = vpop.f32.mrb[175].mxu0 }
 0x4d3   : > { %v5027_v51 = vadd.f32 %v3830_v41, %v7188_v16 }
 0x4d4   : > { %v4802_v11 = vpack.c.bf16 %v5026_v31, %v5024_v40  ;;  %v4141_v31 = vstv %s286_s13 }
 0x4d5   : > { %v4800_v42 = vpack.c.bf16 %v5027_v51, %v5025_v54  ;;  %v3834_v44 = vpop.f32.mrb[176].mxu0  ;;  %vm4142_vm0 = vcmp.lt.s32.totalorder %v6890_v21, %v4141_v31 }
 0x4d6   : > { %v5028_v32 = vadd.f32 %v3834_v44, %v7189_v7  ;;  %v3836_v62 = vpop.f32.mrb[177].mxu0 }
 0x4d7   : > { %v5029_v5 = vadd.f32 %v3836_v62, %v7190_v53  ;;  %4801 = vmatprep.subr.bf16.mxu1 %v4800_v42 }
 0x4d8   : > { %4803 = vmatpush1.bf16.msra.mxu1 %v4802_v11 }
 0x4d9   : > { %v3840_v49 = vpop.f32.mrb[178].mxu0 }
 0x4da   : > { %v5030_v29 = vadd.f32 %v3840_v49, %v7191_v48  ;;  %v3842_v55 = vpop.f32.mrb[179].mxu0 }
 0x4db   : > { %v5031_v23 = vadd.f32 %v3842_v55, %v7192_v1 }
 0x4dc   : > { %v4806_v10 = vpack.c.bf16 %v5030_v29, %v5028_v32 }
 0x4dd   : > { %v4804_v3 = vpack.c.bf16 %v5031_v23, %v5029_v5  ;;  %v3846_v30 = vpop.f32.mrb[180].mxu0 }
 0x4de   : > { %v5032_v50 = vadd.f32 %v3846_v30, %v7193_v12  ;;  %v3848_v13 = vpop.f32.mrb[181].mxu0 }
 0x4df   : > { %v5033_v58 = vadd.f32 %v3848_v13, %v7194_v60  ;;  %4805 = vmatprep.subr.bf16.mxu1 %v4804_v3 }
 0x4e0   : > { %4807 = vmatpush1.bf16.msra.mxu1 %v4806_v10 }
 0x4e1   : > { %v3852_v33 = vpop.f32.mrb[182].mxu0 }
 0x4e2   : > { %v5034_v24 = vadd.f32 %v3852_v33, %v7195_v61  ;;  %v3854_v28 = vpop.f32.mrb[183].mxu0 }
 0x4e3   : > { %v5035_v26 = vadd.f32 %v3854_v28, %v7196_v2 }
 0x4e4   : > { %v4810_v63 = vpack.c.bf16 %v5034_v24, %v5032_v50 }
 0x4e5   : > { %v4808_v20 = vpack.c.bf16 %v5035_v26, %v5033_v58  ;;  %v3858_v38 = vpop.f32.mrb[184].mxu0 }
 0x4e6   : > { %v5036_v9 = vadd.f32 %v3858_v38, %v7197_v22  ;;  %v3860_v43 = vpop.f32.mrb[185].mxu0 }
 0x4e7   : > { %v5037_v35 = vadd.f32 %v3860_v43, %v7198_v37  ;;  %4809 = vmatprep.subr.bf16.mxu1 %v4808_v20 }
 0x4e8   : > { %4811 = vmatpush1.bf16.msra.mxu1 %v4810_v63 }
 0x4e9   : > { %v3864_v46 = vpop.f32.mrb[186].mxu0 }
 0x4ea   : > { %v5038_v57 = vadd.f32 %v3864_v46, %v7199_v45  ;;  %v3866_v8 = vpop.f32.mrb[187].mxu0 }
 0x4eb   : > { %v5039_v27 = vadd.f32 %v3866_v8, %v7200_v0 }
 0x4ec   : > { %v4814_v17 = vpack.c.bf16 %v5038_v57, %v5036_v9 }
 0x4ed   : > { %v4812_v18 = vpack.c.bf16 %v5039_v27, %v5037_v35  ;;  %v3870_v14 = vpop.f32.mrb[188].mxu0 }
 0x4ee   : > { %v5040_v4 = vadd.f32 %v3870_v14, %v7201_v56  ;;  %v3872_v6 = vpop.f32.mrb[189].mxu0 }
 0x4ef   : > { %v5041_v34 = vadd.f32 %v3872_v6, %v7202_v15  ;;  %4813 = vmatprep.subr.bf16.mxu1 %v4812_v18 }
 0x4f0   : > { %4815 = vmatpush1.bf16.msra.mxu1 %v4814_v17 }
 0x4f1   : > { %v3876_v36 = vpop.f32.mrb[190].mxu0 }
 0x4f2   : > { %v5042_v40 = vadd.f32 %v3876_v36, %v7203_v59  ;;  %v3878_v52 = vpop.f32.mrb[191].mxu0 }
 0x4f3   : > { %v5043_v54 = vadd.f32 %v3878_v52, %v7204_v39  ;;  %v5743_v52 = vmov 1966171168  }
 0x4f4   : > { %v4818_v19 = vpack.c.bf16 %v5042_v40, %v5040_v4  ;;  %v4205_v39 = vunpack.c.l.s4 %v5743_v52 }
 0x4f5   : > { %v4816_v47 = vpack.c.bf16 %v5043_v54, %v5041_v34 }
 0x4f6   : > { %v4206_v54 = vunpack.c.0.s8 %v4205_v39 }
 0x4f7   : > { %4817 = vmatprep.subr.bf16.mxu1 %v4816_v47 }
 0x4f8   : > { %4819 = vmatpush1.bf16.msra.mxu1 %v4818_v19  ;;  %v4209_v47 = vsub.s32 %v4206_v54, %v6890_v21 }
 0x4fb   : > { %4133 = vmatmul.mubr.f32.vlgmr.msra.gmra.mrb[192].mxu1 %v6928_v25 }
 0x50e   : > { %v3925_v41 = vpop.xlane.xlu0 %3924 }
 0x5ce   : > { %v4134_v16 = vpop.f32.mrb[192].mxu1 }
 0x5cf   : > { %v5044_v51 = vadd.f32 %v4134_v16, %v3925_v41  ;;  %v4136_v11 = vpop.f32.mrb[193].mxu1 }
 0x5d0   : > { %v5045_v42 = vadd.f32 %v4136_v11, %v3925_v41  ;;  %v7205_v11 = vlaneseq }
 0x5d1   : > { %v4143_v44 = vsel %vm4142_vm0, %v5044_v51, -1e+30 }
 0x5d2   : > { %v4145_v7 = vrot.slane %v4143_v44, 4  ;;  %v4144_v32 = vsel %vm4142_vm0, %v5045_v42, -1e+30  ;;  %vm4221_vm2 = vcmp.lt.s32.totalorder %v7205_v11, 256 }
 0x5d3   : > { %v4151_v62 = vrot.slane %v4144_v32, 4 }
 0x5d4   : > { %v4146_v53 = vmax.f32 %v4143_v44, %v4145_v7 }
 0x5d5   : > { %v4152_v5 = vmax.f32 %v4144_v32, %v4151_v62 }
 0x5d6   : > { %v4147_v49 = vrot.slane %v4146_v53, 2 }
 0x5d7   : > { %v4153_v48 = vrot.slane %v4152_v5, 2 }
 0x5d8   : > { %v4148_v29 = vmax.f32 %v4146_v53, %v4147_v49 }
 0x5d9   : > { %v4154_v55 = vmax.f32 %v4152_v5, %v4153_v48 }
 0x5da   : > { %v4149_v25 = vrot.slane %v4148_v29, 1 }
 0x5db   : > { %v4155_v1 = vrot.slane %v4154_v55, 1 }
 0x5dc   : > { %v4150_v23 = vmax.f32 %v4148_v29, %v4149_v25 }
 0x5dd   : > { %v4156_v10 = vmax.f32 %v4154_v55, %v4155_v1 }
 0x5de   : > { %v4157_v3 = vsub.f32 %v4143_v44, %v4150_v23 }
 0x5df   : > { %v4158_v30 = vsub.f32 %v4144_v32, %v4156_v10 }
 0x5e0   : > { %v4159_v12 = vmul.f32 1.442695, %v4157_v3 }
 0x5e1   : > { %v4161_v50 = vmul.f32 1.442695, %v4158_v30 }
 0x5e2   : > { %5515 = vpow2.f32 %v4159_v12 }
 0x5e3   : > { %5517 = vpow2.f32 %v4161_v50 }
 0x5ec   : > { %v5516_v13 = vpop.eup %5515 }
 0x5ed   : > { %v5518_v60 = vpop.eup %5517  ;;  %v4163_v58 = vrot.slane %v5516_v13, 4 }
 0x5ee   : > { %v4169_v33 = vrot.slane %v5518_v60, 4 }
 0x5ef   : > { %v4164_v61 = vadd.f32 %v5516_v13, %v4163_v58 }
 0x5f0   : > { %v4170_v24 = vadd.f32 %v5518_v60, %v4169_v33 }
 0x5f1   : > { %v4165_v28 = vrot.slane %v4164_v61, 2 }
 0x5f2   : > { %v4171_v2 = vrot.slane %v4170_v24, 2 }
 0x5f3   : > { %v4166_v26 = vadd.f32 %v4165_v28, %v4164_v61 }
 0x5f4   : > { %v4172_v63 = vadd.f32 %v4171_v2, %v4170_v24 }
 0x5f5   : > { %v4167_v20 = vrot.slane %v4166_v26, 1 }
 0x5f6   : > { %v4173_v38 = vrot.slane %v4172_v63, 1 }
 0x5f7   : > { %v4168_v22 = vadd.f32 %v4167_v20, %v4166_v26 }
 0x5f8   : > { %v4174_v9 = vadd.f32 %v4173_v38, %v4172_v63 }
 0x5f9   : > { %5519 = vrcp.f32 %v4168_v22 }
 0x5fa   : > { %5521 = vrcp.f32 %v4174_v9 }
 0x603   : > { %v5520_v43 = vpop.eup %5519 }
 0x604   : > { %v5522_v37 = vpop.eup %5521  ;;  %v4177_v35 = vmul.f32 %v5520_v43, %v5516_v13 }
 0x605   : > { %v4178_v46 = vmul.f32 %v5522_v37, %v5518_v60 }
 0x606   : > { %v4179_v45 = vmul.f32 4.0, %v4177_v35 }
 0x607   : > { %v4180_v57 = vmul.f32 4.0, %v4178_v46 }
 0x608   : > { %v4182_v8 = vsel %vm4181_vm1, %v4179_v45, -inf }
 0x609   : > { %v4183_v0 = vsel %vm4181_vm1, %v4180_v57, -inf }
 0x60a   : > { %v4184_v27 = vmax.f32 %v4182_v8, %v4183_v0 }
 0x60c   : > { %4185 = vmax.xlane.f32.xlu0 %v4184_v27 }
 0x699   : > { %v4186_v17 = vpop.xlane.xlu0 %4185 }
 0x69a   : > { %v4187_v18 = vsub.f32 %v4179_v45, %v4186_v17  ;;  %v4188_v14 = vsub.f32 %v4180_v57, %v4186_v17 }
 0x69c   : > { %v4189_v56 = vmul.f32 1.442695, %v4187_v18  ;;  %v4191_v4 = vmul.f32 1.442695, %v4188_v14 }
 0x69e   : > { %5523 = vpow2.f32 %v4189_v56 }
 0x69f   : > { %5525 = vpow2.f32 %v4191_v4 }
 0x6a8   : > { %v5524_v6 = vpop.eup %5523 }
 0x6a9   : > { %v5526_v15 = vpop.eup %5525  ;;  %v4193_v34 = vsel %vm4181_vm1, %v5524_v6, 0.0 }
 0x6aa   : > { %v4194_v36 = vsel %vm4181_vm1, %v5526_v15, 0.0 }
 0x6ab   : > { %v4195_v59 = vadd.f32 %v4194_v36, %v4193_v34 }
 0x6ad   : > { %4196 = vadd.xlane.f32.xlu1 %v4195_v59 }
 0x73a   : > { %v4197_v40 = vpop.xlane.xlu1 %4196 }
 0x73b   : > { %5527 = vrcp.f32 %v4197_v40 }
 0x745   : > { %v5528_v19 = vpop.eup %5527 }
 0x746   : > { %v4199_v31 = vmul.f32 %v5528_v19, %v5524_v6  ;;  %v4200_v41 = vmul.f32 %v5528_v19, %v5526_v15 }
 0x748   : > { %v4203_v16 = vcombine.low %v4199_v31, %v4200_v41 }
 0x74a   : > { %v4210_v51 = vrot.slane %v4203_v16, %v4209_v47 }
 0x74c   : > { %v4217_v42 = vrot.slane %v4210_v51, %v4209_v47 }
 0x74e   : > { %4223 = vst.msk [vmem:[%s285_s26] sm:$0x3] %vm4221_vm2, %v4217_v42 }
 0x74f   : > { %5669 = shalt.err (!%p5666_p6)
}
 0x750   : > { %s5670_s10 = scalar_lea.hbm %s7004_s23, 32  ;;  %s5674_s16 = scalar_lea.hbm %s7053_s5, 64 }
 0x751   : > { %p5671_p12 = scmp.ne.s32.totalorder %s7004_s23, %s5670_s10  ;;  %p5675_p9 = scmp.lt.u32.totalorder %s7004_s23, %s7053_s5 }
 0x752   : > { %p5676_p8 = scmp.lt.u32.totalorder %s5674_s16, %s5670_s10  ;;  %p5678_p11 = scmp.lt.u32.totalorder %s5670_s10, %s7004_s23 }
 0x753   : > { %p5672_p13 = pnand %p5671_p12, %p7206_p7 }
 0x754   : > { %p5677_p4 = por %p5676_p8, %p5675_p9 }
 0x755   : > { %p5673_p10 = pneg %p5672_p13 }
 0x756   : > { %p5679_p5 = por %p5678_p11, %p5677_p4 }
 0x758   : > { %p5680_p0 = pnand %p5679_p5, %p5673_p10 }
 0x75a   : > { %5683 = shalt.err (!%p5680_p0)
}
 0x75b   : > { %5449 = dma.vmem_to_hbm [thread:$0]  (%p7206_p7), %s7006_s21, 32, %s7004_s23, %s4225_s9  }
 0x75c PF: > { %s4251_s13 = sand.u32 1, %s5720_s28   ;;  %p7207_p2 = scmp.ne.s32.totalorder %s7063_s15, 0 }
 0x75d   : > { %p7208_p3 = scmp.ge.s32.totalorder %s5732_s6, 2  ;;  %s4252_s20 = scalar_lea.sflag [#allocation6], %s4251_s13 }
 0x75f   : > { %p5466_p1 = pnand %p7208_p3, %p7207_p2 }
 0x761   : > { %5715 = dma.done.wait (!%p5466_p1), %s4252_s20, 32  }
 0x762   : > { %5717 = vsyncadd (!%p5466_p1), %s4252_s20, 4294967264  ;;  %s7209_s22 = sld [smem:[#allocation18_spill]]  ;;  %p26_p6 = scmp.ge.s32.totalorder %s5812_s8, 4  }
 0x763   : > { %s7210_s28 = smov %s5724_s29  ;;  %s7211_s29 = smov %s5728_s30 }
 0x764   : > { %s7213_s6 = smov %s5812_s8  ;;  %28 = sbr.rel (!%p26_p6) target bundleno = 20 (0x14), region = 102 }
 0x768   : > { %s7212_s30 = smov %s7209_s22 }
 0x76b   :  { %4257 = vsyncpa [#allocation5], 1 }
 0x76c   :  { %4259 = vsyncpa [#allocation5 + $0x1], 1 }
 0x76d   :  { %4260 = vsyncpa [#allocation8], 1 }
 0x76e   :  { %4261 = vsyncpa [#allocation11], 1 }
 0x76f   :  { %4263 = vsyncpa [#allocation11 + $0x1], 1 }
 0x770   :  { %4264 = vsyncpa [#allocation6], 1 }
 0x771   :  { %4266 = vsyncpa [#allocation6 + $0x1], 1 }

</bundles_post_ra>
